<compile_context>
chip_gen: v5e
topology: v5e:2x2
jax: 0.10.0
libtpu: 0.0.40
codegen_flags: <defaults>
</compile_context>

<pallas_src>
import jax
import jax.numpy as jnp
from jax.experimental import pallas as pl
from jax.experimental.pallas import tpu as pltpu


# ----------------------------------------------------------------------------
# small helpers
# ----------------------------------------------------------------------------

def _pick_tile(dim, target, align):
    """Largest tile <= target that divides `dim` and is `align`-aligned, else the full dim."""
    if dim <= target:
        return dim
    t = (target // align) * align
    while t >= align:
        if dim % t == 0:
            return t
        t -= align
    # Fallback: full dim.  Guard against a silent VMEM blow-up on ragged shapes.
    assert dim * 4 <= 8 * 1024 * 1024, f"no aligned tile divides dim={dim}"
    return dim


def _cparams(*sems):
    return pltpu.CompilerParams(dimension_semantics=sems,
                                vmem_limit_bytes=32 * 1024 * 1024)


# ----------------------------------------------------------------------------
# Pallas kernels
# ----------------------------------------------------------------------------

def fused_matmul(x, w, b=None, *, act="none", ln=None, col_affine=None,
                 residual=None, out_dtype=jnp.float32, eps=1e-5,
                 tm=256, tn=128, tk=512):
    """out = epilogue( prologue(x) @ w )  with bf16 MXU operands and f32 accumulation.

    x: (M, K)   w: (K, N) (bf16 or f32)   b: (1, N) or None
    ln         = (gamma(1,K), beta(1,K))   -> row LayerNorm prologue (single K tile,
                                              normalized operand cached per row block)
    col_affine = (scale(1,K), shift(1,K))  -> per-column affine prologue (BatchNorm apply)
    act in {"none", "quick_gelu", "gelu"}  -> fused epilogue (computed in f32)
    residual: (M, N) added to the output (in f32).
    """
    M, K = x.shape
    Kw, N = w.shape
    assert K == Kw
    has_bias = b is not None
    has_ln = ln is not None
    has_ca = col_affine is not None
    has_res = residual is not None
    has_epi = has_bias or has_res or act != "none"

    bm = _pick_tile(M, tm, 8)
    bn = _pick_tile(N, tn, 128)
    bk = K if has_ln else _pick_tile(K, tk, 128)
    n_k = K // bk
    n_j = N // bn
    assert M % bm == 0 and N % bn == 0 and K % bk == 0

    out_is_f32 = (out_dtype == jnp.float32)
    use_acc = (n_k > 1) and not out_is_f32      # separate f32 VMEM accumulator
    acc_in_out = (n_k > 1) and out_is_f32       # accumulate into the resident output block
    cache_ln = has_ln and (n_j > 1)             # normalize once per row block, reuse over j

    def kernel(*refs):
        refs = list(refs)
        xn_ref = refs.pop() if cache_ln else None
        acc_ref = refs.pop() if use_acc else None
        o_ref = refs.pop()
        it = iter(refs)
        x_ref = next(it)
        w_ref = next(it)
        b_ref = next(it) if has_bias else None
        if has_ln:
            g_ref = next(it)
            be_ref = next(it)
        if has_ca:
            cs_ref = next(it)
            csh_ref = next(it)
        r_ref = next(it) if has_res else None

        j = pl.program_id(1)
        k = pl.program_id(2)

        def make_operand():
            xv = x_ref[...]
            if has_ln or has_ca:
                xv = xv.astype(jnp.float32)
                if has_ln:
                    mu = jnp.mean(xv, axis=-1, keepdims=True)
                    var = jnp.mean(jnp.square(xv - mu), axis=-1, keepdims=True)
                    xv = (xv - mu) * jax.lax.rsqrt(var + eps) * g_ref[...] + be_ref[...]
                if has_ca:
                    xv = xv * cs_ref[...] + csh_ref[...]
            return xv.astype(jnp.bfloat16)

        if cache_ln:
            @pl.when(j == 0)
            def _():
                xn_ref[...] = make_operand()
            xop = xn_ref[...]
        else:
            xop = make_operand()

        contrib = jnp.dot(xop, w_ref[...].astype(jnp.bfloat16),
                          preferred_element_type=jnp.float32)

        def epilogue(o):
            if has_bias:
                o = o + b_ref[...]
            if act == "quick_gelu":
                o = o * jax.nn.sigmoid(1.702 * o)
            elif act == "gelu":
                o = 0.5 * o * (1.0 + jax.lax.erf(o * 0.7071067811865476))
            if has_res:
                o = o + r_ref[...].astype(jnp.float32)
            return o

        if n_k == 1:
            o_ref[...] = epilogue(contrib).astype(o_ref.dtype)
        elif use_acc:
            @pl.when(k == 0)
            def _():
                acc_ref[...] = jnp.zeros_like(acc_ref)
            acc_ref[...] += contrib

            @pl.when(k == n_k - 1)
            def _():
                o_ref[...] = epilogue(acc_ref[...]).astype(o_ref.dtype)
        else:  # acc_in_out: accumulate directly into the resident f32 output block
            @pl.when(k == 0)
            def _():
                o_ref[...] = jnp.zeros_like(o_ref)
            o_ref[...] += contrib
            if has_epi:
                @pl.when(k == n_k - 1)
                def _():
                    o_ref[...] = epilogue(o_ref[...])

    in_specs = [pl.BlockSpec((bm, bk), lambda i, j, kk: (i, kk)),
                pl.BlockSpec((bk, bn), lambda i, j, kk: (kk, j))]
    inputs = [x, w]
    if has_bias:
        in_specs.append(pl.BlockSpec((1, bn), lambda i, j, kk: (0, j)))
        inputs.append(b)
    if has_ln:
        in_specs += [pl.BlockSpec((1, bk), lambda i, j, kk: (0, kk))] * 2
        inputs += [ln[0], ln[1]]
    if has_ca:
        in_specs += [pl.BlockSpec((1, bk), lambda i, j, kk: (0, kk))] * 2
        inputs += [col_affine[0], col_affine[1]]
    if has_res:
        in_specs.append(pl.BlockSpec((bm, bn), lambda i, j, kk: (i, j)))
        inputs.append(residual)

    scratch_shapes = []
    if use_acc:
        scratch_shapes.append(pltpu.VMEM((bm, bn), jnp.float32))
    if cache_ln:
        scratch_shapes.append(pltpu.VMEM((bm, K), jnp.bfloat16))

    sems = ("parallel", "arbitrary", "arbitrary") if cache_ln \
        else ("parallel", "parallel", "arbitrary")

    return pl.pallas_call(
        kernel,
        out_shape=jax.ShapeDtypeStruct((M, N), out_dtype),
        grid=(M // bm, n_j, n_k),
        in_specs=in_specs,
        out_specs=pl.BlockSpec((bm, bn), lambda i, j, kk: (i, j)),
        scratch_shapes=scratch_shapes,
        compiler_params=_cparams(*sems),
    )(*inputs)


def pallas_bn_stats(x2d, gamma, beta, eps=1e-5):
    """Training-mode BatchNorm batch statistics over the FULL batch dimension.

    Returns per-channel (scale, shift) with  y = x * scale + shift  equivalent to BN(x).
    Accumulate/finalize pattern: the two outputs stay resident (constant block index)
    and hold sum / sum-of-squares until the last grid step.
    """
    M, C = x2d.shape
    tm = _pick_tile(M, 1024, 8)
    n_m = M // tm

    def kernel(x_ref, g_ref, b_ref, scale_ref, shift_ref):
        i = pl.program_id(0)

        @pl.when(i == 0)
        def _():
            scale_ref[...] = jnp.zeros_like(scale_ref)
            shift_ref[...] = jnp.zeros_like(shift_ref)

        x = x_ref[...].astype(jnp.float32)
        scale_ref[...] += jnp.sum(x, axis=0, keepdims=True)
        shift_ref[...] += jnp.sum(x * x, axis=0, keepdims=True)

        @pl.when(i == n_m - 1)
        def _():
            mean = scale_ref[...] / M
            var = jnp.maximum(shift_ref[...] / M - mean * mean, 0.0)
            sc = g_ref[...] * jax.lax.rsqrt(var + eps)
            scale_ref[...] = sc
            shift_ref[...] = b_ref[...] - mean * sc

    vec = pl.BlockSpec((1, C), lambda i: (0, 0))
    out = pl.pallas_call(
        kernel,
        out_shape=[jax.ShapeDtypeStruct((1, C), jnp.float32)] * 2,
        grid=(n_m,),
        in_specs=[pl.BlockSpec((tm, C), lambda i: (i, 0)), vec, vec],
        out_specs=[vec, vec],
        compiler_params=_cparams("arbitrary"),
    )(x2d, gamma, beta)
    return out[0], out[1]


def pallas_affine(x2d, scale, shift):
    """y = x * scale + shift  (per-column), tiled over rows."""
    M, C = x2d.shape
    tm = _pick_tile(M, 1024, 8)

    def kernel(x_ref, s_ref, sh_ref, o_ref):
        o_ref[...] = x_ref[...].astype(jnp.float32) * s_ref[...] + sh_ref[...]

    vec = pl.BlockSpec((1, C), lambda i: (0, 0))
    return pl.pallas_call(
        kernel,
        out_shape=jax.ShapeDtypeStruct((M, C), jnp.float32),
        grid=(M // tm,),
        in_specs=[pl.BlockSpec((tm, C), lambda i: (i, 0)), vec, vec],
        out_specs=pl.BlockSpec((tm, C), lambda i: (i, 0)),
        compiler_params=_cparams("parallel"),
    )(x2d, scale, shift)


def pallas_embed_ln(xp, cls_emb, pos_emb, gamma, beta, eps=1e-5):
    """Fused [cls ; patch-embed] concat + positional-embedding add + ln_pre.

    xp: (BT, HW, W) patch embeddings; cls_emb: (1, W); pos_emb: (HW+1, W).
    Returns (BT, HW+1, W) f32.
    """
    BT, HW, W = xp.shape
    L = HW + 1

    def kernel(x_ref, c_ref, p_ref, g_ref, b_ref, o_ref):
        rows = jnp.concatenate([c_ref[...], x_ref[0].astype(jnp.float32)], axis=0)
        rows = rows + p_ref[...]
        mu = jnp.mean(rows, axis=-1, keepdims=True)
        var = jnp.mean(jnp.square(rows - mu), axis=-1, keepdims=True)
        o_ref[0] = (rows - mu) * jax.lax.rsqrt(var + eps) * g_ref[...] + b_ref[...]

    vec = pl.BlockSpec((1, W), lambda i: (0, 0))
    return pl.pallas_call(
        kernel,
        out_shape=jax.ShapeDtypeStruct((BT, L, W), jnp.float32),
        grid=(BT,),
        in_specs=[pl.BlockSpec((1, HW, W), lambda i: (i, 0, 0)),
                  vec,
                  pl.BlockSpec((L, W), lambda i: (0, 0)),
                  vec, vec],
        out_specs=pl.BlockSpec((1, L, W), lambda i: (i, 0, 0)),
        compiler_params=_cparams("parallel"),
    )(xp, cls_emb, pos_emb, gamma, beta)


def pallas_side_patch_embed(patches4, w_taps, bias):
    """Temporal (kernel-3, pad-1) patch-embed conv of the side path, without im2col blow-up.

    patches4: (B, T, HW, Cp) per-frame patch columns
    w_taps:   (3, Cp, S) bf16 -- one (Cp, S) matmul weight per temporal tap
    bias:     (1, S)
    out[b, t] = sum_k patches4[b, t + k - 1] @ w_taps[k] + bias   (zero-padded in t)
    """
    B, T, HW, Cp = patches4.shape
    _, _, S = w_taps.shape
    hwt = _pick_tile(HW, 128, 8)

    def kernel(x_ref, w_ref, b_ref, o_ref):
        w0 = w_ref[0].astype(jnp.bfloat16)
        w1 = w_ref[1].astype(jnp.bfloat16)
        w2 = w_ref[2].astype(jnp.bfloat16)
        bv = b_ref[...]
        for t in range(T):
            acc = jnp.dot(x_ref[0, t].astype(jnp.bfloat16), w1,
                          preferred_element_type=jnp.float32)
            if t > 0:
                acc += jnp.dot(x_ref[0, t - 1].astype(jnp.bfloat16), w0,
                               preferred_element_type=jnp.float32)
            if t < T - 1:
                acc += jnp.dot(x_ref[0, t + 1].astype(jnp.bfloat16), w2,
                               preferred_element_type=jnp.float32)
            o_ref[0, t] = (acc + bv).astype(o_ref.dtype)

    x_spec = pl.BlockSpec((1, T, hwt, Cp), lambda b, j: (b, 0, j, 0))
    o_spec = pl.BlockSpec((1, T, hwt, S), lambda b, j: (b, 0, j, 0))
    return pl.pallas_call(
        kernel,
        out_shape=jax.ShapeDtypeStruct((B, T, HW, S), jnp.float32),
        grid=(B, HW // hwt),
        in_specs=[x_spec,
                  pl.BlockSpec((3, Cp, S), lambda b, j: (0, 0, 0)),
                  pl.BlockSpec((1, S), lambda b, j: (0, 0))],
        out_specs=o_spec,
        compiler_params=_cparams("parallel", "parallel"),
    )(patches4, w_taps, bias)


def pallas_attention(qkv, n_head, *, out_dtype=jnp.bfloat16):
    """Multi-head self-attention on a packed Q/K/V tensor.

    qkv: (N, L, 3D) (bf16).  Returns (N, L, D) in `out_dtype` (bf16 by default so the
    out-projection read is half-width).  Heads are processed one at a time; each head's
    output is stored directly into its lane slice (no concat, one head live at a time).
    """
    N, L, D3 = qkv.shape
    D = D3 // 3
    hd = D // n_head
    scale = hd ** -0.5

    def kernel(qkv_ref, o_ref):
        for h in range(n_head):
            q = qkv_ref[0, :, h * hd:(h + 1) * hd].astype(jnp.float32) * scale
            k = qkv_ref[0, :, D + h * hd:D + (h + 1) * hd]
            v = qkv_ref[0, :, 2 * D + h * hd:2 * D + (h + 1) * hd]
            s = jax.lax.dot_general(q.astype(jnp.bfloat16), k.astype(jnp.bfloat16),
                                    (((1,), (1,)), ((), ())),
                                    preferred_element_type=jnp.float32)
            s = s - jnp.max(s, axis=-1, keepdims=True)
            p = jnp.exp(s)
            denom = jnp.sum(p, axis=-1, keepdims=True)
            o = jnp.dot(p.astype(jnp.bfloat16), v.astype(jnp.bfloat16),
                        preferred_element_type=jnp.float32)
            o = o * pl.reciprocal(denom, approx=True)
            o_ref[0, :, h * hd:(h + 1) * hd] = o.astype(o_ref.dtype)

    return pl.pallas_call(
        kernel,
        out_shape=jax.ShapeDtypeStruct((N, L, D), out_dtype),
        grid=(N,),
        in_specs=[pl.BlockSpec((1, L, D3), lambda n: (n, 0, 0))],
        out_specs=pl.BlockSpec((1, L, D), lambda n: (n, 0, 0)),
        compiler_params=_cparams("parallel"),
    )(qkv)


def pallas_conv_branch(x4, bn_scale, bn_shift, w1, b1, wdw, bdw, w2, b2):
    """Entire AttnCBlock conv branch in one kernel:
         out = x + pw_conv2( dw_conv1_temporal( pw_conv1( BN(x) ) ) )
    x4: (B, T, HW, S) f32; the full T range lives inside the block so the temporal
    (kernel-3, pad-1) depthwise stencil needs no shifted HBM copies.  A rolling 3-slot
    window keeps only prev/cur/next pw_conv1 results live.
    """
    B, T, HW, S = x4.shape
    hwt = _pick_tile(HW, 128, 8)

    def kernel(x_ref, s_ref, sh_ref, w1_ref, b1_ref, wd_ref, bd_ref, w2_ref, b2_ref, o_ref):
        scale = s_ref[...]
        shift = sh_ref[...]
        w1v = w1_ref[...].astype(jnp.bfloat16)
        w2v = w2_ref[...].astype(jnp.bfloat16)
        b1v = b1_ref[...]
        b2v = b2_ref[...]
        bdv = bd_ref[...]
        wp = wd_ref[0:1, :]
        wc = wd_ref[1:2, :]
        wn = wd_ref[2:3, :]

        def pw1(t):
            xn = x_ref[0, t].astype(jnp.float32) * scale + shift     # BN apply
            return jnp.dot(xn.astype(jnp.bfloat16), w1v,
                           preferred_element_type=jnp.float32) + b1v  # pw_conv1

        prev = None
        cur = pw1(0)
        nxt = pw1(1) if T > 1 else None
        for t in range(T):
            z = cur * wc + bdv                                       # depthwise temporal conv
            if prev is not None:
                z = z + prev * wp
            if nxt is not None:
                z = z + nxt * wn
            o = jnp.dot(z.astype(jnp.bfloat16), w2v,
                        preferred_element_type=jnp.float32) + b2v    # pw_conv2
            o_ref[0, t] = (x_ref[0, t].astype(jnp.float32) + o).astype(o_ref.dtype)
            prev = cur
            cur = nxt
            nxt = pw1(t + 2) if (t + 2) < T else None

    x_spec = pl.BlockSpec((1, T, hwt, S), lambda bb, jj: (bb, 0, jj, 0))
    vec = pl.BlockSpec((1, S), lambda bb, jj: (0, 0))
    mat = pl.BlockSpec((S, S), lambda bb, jj: (0, 0))
    return pl.pallas_call(
        kernel,
        out_shape=jax.ShapeDtypeStruct((B, T, HW, S), jnp.float32),
        grid=(B, HW // hwt),
        in_specs=[x_spec, vec, vec, mat, vec,
                  pl.BlockSpec((3, S), lambda bb, jj: (0, 0)), vec, mat, vec],
        out_specs=x_spec,
        compiler_params=_cparams("parallel", "parallel"),
    )(x4, bn_scale, bn_shift, w1, b1, wdw, bdw, w2, b2)


# ----------------------------------------------------------------------------
# Module building blocks (thin JAX glue around the fused Pallas kernels)
# ----------------------------------------------------------------------------

def residual_attention_block(x, p, n_head):
    """x: (BT, L, W) -> (BT, L, W).  LN1/LN2 and residual adds are fused into the matmuls;
    Q/K/V share one matmul with a packed (W, 3W) weight."""
    BT, L, W = x.shape
    xf = x.reshape(BT * L, W)
    qkv = fused_matmul(xf, p["wqkv"], p["bqkv"], ln=(p["ln1_g"], p["ln1_b"]),
                       out_dtype=jnp.bfloat16).reshape(BT, L, 3 * W)
    a = pallas_attention(qkv, n_head)
    x = fused_matmul(a.reshape(BT * L, W), p["out_w"], p["out_b"],
                     residual=xf).reshape(BT, L, W)
    xf = x.reshape(BT * L, W)
    h = fused_matmul(xf, p["fc_w"], p["fc_b"], act="quick_gelu",
                     ln=(p["ln2_g"], p["ln2_b"]), out_dtype=jnp.bfloat16)
    x = fused_matmul(h, p["proj_w"], p["proj_b"], residual=xf).reshape(BT, L, W)
    return x


def shift_token(x_token, T):
    """x_token: (BT, 1, S) batch-first temporal half-channel shift."""
    BT, _, S = x_token.shape
    B = BT // T
    fold = S // 2
    xt = x_token.reshape(B, T, S)
    out = jnp.zeros_like(xt)
    out = out.at[:, :-1, :fold].set(xt[:, 1:, :fold])
    out = out.at[:, 1:, fold:].set(xt[:, :-1, fold:])
    return out.reshape(BT, 1, S)


def attn_c_block(x_side, x_token, pos_emb, p, T):
    """AttnCBlock (kernel_size=1).  x_side: (BT, HW, S), x_token: (BT, 1, S)."""
    BT, HW, S = x_side.shape
    B = BT // T

    # --- local conv branch: BN + pw1 + dw(temporal) + pw2 + residual, fully fused ------
    sc1, sh1 = pallas_bn_stats(x_side.reshape(BT * HW, S), p["bn1_g"], p["bn1_b"])
    x_side = pallas_conv_branch(x_side.reshape(B, T, HW, S), sc1, sh1,
                                p["pw1_w"], p["pw1_b"], p["dw_w"], p["dw_b"],
                                p["pw2_w"], p["pw2_b"]).reshape(BT, HW, S)

    # --- token attention branch (packed QKV, LN fused into the projection) -------------
    x_tok = shift_token(x_token, T)
    # TODO(synk): the [token ; x_side] concat + positional add could also be folded into
    # the QKV LayerNorm prologue (needs a row-index-aware pos gather in the prologue).
    xt = jnp.concatenate([x_tok, x_side], axis=1) + pos_emb[None]       # (BT, HW+1, S)
    L = HW + 1
    qkv = fused_matmul(xt.reshape(BT * L, S), p["swqkv"], p["sbqkv"],
                       ln=(p["ln1a_g"], p["ln1a_b"]),
                       out_dtype=jnp.bfloat16).reshape(BT, L, 3 * S)
    a = pallas_attention(qkv, S // 64)
    ao = fused_matmul(a.reshape(BT * L, S), p["sout_w"], p["sout_b"]).reshape(BT, L, S)
    x_side = x_side + ao[:, 1:, :]

    # --- MLP branch: BN stats -> (BN affine + fc1 + GELU) -> (fc2 + residual) -----------
    sc2, sh2 = pallas_bn_stats(x_side.reshape(BT * HW, S), p["bn2_g"], p["bn2_b"])
    xf = x_side.reshape(BT * HW, S)
    h = fused_matmul(xf, p["fc1_w"], p["fc1_b"], act="gelu",
                     col_affine=(sc2, sh2), out_dtype=jnp.bfloat16)
    x_side = fused_matmul(h, p["fc2_w"], p["fc2_b"], residual=xf).reshape(BT, HW, S)
    return x_side


def side_transformer_forward(x, x_side, params, heads, T):
    for i in range(len(params["resblocks"])):
        x = residual_attention_block(x, params["resblocks"][i], heads)
        lp = params["side"][i]
        BT, L, W = x.shape
        # LayerNorm + side linear fused
        xs2xt = fused_matmul(x.reshape(BT * L, W), lp["lin_w"], lp["lin_b"],
                             ln=(lp["ln_g"], lp["ln_b"])).reshape(BT, L, -1)
        x_token = xs2xt[:, :1, :]
        x_side = 0.5 * x_side + 0.5 * xs2xt[:, 1:, :]
        x_side = attn_c_block(x_side, x_token, params["side_pos"], lp["block"], T)
    return x, x_side


def visual_transformer_forward(x, params, cfg):
    """x: (B*T, 3, H, W) float32, NCHW (matches the PyTorch module input)."""
    BT, C, H, W_img = x.shape
    T = cfg["T"]
    B = BT // T
    ps = cfg["patch_size"]
    width = cfg["width"]
    S = cfg["side_dim"]
    g = H // ps
    HW = g * g
    Cp = C * ps * ps

    # Shared per-frame patch extraction (used by BOTH the main conv1 and the side conv1);
    # the 3 temporal taps of the side conv are resolved inside the Pallas kernel, so no
    # 3x im2col blow-up is materialized in HBM.
    patches = x.reshape(BT, C, g, ps, g, ps).transpose(0, 2, 4, 1, 3, 5)
    patches = patches.reshape(BT, HW, Cp)

    # ---------------- side path: temporal patch-embed conv + pre-BN3d -------------------
    x_side = pallas_side_patch_embed(patches.reshape(B, T, HW, Cp),
                                     params["side_conv1_w"], params["side_conv1_b"])
    x_side = x_side.reshape(BT * HW, S)
    sc, sh = pallas_bn_stats(x_side, params["side_pre_bn_g"], params["side_pre_bn_b"])
    x_side = pallas_affine(x_side, sc, sh).reshape(BT, HW, S)           # batch-first

    # ---------------- main path: conv1 patch embed + (cls + pos + ln_pre) fused ---------
    xp = fused_matmul(patches.reshape(BT * HW, Cp), params["conv1_w"]).reshape(BT, HW, width)
    xt = pallas_embed_ln(xp, params["class_embedding"], params["positional_embedding"],
                         params["ln_pre_g"], params["ln_pre_b"])        # (BT, HW+1, W)

    # ---------------- SideTransformer (batch-first everywhere, no permutes) -------------
    xt, x_side = side_transformer_forward(xt, x_side, params, cfg["heads"], T)

    # ---------------- side post-processing: BN stats + spatial mean + side_proj ---------
    psc, psh = pallas_bn_stats(x_side.reshape(BT * HW, S),
                               params["side_post_bn_g"], params["side_post_bn_b"])
    x_side_mean = jnp.mean(x_side, axis=1)                              # (BT, S); BN apply
    x_side_out = fused_matmul(x_side_mean, params["side_proj"],         # commutes with mean
                              col_affine=(psc, psh))                    # (BT, width)

    # ---------------- head: ln_post fused into the projection matmul --------------------
    xx = xt[:, 0, :] + x_side_out
    out = fused_matmul(xx, params["proj"], ln=(params["ln_post_g"], params["ln_post_b"]))
    return out.reshape(B, T, cfg["output_dim"])


# ----------------------------------------------------------------------------
# Deterministic parameter initialization (shapes follow the module __init__;
# matmul weights stored pre-transposed (K, N), Q/K/V packed, bf16 for the MXU).
# ----------------------------------------------------------------------------

def init_params(key, cfg):
    W = cfg["width"]
    S = cfg["side_dim"]
    ps = cfg["patch_size"]
    Lyr = cfg["layers"]
    O = cfg["output_dim"]
    P = (cfg["input_resolution"] // ps) ** 2
    Cp = 3 * ps * ps

    keys = iter(jax.random.split(key, 1024))

    def n(shape, std=0.02, dtype=jnp.float32):
        return (std * jax.random.normal(next(keys), shape, jnp.float32)).astype(dtype)

    def nb(shape, std=0.02):
        return n(shape, std, jnp.bfloat16)

    ones = lambda s: jnp.ones(s, jnp.float32)
    zeros = lambda s: jnp.zeros(s, jnp.float32)

    scale = W ** -0.5
    attn_std = W ** -0.5
    fc_std = (2 * W) ** -0.5
    proj_std = (W ** -0.5) * ((2 * Lyr) ** -0.5)
    s_attn = S ** -0.5
    s_fc = (2 * S) ** -0.5
    s_proj = (S ** -0.5) * ((2 * 12) ** -0.5)

    params = dict(
        conv1_w=nb((Cp, W)),
        class_embedding=n((1, W), scale),
        positional_embedding=n((P + 1, W), scale),
        ln_pre_g=ones((1, W)), ln_pre_b=zeros((1, W)),
        ln_post_g=ones((1, W)), ln_post_b=zeros((1, W)),
        proj=nb((W, O), scale),
        side_proj=jnp.zeros((S, W), jnp.bfloat16),        # module inits this to zeros
        side_conv1_w=nb((3, Cp, S)),                       # 3 temporal taps, (Cp, S) each
        side_conv1_b=zeros((1, S)),
        side_pre_bn_g=ones((1, S)), side_pre_bn_b=zeros((1, S)),
        side_post_bn_g=ones((1, S)), side_post_bn_b=zeros((1, S)),
        side_pos=n((P + 1, S), 0.01),
        resblocks=[], side=[],
    )

    for _ in range(Lyr):
        params["resblocks"].append(dict(
            ln1_g=ones((1, W)), ln1_b=zeros((1, W)),
            ln2_g=ones((1, W)), ln2_b=zeros((1, W)),
            wqkv=nb((W, 3 * W), attn_std), bqkv=zeros((1, 3 * W)),
            out_w=nb((W, W), proj_std), out_b=zeros((1, W)),
            fc_w=nb((W, 4 * W), fc_std), fc_b=zeros((1, 4 * W)),
            proj_w=nb((4 * W, W), proj_std), proj_b=zeros((1, W)),
        ))
        params["side"].append(dict(
            ln_g=ones((1, W)), ln_b=zeros((1, W)),
            lin_w=nb((W, S)), lin_b=zeros((1, S)),
            block=dict(
                bn1_g=ones((1, S)), bn1_b=zeros((1, S)),
                bn2_g=ones((1, S)), bn2_b=zeros((1, S)),
                pw1_w=nb((S, S)), pw1_b=zeros((1, S)),
                pw2_w=nb((S, S)), pw2_b=zeros((1, S)),
                dw_w=n((3, S), s_attn), dw_b=zeros((1, S)),
                ln1a_g=ones((1, S)), ln1a_b=zeros((1, S)),
                swqkv=nb((S, 3 * S), s_attn), sbqkv=zeros((1, 3 * S)),
                sout_w=nb((S, S), s_proj), sout_b=zeros((1, S)),
                fc1_w=nb((S, 4 * S), s_fc), fc1_b=zeros((1, 4 * S)),
                fc2_w=nb((4 * S, S), s_proj), fc2_b=zeros((1, S)),
            ),
        ))
    return params


# ----------------------------------------------------------------------------
# Main
# ----------------------------------------------------------------------------

if __name__ == "__main__":
    cfg = dict(
        input_resolution=16,
        patch_size=8,
        width=64,
        layers=2,
        heads=2,
        output_dim=32,
        T=4,
        side_dim=64,   # must be a multiple of 64 (AttnCBlock uses dim // 64 heads)
    )
    B = 2
    BT = B * cfg["T"]

    key = jax.random.PRNGKey(0)
    k_param, k_input = jax.random.split(key)
    params = init_params(k_param, cfg)

    # Input matches the PyTorch module: ((B*T), 3, H, W) in NCHW.
    x = jax.random.normal(
        k_input, (BT, 3, cfg["input_resolution"], cfg["input_resolution"]), dtype=jnp.float32)

    fwd = jax.jit(lambda xx, pp: visual_transformer_forward(xx, pp, cfg))
    out = jax.block_until_ready(fwd(x, params))

    assert out.shape == (B, cfg["T"], cfg["output_dim"]), out.shape
    assert jnp.all(jnp.isfinite(out))
    print("KERNEL_OK")
</pallas_src>

<mosaic_0001>
module attributes {stable_mosaic.version = 11 : i64} {
  func.func @kernel(%arg0: i32, %arg1: i32, %arg2: i32, %arg3: memref<32x192xf32, #tpu.memory_space<vmem>>, %arg4: memref<192x64xbf16, #tpu.memory_space<vmem>>, %arg5: memref<32x64xf32, #tpu.memory_space<vmem>>) attributes {dimension_semantics = [#tpu.dimension_semantics<parallel>, #tpu.dimension_semantics<parallel>, #tpu.dimension_semantics<arbitrary>], iteration_bounds = array<i64: 1, 1, 1>, scalar_prefetch = 0 : i64, scratch_operands = 0 : i64, tpu.core_type = #tpu.core_type<tc>, window_params = [{transform_indices = @transform_0, window_bounds = array<i64: 32, 192>}, {transform_indices = @transform_1, window_bounds = array<i64: 192, 64>}, {transform_indices = @transform_2, window_bounds = array<i64: 32, 64>}]} {
    %c0 = arith.constant 0 : index
    %c0_0 = arith.constant 0 : index
    %0 = vector.load %arg3[%c0, %c0_0] : memref<32x192xf32, #tpu.memory_space<vmem>>, vector<32x192xf32>
    %1 = arith.truncf %0 : vector<32x192xf32> to vector<32x192xbf16>
    %c0_1 = arith.constant 0 : index
    %c0_2 = arith.constant 0 : index
    %2 = vector.load %arg4[%c0_1, %c0_2] : memref<192x64xbf16, #tpu.memory_space<vmem>>, vector<192x64xbf16>
    %cst = arith.constant dense<0.000000e+00> : vector<32x64xf32>
    %3 = tpu.matmul %1, %2, %cst {dimension_numbers = #tpu.dot_dimension_numbers<[1], [0], [0], [1], [0, 0, 1, 1], [], []>} : vector<32x192xbf16>, vector<192x64xbf16>, vector<32x64xf32> -> vector<32x64xf32>
    %c0_3 = arith.constant 0 : index
    %c0_4 = arith.constant 0 : index
    %4 = vector.load %arg5[%c0_3, %c0_4] : memref<32x64xf32, #tpu.memory_space<vmem>>, vector<32x64xf32>
    tpu.vector_store %arg5[%c0_3, %c0_4], %3 {strides = array<i32>} : memref<32x64xf32, #tpu.memory_space<vmem>>, vector<32x64xf32>,
    return
  }
  func.func @transform_0(%arg0: i32, %arg1: i32, %arg2: i32) -> (i32, i32) {
    %c0_i32 = arith.constant 0 : i32
    return %arg0, %arg2 : i32, i32
  }
  func.func @transform_1(%arg0: i32, %arg1: i32, %arg2: i32) -> (i32, i32) {
    %c0_i32 = arith.constant 0 : i32
    return %arg2, %arg1 : i32, i32
  }
  func.func @transform_2(%arg0: i32, %arg1: i32, %arg2: i32) -> (i32, i32) {
    %c0_i32 = arith.constant 0 : i32
    return %arg0, %arg1 : i32, i32
  }
}

module attributes {stable_mosaic.version = 11 : i64} {
  func.func @kernel(%arg0: i32, %arg1: memref<1x4x64xf32, #tpu.memory_space<vmem>>, %arg2: memref<1x64xf32, #tpu.memory_space<vmem>>, %arg3: memref<5x64xf32, #tpu.memory_space<vmem>>, %arg4: memref<1x64xf32, #tpu.memory_space<vmem>>, %arg5: memref<1x64xf32, #tpu.memory_space<vmem>>, %arg6: memref<1x5x64xf32, #tpu.memory_space<vmem>>) attributes {dimension_semantics = [#tpu.dimension_semantics<parallel>], iteration_bounds = array<i64: 8>, scalar_prefetch = 0 : i64, scratch_operands = 0 : i64, tpu.core_type = #tpu.core_type<tc>, window_params = [{transform_indices = @transform_0, window_bounds = array<i64: 1, 4, 64>}, {pipeline_mode = #tpu.pipeline_mode<synchronous>, transform_indices = @transform_1, window_bounds = array<i64: 1, 64>}, {pipeline_mode = #tpu.pipeline_mode<synchronous>, transform_indices = @transform_2, window_bounds = array<i64: 5, 64>}, {pipeline_mode = #tpu.pipeline_mode<synchronous>, transform_indices = @transform_3, window_bounds = array<i64: 1, 64>}, {pipeline_mode = #tpu.pipeline_mode<synchronous>, transform_indices = @transform_4, window_bounds = array<i64: 1, 64>}, {transform_indices = @transform_5, window_bounds = array<i64: 1, 5, 64>}]} {
    %c0 = arith.constant 0 : index
    %c0_0 = arith.constant 0 : index
    %0 = vector.load %arg2[%c0, %c0_0] : memref<1x64xf32, #tpu.memory_space<vmem>>, vector<1x64xf32>
    %c0_1 = arith.constant 0 : index
    %c0_2 = arith.constant 0 : index
    %c0_3 = arith.constant 0 : index
    %1 = vector.load %arg1[%c0_1, %c0_2, %c0_3] : memref<1x4x64xf32, #tpu.memory_space<vmem>>, vector<1x4x64xf32>
    %2 = vector.shape_cast %1 : vector<1x4x64xf32> to vector<4x64xf32>
    %3 = tpu.concatenate %0, %2 in 0 : vector<1x64xf32>, vector<4x64xf32> -> vector<5x64xf32>
    %c0_4 = arith.constant 0 : index
    %c0_5 = arith.constant 0 : index
    %4 = vector.load %arg3[%c0_4, %c0_5] : memref<5x64xf32, #tpu.memory_space<vmem>>, vector<5x64xf32>
    %5 = arith.addf %3, %4 : vector<5x64xf32>
    %cst = arith.constant dense<0.000000e+00> : vector<5xf32>
    %6 = vector.multi_reduction <add>, %5, %cst [1] : vector<5x64xf32> to vector<5xf32>
    %7 = vector.shape_cast %6 : vector<5xf32> to vector<5x1xf32>
    %cst_6 = arith.constant 6.400000e+01 : f32
    %8 = vector.broadcast %cst_6 : f32 to vector<5x1xf32>
    %9 = arith.divf %7, %8 : vector<5x1xf32>
    %10 = vector.broadcast %9 : vector<5x1xf32> to vector<5x64xf32>
    %11 = arith.subf %5, %10 : vector<5x64xf32>
    %12 = arith.mulf %11, %11 : vector<5x64xf32>
    %cst_7 = arith.constant dense<0.000000e+00> : vector<5xf32>
    %13 = vector.multi_reduction <add>, %12, %cst_7 [1] : vector<5x64xf32> to vector<5xf32>
    %14 = vector.shape_cast %13 : vector<5xf32> to vector<5x1xf32>
    %cst_8 = arith.constant 6.400000e+01 : f32
    %15 = vector.broadcast %cst_8 : f32 to vector<5x1xf32>
    %16 = arith.divf %14, %15 : vector<5x1xf32>
    %17 = vector.broadcast %9 : vector<5x1xf32> to vector<5x64xf32>
    %18 = arith.subf %5, %17 : vector<5x64xf32>
    %cst_9 = arith.constant 9.99999974E-6 : f32
    %19 = vector.broadcast %cst_9 : f32 to vector<5x1xf32>
    %20 = arith.addf %16, %19 : vector<5x1xf32>
    %21 = math.rsqrt %20 : vector<5x1xf32>
    %22 = vector.broadcast %21 : vector<5x1xf32> to vector<5x64xf32>
    %23 = arith.mulf %18, %22 : vector<5x64xf32>
    %c0_10 = arith.constant 0 : index
    %c0_11 = arith.constant 0 : index
    %24 = vector.load %arg4[%c0_10, %c0_11] : memref<1x64xf32, #tpu.memory_space<vmem>>, vector<1x64xf32>
    %25 = vector.broadcast %24 : vector<1x64xf32> to vector<5x64xf32>
    %26 = arith.mulf %23, %25 : vector<5x64xf32>
    %c0_12 = arith.constant 0 : index
    %c0_13 = arith.constant 0 : index
    %27 = vector.load %arg5[%c0_12, %c0_13] : memref<1x64xf32, #tpu.memory_space<vmem>>, vector<1x64xf32>
    %28 = vector.broadcast %27 : vector<1x64xf32> to vector<5x64xf32>
    %29 = arith.addf %26, %28 : vector<5x64xf32>
    %c0_14 = arith.constant 0 : index
    %c0_15 = arith.constant 0 : index
    %c0_16 = arith.constant 0 : index
    %30 = vector.load %arg6[%c0_14, %c0_15, %c0_16] : memref<1x5x64xf32, #tpu.memory_space<vmem>>, vector<1x5x64xf32>
    %31 = vector.shape_cast %30 : vector<1x5x64xf32> to vector<5x64xf32>
    %32 = vector.shape_cast %29 : vector<5x64xf32> to vector<1x5x64xf32>
    tpu.vector_store %arg6[%c0_14, %c0_15, %c0_16], %32 {strides = array<i32>} : memref<1x5x64xf32, #tpu.memory_space<vmem>>, vector<1x5x64xf32>,
    return
  }
  func.func @transform_0(%arg0: i32) -> (i32, i32, i32) {
    %c0_i32 = arith.constant 0 : i32
    %c0_i32_0 = arith.constant 0 : i32
    %c0_i32_1 = arith.constant 0 : i32
    return %arg0, %c0_i32, %c0_i32_0 : i32, i32, i32
  }
  func.func @transform_1(%arg0: i32) -> (i32, i32) {
    %c0_i32 = arith.constant 0 : i32
    %c0_i32_0 = arith.constant 0 : i32
    %c0_i32_1 = arith.constant 0 : i32
    return %c0_i32, %c0_i32_0 : i32, i32
  }
  func.func @transform_2(%arg0: i32) -> (i32, i32) {
    %c0_i32 = arith.constant 0 : i32
    %c0_i32_0 = arith.constant 0 : i32
    %c0_i32_1 = arith.constant 0 : i32
    return %c0_i32, %c0_i32_0 : i32, i32
  }
  func.func @transform_3(%arg0: i32) -> (i32, i32) {
    %c0_i32 = arith.constant 0 : i32
    %c0_i32_0 = arith.constant 0 : i32
    %c0_i32_1 = arith.constant 0 : i32
    return %c0_i32, %c0_i32_0 : i32, i32
  }
  func.func @transform_4(%arg0: i32) -> (i32, i32) {
    %c0_i32 = arith.constant 0 : i32
    %c0_i32_0 = arith.constant 0 : i32
    %c0_i32_1 = arith.constant 0 : i32
    return %c0_i32, %c0_i32_0 : i32, i32
  }
  func.func @transform_5(%arg0: i32) -> (i32, i32, i32) {
    %c0_i32 = arith.constant 0 : i32
    %c0_i32_0 = arith.constant 0 : i32
    %c0_i32_1 = arith.constant 0 : i32
    return %arg0, %c0_i32, %c0_i32_0 : i32, i32, i32
  }
}

module attributes {stable_mosaic.version = 11 : i64} {
  func.func @kernel(%arg0: i32, %arg1: i32, %arg2: i32, %arg3: memref<40x64xf32, #tpu.memory_space<vmem>>, %arg4: memref<64x192xbf16, #tpu.memory_space<vmem>>, %arg5: memref<1x192xf32, #tpu.memory_space<vmem>>, %arg6: memref<1x64xf32, #tpu.memory_space<vmem>>, %arg7: memref<1x64xf32, #tpu.memory_space<vmem>>, %arg8: memref<40x192xbf16, #tpu.memory_space<vmem>>) attributes {dimension_semantics = [#tpu.dimension_semantics<parallel>, #tpu.dimension_semantics<parallel>, #tpu.dimension_semantics<arbitrary>], iteration_bounds = array<i64: 1, 1, 1>, scalar_prefetch = 0 : i64, scratch_operands = 0 : i64, tpu.core_type = #tpu.core_type<tc>, window_params = [{transform_indices = @transform_0, window_bounds = array<i64: 40, 64>}, {transform_indices = @transform_1, window_bounds = array<i64: 64, 192>}, {transform_indices = @transform_2, window_bounds = array<i64: 1, 192>}, {transform_indices = @transform_3, window_bounds = array<i64: 1, 64>}, {transform_indices = @transform_4, window_bounds = array<i64: 1, 64>}, {transform_indices = @transform_5, window_bounds = array<i64: 40, 192>}]} {
    %c0 = arith.constant 0 : index
    %c0_0 = arith.constant 0 : index
    %0 = vector.load %arg3[%c0, %c0_0] : memref<40x64xf32, #tpu.memory_space<vmem>>, vector<40x64xf32>
    %cst = arith.constant dense<0.000000e+00> : vector<40xf32>
    %1 = vector.multi_reduction <add>, %0, %cst [1] : vector<40x64xf32> to vector<40xf32>
    %2 = vector.shape_cast %1 : vector<40xf32> to vector<40x1xf32>
    %cst_1 = arith.constant 6.400000e+01 : f32
    %3 = vector.broadcast %cst_1 : f32 to vector<40x1xf32>
    %4 = arith.divf %2, %3 : vector<40x1xf32>
    %5 = vector.broadcast %4 : vector<40x1xf32> to vector<40x64xf32>
    %6 = arith.subf %0, %5 : vector<40x64xf32>
    %7 = arith.mulf %6, %6 : vector<40x64xf32>
    %cst_2 = arith.constant dense<0.000000e+00> : vector<40xf32>
    %8 = vector.multi_reduction <add>, %7, %cst_2 [1] : vector<40x64xf32> to vector<40xf32>
    %9 = vector.shape_cast %8 : vector<40xf32> to vector<40x1xf32>
    %cst_3 = arith.constant 6.400000e+01 : f32
    %10 = vector.broadcast %cst_3 : f32 to vector<40x1xf32>
    %11 = arith.divf %9, %10 : vector<40x1xf32>
    %12 = vector.broadcast %4 : vector<40x1xf32> to vector<40x64xf32>
    %13 = arith.subf %0, %12 : vector<40x64xf32>
    %cst_4 = arith.constant 9.99999974E-6 : f32
    %14 = vector.broadcast %cst_4 : f32 to vector<40x1xf32>
    %15 = arith.addf %11, %14 : vector<40x1xf32>
    %16 = math.rsqrt %15 : vector<40x1xf32>
    %17 = vector.broadcast %16 : vector<40x1xf32> to vector<40x64xf32>
    %18 = arith.mulf %13, %17 : vector<40x64xf32>
    %c0_5 = arith.constant 0 : index
    %c0_6 = arith.constant 0 : index
    %19 = vector.load %arg6[%c0_5, %c0_6] : memref<1x64xf32, #tpu.memory_space<vmem>>, vector<1x64xf32>
    %20 = vector.broadcast %19 : vector<1x64xf32> to vector<40x64xf32>
    %21 = arith.mulf %18, %20 : vector<40x64xf32>
    %c0_7 = arith.constant 0 : index
    %c0_8 = arith.constant 0 : index
    %22 = vector.load %arg7[%c0_7, %c0_8] : memref<1x64xf32, #tpu.memory_space<vmem>>, vector<1x64xf32>
    %23 = vector.broadcast %22 : vector<1x64xf32> to vector<40x64xf32>
    %24 = arith.addf %21, %23 : vector<40x64xf32>
    %25 = arith.truncf %24 : vector<40x64xf32> to vector<40x64xbf16>
    %c0_9 = arith.constant 0 : index
    %c0_10 = arith.constant 0 : index
    %26 = vector.load %arg4[%c0_9, %c0_10] : memref<64x192xbf16, #tpu.memory_space<vmem>>, vector<64x192xbf16>
    %cst_11 = arith.constant dense<0.000000e+00> : vector<40x192xf32>
    %27 = tpu.matmul %25, %26, %cst_11 {dimension_numbers = #tpu.dot_dimension_numbers<[1], [0], [0], [1], [0, 0, 1, 1], [], []>} : vector<40x64xbf16>, vector<64x192xbf16>, vector<40x192xf32> -> vector<40x192xf32>
    %c0_12 = arith.constant 0 : index
    %c0_13 = arith.constant 0 : index
    %28 = vector.load %arg5[%c0_12, %c0_13] : memref<1x192xf32, #tpu.memory_space<vmem>>, vector<1x192xf32>
    %29 = vector.broadcast %28 : vector<1x192xf32> to vector<40x192xf32>
    %30 = arith.addf %27, %29 : vector<40x192xf32>
    %31 = arith.truncf %30 : vector<40x192xf32> to vector<40x192xbf16>
    %c0_14 = arith.constant 0 : index
    %c0_15 = arith.constant 0 : index
    %32 = vector.load %arg8[%c0_14, %c0_15] : memref<40x192xbf16, #tpu.memory_space<vmem>>, vector<40x192xbf16>
    tpu.vector_store %arg8[%c0_14, %c0_15], %31 {strides = array<i32>} : memref<40x192xbf16, #tpu.memory_space<vmem>>, vector<40x192xbf16>,
    return
  }
  func.func @transform_0(%arg0: i32, %arg1: i32, %arg2: i32) -> (i32, i32) {
    %c0_i32 = arith.constant 0 : i32
    return %arg0, %arg2 : i32, i32
  }
  func.func @transform_1(%arg0: i32, %arg1: i32, %arg2: i32) -> (i32, i32) {
    %c0_i32 = arith.constant 0 : i32
    return %arg2, %arg1 : i32, i32
  }
  func.func @transform_2(%arg0: i32, %arg1: i32, %arg2: i32) -> (i32, i32) {
    %c0_i32 = arith.constant 0 : i32
    %c0_i32_0 = arith.constant 0 : i32
    return %c0_i32, %arg1 : i32, i32
  }
  func.func @transform_3(%arg0: i32, %arg1: i32, %arg2: i32) -> (i32, i32) {
    %c0_i32 = arith.constant 0 : i32
    %c0_i32_0 = arith.constant 0 : i32
    return %c0_i32, %arg2 : i32, i32
  }
  func.func @transform_4(%arg0: i32, %arg1: i32, %arg2: i32) -> (i32, i32) {
    %c0_i32 = arith.constant 0 : i32
    %c0_i32_0 = arith.constant 0 : i32
    return %c0_i32, %arg2 : i32, i32
  }
  func.func @transform_5(%arg0: i32, %arg1: i32, %arg2: i32) -> (i32, i32) {
    %c0_i32 = arith.constant 0 : i32
    return %arg0, %arg1 : i32, i32
  }
}

module attributes {stable_mosaic.version = 11 : i64} {
  func.func @kernel(%arg0: i32, %arg1: i32, %arg2: i32, %arg3: memref<40x64xbf16, #tpu.memory_space<vmem>>, %arg4: memref<64x64xbf16, #tpu.memory_space<vmem>>, %arg5: memref<1x64xf32, #tpu.memory_space<vmem>>, %arg6: memref<40x64xf32, #tpu.memory_space<vmem>>, %arg7: memref<40x64xf32, #tpu.memory_space<vmem>>) attributes {dimension_semantics = [#tpu.dimension_semantics<parallel>, #tpu.dimension_semantics<parallel>, #tpu.dimension_semantics<arbitrary>], iteration_bounds = array<i64: 1, 1, 1>, scalar_prefetch = 0 : i64, scratch_operands = 0 : i64, tpu.core_type = #tpu.core_type<tc>, window_params = [{transform_indices = @transform_0, window_bounds = array<i64: 40, 64>}, {transform_indices = @transform_1, window_bounds = array<i64: 64, 64>}, {transform_indices = @transform_2, window_bounds = array<i64: 1, 64>}, {transform_indices = @transform_3, window_bounds = array<i64: 40, 64>}, {transform_indices = @transform_4, window_bounds = array<i64: 40, 64>}]} {
    %c0 = arith.constant 0 : index
    %c0_0 = arith.constant 0 : index
    %0 = vector.load %arg3[%c0, %c0_0] : memref<40x64xbf16, #tpu.memory_space<vmem>>, vector<40x64xbf16>
    %c0_1 = arith.constant 0 : index
    %c0_2 = arith.constant 0 : index
    %1 = vector.load %arg4[%c0_1, %c0_2] : memref<64x64xbf16, #tpu.memory_space<vmem>>, vector<64x64xbf16>
    %cst = arith.constant dense<0.000000e+00> : vector<40x64xf32>
    %2 = tpu.matmul %0, %1, %cst {dimension_numbers = #tpu.dot_dimension_numbers<[1], [0], [0], [1], [0, 0, 1, 1], [], []>} : vector<40x64xbf16>, vector<64x64xbf16>, vector<40x64xf32> -> vector<40x64xf32>
    %c0_3 = arith.constant 0 : index
    %c0_4 = arith.constant 0 : index
    %3 = vector.load %arg5[%c0_3, %c0_4] : memref<1x64xf32, #tpu.memory_space<vmem>>, vector<1x64xf32>
    %4 = vector.broadcast %3 : vector<1x64xf32> to vector<40x64xf32>
    %5 = arith.addf %2, %4 : vector<40x64xf32>
    %c0_5 = arith.constant 0 : index
    %c0_6 = arith.constant 0 : index
    %6 = vector.load %arg6[%c0_5, %c0_6] : memref<40x64xf32, #tpu.memory_space<vmem>>, vector<40x64xf32>
    %7 = arith.addf %5, %6 : vector<40x64xf32>
    %c0_7 = arith.constant 0 : index
    %c0_8 = arith.constant 0 : index
    %8 = vector.load %arg7[%c0_7, %c0_8] : memref<40x64xf32, #tpu.memory_space<vmem>>, vector<40x64xf32>
    tpu.vector_store %arg7[%c0_7, %c0_8], %7 {strides = array<i32>} : memref<40x64xf32, #tpu.memory_space<vmem>>, vector<40x64xf32>,
    return
  }
  func.func @transform_0(%arg0: i32, %arg1: i32, %arg2: i32) -> (i32, i32) {
    %c0_i32 = arith.constant 0 : i32
    return %arg0, %arg2 : i32, i32
  }
  func.func @transform_1(%arg0: i32, %arg1: i32, %arg2: i32) -> (i32, i32) {
    %c0_i32 = arith.constant 0 : i32
    return %arg2, %arg1 : i32, i32
  }
  func.func @transform_2(%arg0: i32, %arg1: i32, %arg2: i32) -> (i32, i32) {
    %c0_i32 = arith.constant 0 : i32
    %c0_i32_0 = arith.constant 0 : i32
    return %c0_i32, %arg1 : i32, i32
  }
  func.func @transform_3(%arg0: i32, %arg1: i32, %arg2: i32) -> (i32, i32) {
    %c0_i32 = arith.constant 0 : i32
    return %arg0, %arg1 : i32, i32
  }
  func.func @transform_4(%arg0: i32, %arg1: i32, %arg2: i32) -> (i32, i32) {
    %c0_i32 = arith.constant 0 : i32
    return %arg0, %arg1 : i32, i32
  }
}

module attributes {stable_mosaic.version = 11 : i64} {
  func.func @kernel(%arg0: i32, %arg1: memref<1x5x192xbf16, #tpu.memory_space<vmem>>, %arg2: memref<1x5x64xbf16, #tpu.memory_space<vmem>>) attributes {dimension_semantics = [#tpu.dimension_semantics<parallel>], iteration_bounds = array<i64: 8>, scalar_prefetch = 0 : i64, scratch_operands = 0 : i64, tpu.core_type = #tpu.core_type<tc>, window_params = [{transform_indices = @transform_0, window_bounds = array<i64: 1, 5, 192>}, {transform_indices = @transform_1, window_bounds = array<i64: 1, 5, 64>}]} {
    %c0 = arith.constant 0 : index
    %c0_0 = arith.constant 0 : index
    %c0_1 = arith.constant 0 : index
    %0 = vector.load %arg1[%c0, %c0_0, %c0_1] : memref<1x5x192xbf16, #tpu.memory_space<vmem>>, vector<1x5x32xbf16>
    %1 = vector.shape_cast %0 : vector<1x5x32xbf16> to vector<5x32xbf16>
    %2 = arith.extf %1 : vector<5x32xbf16> to vector<5x32xf32>
    %cst = arith.constant 0.176776692 : f32
    %3 = vector.broadcast %cst : f32 to vector<5x32xf32>
    %4 = arith.mulf %2, %3 : vector<5x32xf32>
    %c0_2 = arith.constant 0 : index
    %c0_3 = arith.constant 0 : index
    %c64 = arith.constant 64 : index
    %5 = vector.load %arg1[%c0_2, %c0_3, %c64] : memref<1x5x192xbf16, #tpu.memory_space<vmem>>, vector<1x5x32xbf16>
    %6 = vector.shape_cast %5 : vector<1x5x32xbf16> to vector<5x32xbf16>
    %c0_4 = arith.constant 0 : index
    %c0_5 = arith.constant 0 : index
    %c128 = arith.constant 128 : index
    %7 = vector.load %arg1[%c0_4, %c0_5, %c128] : memref<1x5x192xbf16, #tpu.memory_space<vmem>>, vector<1x5x32xbf16>
    %8 = vector.shape_cast %7 : vector<1x5x32xbf16> to vector<5x32xbf16>
    %9 = arith.truncf %4 : vector<5x32xf32> to vector<5x32xbf16>
    %cst_6 = arith.constant dense<0.000000e+00> : vector<5x5xf32>
    %10 = tpu.matmul %9, %6, %cst_6 {dimension_numbers = #tpu.dot_dimension_numbers<[1], [1], [0], [0], [0, 0, 1, 0], [], []>} : vector<5x32xbf16>, vector<5x32xbf16>, vector<5x5xf32> -> vector<5x5xf32>
    %cst_7 = arith.constant dense<0xFF800000> : vector<5xf32>
    %11 = vector.multi_reduction <maximumf>, %10, %cst_7 [1] : vector<5x5xf32> to vector<5xf32>
    %12 = vector.shape_cast %11 : vector<5xf32> to vector<5x1xf32>
    %13 = vector.broadcast %12 : vector<5x1xf32> to vector<5x5xf32>
    %14 = arith.subf %10, %13 : vector<5x5xf32>
    %15 = math.exp %14 : vector<5x5xf32>
    %cst_8 = arith.constant dense<0.000000e+00> : vector<5xf32>
    %16 = vector.multi_reduction <add>, %15, %cst_8 [1] : vector<5x5xf32> to vector<5xf32>
    %17 = vector.shape_cast %16 : vector<5xf32> to vector<5x1xf32>
    %18 = arith.truncf %15 : vector<5x5xf32> to vector<5x5xbf16>
    %cst_9 = arith.constant dense<0.000000e+00> : vector<5x32xf32>
    %19 = tpu.matmul %18, %8, %cst_9 {dimension_numbers = #tpu.dot_dimension_numbers<[1], [0], [0], [1], [0, 0, 1, 1], [], []>} : vector<5x5xbf16>, vector<5x32xbf16>, vector<5x32xf32> -> vector<5x32xf32>
    %20 = tpu.reciprocal %17 {approx = true} : vector<5x1xf32> -> vector<5x1xf32>
    %21 = vector.broadcast %20 : vector<5x1xf32> to vector<5x32xf32>
    %22 = arith.mulf %19, %21 : vector<5x32xf32>
    %23 = arith.truncf %22 : vector<5x32xf32> to vector<5x32xbf16>
    %c0_10 = arith.constant 0 : index
    %c0_11 = arith.constant 0 : index
    %c0_12 = arith.constant 0 : index
    %24 = vector.load %arg2[%c0_10, %c0_11, %c0_12] : memref<1x5x64xbf16, #tpu.memory_space<vmem>>, vector<1x5x32xbf16>
    %25 = vector.shape_cast %24 : vector<1x5x32xbf16> to vector<5x32xbf16>
    %26 = vector.shape_cast %23 : vector<5x32xbf16> to vector<1x5x32xbf16>
    tpu.vector_store %arg2[%c0_10, %c0_11, %c0_12], %26 {strides = array<i32>} : memref<1x5x64xbf16, #tpu.memory_space<vmem>>, vector<1x5x32xbf16>,
    %c0_13 = arith.constant 0 : index
    %c0_14 = arith.constant 0 : index
    %c32 = arith.constant 32 : index
    %27 = vector.load %arg1[%c0_13, %c0_14, %c32] : memref<1x5x192xbf16, #tpu.memory_space<vmem>>, vector<1x5x32xbf16>
    %28 = vector.shape_cast %27 : vector<1x5x32xbf16> to vector<5x32xbf16>
    %29 = arith.extf %28 : vector<5x32xbf16> to vector<5x32xf32>
    %cst_15 = arith.constant 0.176776692 : f32
    %30 = vector.broadcast %cst_15 : f32 to vector<5x32xf32>
    %31 = arith.mulf %29, %30 : vector<5x32xf32>
    %c0_16 = arith.constant 0 : index
    %c0_17 = arith.constant 0 : index
    %c96 = arith.constant 96 : index
    %32 = vector.load %arg1[%c0_16, %c0_17, %c96] : memref<1x5x192xbf16, #tpu.memory_space<vmem>>, vector<1x5x32xbf16>
    %33 = vector.shape_cast %32 : vector<1x5x32xbf16> to vector<5x32xbf16>
    %c0_18 = arith.constant 0 : index
    %c0_19 = arith.constant 0 : index
    %c160 = arith.constant 160 : index
    %34 = vector.load %arg1[%c0_18, %c0_19, %c160] : memref<1x5x192xbf16, #tpu.memory_space<vmem>>, vector<1x5x32xbf16>
    %35 = vector.shape_cast %34 : vector<1x5x32xbf16> to vector<5x32xbf16>
    %36 = arith.truncf %31 : vector<5x32xf32> to vector<5x32xbf16>
    %cst_20 = arith.constant dense<0.000000e+00> : vector<5x5xf32>
    %37 = tpu.matmul %36, %33, %cst_20 {dimension_numbers = #tpu.dot_dimension_numbers<[1], [1], [0], [0], [0, 0, 1, 0], [], []>} : vector<5x32xbf16>, vector<5x32xbf16>, vector<5x5xf32> -> vector<5x5xf32>
    %cst_21 = arith.constant dense<0xFF800000> : vector<5xf32>
    %38 = vector.multi_reduction <maximumf>, %37, %cst_21 [1] : vector<5x5xf32> to vector<5xf32>
    %39 = vector.shape_cast %38 : vector<5xf32> to vector<5x1xf32>
    %40 = vector.broadcast %39 : vector<5x1xf32> to vector<5x5xf32>
    %41 = arith.subf %37, %40 : vector<5x5xf32>
    %42 = math.exp %41 : vector<5x5xf32>
    %cst_22 = arith.constant dense<0.000000e+00> : vector<5xf32>
    %43 = vector.multi_reduction <add>, %42, %cst_22 [1] : vector<5x5xf32> to vector<5xf32>
    %44 = vector.shape_cast %43 : vector<5xf32> to vector<5x1xf32>
    %45 = arith.truncf %42 : vector<5x5xf32> to vector<5x5xbf16>
    %cst_23 = arith.constant dense<0.000000e+00> : vector<5x32xf32>
    %46 = tpu.matmul %45, %35, %cst_23 {dimension_numbers = #tpu.dot_dimension_numbers<[1], [0], [0], [1], [0, 0, 1, 1], [], []>} : vector<5x5xbf16>, vector<5x32xbf16>, vector<5x32xf32> -> vector<5x32xf32>
    %47 = tpu.reciprocal %44 {approx = true} : vector<5x1xf32> -> vector<5x1xf32>
    %48 = vector.broadcast %47 : vector<5x1xf32> to vector<5x32xf32>
    %49 = arith.mulf %46, %48 : vector<5x32xf32>
    %50 = arith.truncf %49 : vector<5x32xf32> to vector<5x32xbf16>
    %c0_24 = arith.constant 0 : index
    %c0_25 = arith.constant 0 : index
    %c32_26 = arith.constant 32 : index
    %51 = vector.load %arg2[%c0_24, %c0_25, %c32_26] : memref<1x5x64xbf16, #tpu.memory_space<vmem>>, vector<1x5x32xbf16>
    %52 = vector.shape_cast %51 : vector<1x5x32xbf16> to vector<5x32xbf16>
    %53 = vector.shape_cast %50 : vector<5x32xbf16> to vector<1x5x32xbf16>
    tpu.vector_store %arg2[%c0_24, %c0_25, %c32_26], %53 {strides = array<i32>} : memref<1x5x64xbf16, #tpu.memory_space<vmem>>, vector<1x5x32xbf16>,
    return
  }
  func.func @transform_0(%arg0: i32) -> (i32, i32, i32) {
    %c0_i32 = arith.constant 0 : i32
    %c0_i32_0 = arith.constant 0 : i32
    %c0_i32_1 = arith.constant 0 : i32
    return %arg0, %c0_i32, %c0_i32_0 : i32, i32, i32
  }
  func.func @transform_1(%arg0: i32) -> (i32, i32, i32) {
    %c0_i32 = arith.constant 0 : i32
    %c0_i32_0 = arith.constant 0 : i32
    %c0_i32_1 = arith.constant 0 : i32
    return %arg0, %c0_i32, %c0_i32_0 : i32, i32, i32
  }
}

module attributes {stable_mosaic.version = 11 : i64} {
  func.func @kernel(%arg0: i32, %arg1: i32, %arg2: i32, %arg3: memref<40x64xf32, #tpu.memory_space<vmem>>, %arg4: memref<64x128xbf16, #tpu.memory_space<vmem>>, %arg5: memref<1x128xf32, #tpu.memory_space<vmem>>, %arg6: memref<1x64xf32, #tpu.memory_space<vmem>>, %arg7: memref<1x64xf32, #tpu.memory_space<vmem>>, %arg8: memref<40x128xbf16, #tpu.memory_space<vmem>>, %arg9: memref<40x64xbf16, #tpu.memory_space<vmem>>) attributes {dimension_semantics = [#tpu.dimension_semantics<parallel>, #tpu.dimension_semantics<arbitrary>, #tpu.dimension_semantics<arbitrary>], iteration_bounds = array<i64: 1, 2, 1>, scalar_prefetch = 0 : i64, scratch_operands = 1 : i64, tpu.core_type = #tpu.core_type<tc>, window_params = [{transform_indices = @transform_0, window_bounds = array<i64: 40, 64>}, {transform_indices = @transform_1, window_bounds = array<i64: 64, 128>}, {transform_indices = @transform_2, window_bounds = array<i64: 1, 128>}, {transform_indices = @transform_3, window_bounds = array<i64: 1, 64>}, {transform_indices = @transform_4, window_bounds = array<i64: 1, 64>}, {transform_indices = @transform_5, window_bounds = array<i64: 40, 128>}]} {
    %c0_i32 = arith.constant 0 : i32
    %0 = arith.cmpi eq, %arg1, %c0_i32 : i32
    %1 = arith.extui %0 : i1 to i32
    %c0_i32_0 = arith.constant 0 : i32
    %2 = arith.cmpi ne, %1, %c0_i32_0 : i32
    scf.if %2 {
      %c0_10 = arith.constant 0 : index
      %c0_11 = arith.constant 0 : index
      %19 = vector.load %arg3[%c0_10, %c0_11] : memref<40x64xf32, #tpu.memory_space<vmem>>, vector<40x64xf32>
      %cst_12 = arith.constant dense<0.000000e+00> : vector<40xf32>
      %20 = vector.multi_reduction <add>, %19, %cst_12 [1] : vector<40x64xf32> to vector<40xf32>
      %21 = vector.shape_cast %20 : vector<40xf32> to vector<40x1xf32>
      %cst_13 = arith.constant 6.400000e+01 : f32
      %22 = vector.broadcast %cst_13 : f32 to vector<40x1xf32>
      %23 = arith.divf %21, %22 : vector<40x1xf32>
      %24 = vector.broadcast %23 : vector<40x1xf32> to vector<40x64xf32>
      %25 = arith.subf %19, %24 : vector<40x64xf32>
      %26 = arith.mulf %25, %25 : vector<40x64xf32>
      %cst_14 = arith.constant dense<0.000000e+00> : vector<40xf32>
      %27 = vector.multi_reduction <add>, %26, %cst_14 [1] : vector<40x64xf32> to vector<40xf32>
      %28 = vector.shape_cast %27 : vector<40xf32> to vector<40x1xf32>
      %cst_15 = arith.constant 6.400000e+01 : f32
      %29 = vector.broadcast %cst_15 : f32 to vector<40x1xf32>
      %30 = arith.divf %28, %29 : vector<40x1xf32>
      %31 = vector.broadcast %23 : vector<40x1xf32> to vector<40x64xf32>
      %32 = arith.subf %19, %31 : vector<40x64xf32>
      %cst_16 = arith.constant 9.99999974E-6 : f32
      %33 = vector.broadcast %cst_16 : f32 to vector<40x1xf32>
      %34 = arith.addf %30, %33 : vector<40x1xf32>
      %35 = math.rsqrt %34 : vector<40x1xf32>
      %36 = vector.broadcast %35 : vector<40x1xf32> to vector<40x64xf32>
      %37 = arith.mulf %32, %36 : vector<40x64xf32>
      %c0_17 = arith.constant 0 : index
      %c0_18 = arith.constant 0 : index
      %38 = vector.load %arg6[%c0_17, %c0_18] : memref<1x64xf32, #tpu.memory_space<vmem>>, vector<1x64xf32>
      %39 = vector.broadcast %38 : vector<1x64xf32> to vector<40x64xf32>
      %40 = arith.mulf %37, %39 : vector<40x64xf32>
      %c0_19 = arith.constant 0 : index
      %c0_20 = arith.constant 0 : index
      %41 = vector.load %arg7[%c0_19, %c0_20] : memref<1x64xf32, #tpu.memory_space<vmem>>, vector<1x64xf32>
      %42 = vector.broadcast %41 : vector<1x64xf32> to vector<40x64xf32>
      %43 = arith.addf %40, %42 : vector<40x64xf32>
      %44 = arith.truncf %43 : vector<40x64xf32> to vector<40x64xbf16>
      %c0_21 = arith.constant 0 : index
      %c0_22 = arith.constant 0 : index
      %45 = vector.load %arg9[%c0_21, %c0_22] : memref<40x64xbf16, #tpu.memory_space<vmem>>, vector<40x64xbf16>
      tpu.vector_store %arg9[%c0_21, %c0_22], %44 {strides = array<i32>} : memref<40x64xbf16, #tpu.memory_space<vmem>>, vector<40x64xbf16>,
    } else {
    }
    %c0 = arith.constant 0 : index
    %c0_1 = arith.constant 0 : index
    %3 = vector.load %arg9[%c0, %c0_1] : memref<40x64xbf16, #tpu.memory_space<vmem>>, vector<40x64xbf16>
    %c0_2 = arith.constant 0 : index
    %c0_3 = arith.constant 0 : index
    %4 = vector.load %arg4[%c0_2, %c0_3] : memref<64x128xbf16, #tpu.memory_space<vmem>>, vector<64x128xbf16>
    %cst = arith.constant dense<0.000000e+00> : vector<40x128xf32>
    %5 = tpu.matmul %3, %4, %cst {dimension_numbers = #tpu.dot_dimension_numbers<[1], [0], [0], [1], [0, 0, 1, 1], [], []>} : vector<40x64xbf16>, vector<64x128xbf16>, vector<40x128xf32> -> vector<40x128xf32>
    %c0_4 = arith.constant 0 : index
    %c0_5 = arith.constant 0 : index
    %6 = vector.load %arg5[%c0_4, %c0_5] : memref<1x128xf32, #tpu.memory_space<vmem>>, vector<1x128xf32>
    %7 = vector.broadcast %6 : vector<1x128xf32> to vector<40x128xf32>
    %8 = arith.addf %5, %7 : vector<40x128xf32>
    %cst_6 = arith.constant 1.702000e+00 : f32
    %9 = vector.broadcast %cst_6 : f32 to vector<40x128xf32>
    %10 = arith.mulf %9, %8 : vector<40x128xf32>
    %11 = arith.negf %10 : vector<40x128xf32>
    %12 = math.exp %11 : vector<40x128xf32>
    %cst_7 = arith.constant 1.000000e+00 : f32
    %13 = vector.broadcast %cst_7 : f32 to vector<40x128xf32>
    %14 = arith.addf %13, %12 : vector<40x128xf32>
    %15 = arith.divf %13, %14 : vector<40x128xf32>
    %16 = arith.mulf %8, %15 : vector<40x128xf32>
    %17 = arith.truncf %16 : vector<40x128xf32> to vector<40x128xbf16>
    %c0_8 = arith.constant 0 : index
    %c0_9 = arith.constant 0 : index
    %18 = vector.load %arg8[%c0_8, %c0_9] : memref<40x128xbf16, #tpu.memory_space<vmem>>, vector<40x128xbf16>
    tpu.vector_store %arg8[%c0_8, %c0_9], %17 {strides = array<i32>} : memref<40x128xbf16, #tpu.memory_space<vmem>>, vector<40x128xbf16>,
    return
  }
  func.func @transform_0(%arg0: i32, %arg1: i32, %arg2: i32) -> (i32, i32) {
    %c0_i32 = arith.constant 0 : i32
    return %arg0, %arg2 : i32, i32
  }
  func.func @transform_1(%arg0: i32, %arg1: i32, %arg2: i32) -> (i32, i32) {
    %c0_i32 = arith.constant 0 : i32
    return %arg2, %arg1 : i32, i32
  }
  func.func @transform_2(%arg0: i32, %arg1: i32, %arg2: i32) -> (i32, i32) {
    %c0_i32 = arith.constant 0 : i32
    %c0_i32_0 = arith.constant 0 : i32
    return %c0_i32, %arg1 : i32, i32
  }
  func.func @transform_3(%arg0: i32, %arg1: i32, %arg2: i32) -> (i32, i32) {
    %c0_i32 = arith.constant 0 : i32
    %c0_i32_0 = arith.constant 0 : i32
    return %c0_i32, %arg2 : i32, i32
  }
  func.func @transform_4(%arg0: i32, %arg1: i32, %arg2: i32) -> (i32, i32) {
    %c0_i32 = arith.constant 0 : i32
    %c0_i32_0 = arith.constant 0 : i32
    return %c0_i32, %arg2 : i32, i32
  }
  func.func @transform_5(%arg0: i32, %arg1: i32, %arg2: i32) -> (i32, i32) {
    %c0_i32 = arith.constant 0 : i32
    return %arg0, %arg1 : i32, i32
  }
}

module attributes {stable_mosaic.version = 11 : i64} {
  func.func @kernel(%arg0: i32, %arg1: i32, %arg2: i32, %arg3: memref<40x256xbf16, #tpu.memory_space<vmem>>, %arg4: memref<256x64xbf16, #tpu.memory_space<vmem>>, %arg5: memref<1x64xf32, #tpu.memory_space<vmem>>, %arg6: memref<40x64xf32, #tpu.memory_space<vmem>>, %arg7: memref<40x64xf32, #tpu.memory_space<vmem>>) attributes {dimension_semantics = [#tpu.dimension_semantics<parallel>, #tpu.dimension_semantics<parallel>, #tpu.dimension_semantics<arbitrary>], iteration_bounds = array<i64: 1, 1, 1>, scalar_prefetch = 0 : i64, scratch_operands = 0 : i64, tpu.core_type = #tpu.core_type<tc>, window_params = [{transform_indices = @transform_0, window_bounds = array<i64: 40, 256>}, {transform_indices = @transform_1, window_bounds = array<i64: 256, 64>}, {transform_indices = @transform_2, window_bounds = array<i64: 1, 64>}, {transform_indices = @transform_3, window_bounds = array<i64: 40, 64>}, {transform_indices = @transform_4, window_bounds = array<i64: 40, 64>}]} {
    %c0 = arith.constant 0 : index
    %c0_0 = arith.constant 0 : index
    %0 = vector.load %arg3[%c0, %c0_0] : memref<40x256xbf16, #tpu.memory_space<vmem>>, vector<40x256xbf16>
    %c0_1 = arith.constant 0 : index
    %c0_2 = arith.constant 0 : index
    %1 = vector.load %arg4[%c0_1, %c0_2] : memref<256x64xbf16, #tpu.memory_space<vmem>>, vector<256x64xbf16>
    %cst = arith.constant dense<0.000000e+00> : vector<40x64xf32>
    %2 = tpu.matmul %0, %1, %cst {dimension_numbers = #tpu.dot_dimension_numbers<[1], [0], [0], [1], [0, 0, 1, 1], [], []>} : vector<40x256xbf16>, vector<256x64xbf16>, vector<40x64xf32> -> vector<40x64xf32>
    %c0_3 = arith.constant 0 : index
    %c0_4 = arith.constant 0 : index
    %3 = vector.load %arg5[%c0_3, %c0_4] : memref<1x64xf32, #tpu.memory_space<vmem>>, vector<1x64xf32>
    %4 = vector.broadcast %3 : vector<1x64xf32> to vector<40x64xf32>
    %5 = arith.addf %2, %4 : vector<40x64xf32>
    %c0_5 = arith.constant 0 : index
    %c0_6 = arith.constant 0 : index
    %6 = vector.load %arg6[%c0_5, %c0_6] : memref<40x64xf32, #tpu.memory_space<vmem>>, vector<40x64xf32>
    %7 = arith.addf %5, %6 : vector<40x64xf32>
    %c0_7 = arith.constant 0 : index
    %c0_8 = arith.constant 0 : index
    %8 = vector.load %arg7[%c0_7, %c0_8] : memref<40x64xf32, #tpu.memory_space<vmem>>, vector<40x64xf32>
    tpu.vector_store %arg7[%c0_7, %c0_8], %7 {strides = array<i32>} : memref<40x64xf32, #tpu.memory_space<vmem>>, vector<40x64xf32>,
    return
  }
  func.func @transform_0(%arg0: i32, %arg1: i32, %arg2: i32) -> (i32, i32) {
    %c0_i32 = arith.constant 0 : i32
    return %arg0, %arg2 : i32, i32
  }
  func.func @transform_1(%arg0: i32, %arg1: i32, %arg2: i32) -> (i32, i32) {
    %c0_i32 = arith.constant 0 : i32
    return %arg2, %arg1 : i32, i32
  }
  func.func @transform_2(%arg0: i32, %arg1: i32, %arg2: i32) -> (i32, i32) {
    %c0_i32 = arith.constant 0 : i32
    %c0_i32_0 = arith.constant 0 : i32
    return %c0_i32, %arg1 : i32, i32
  }
  func.func @transform_3(%arg0: i32, %arg1: i32, %arg2: i32) -> (i32, i32) {
    %c0_i32 = arith.constant 0 : i32
    return %arg0, %arg1 : i32, i32
  }
  func.func @transform_4(%arg0: i32, %arg1: i32, %arg2: i32) -> (i32, i32) {
    %c0_i32 = arith.constant 0 : i32
    return %arg0, %arg1 : i32, i32
  }
}

module attributes {stable_mosaic.version = 11 : i64} {
  func.func @kernel(%arg0: i32, %arg1: i32, %arg2: i32, %arg3: memref<40x64xf32, #tpu.memory_space<vmem>>, %arg4: memref<64x64xbf16, #tpu.memory_space<vmem>>, %arg5: memref<1x64xf32, #tpu.memory_space<vmem>>, %arg6: memref<1x64xf32, #tpu.memory_space<vmem>>, %arg7: memref<1x64xf32, #tpu.memory_space<vmem>>, %arg8: memref<40x64xf32, #tpu.memory_space<vmem>>) attributes {dimension_semantics = [#tpu.dimension_semantics<parallel>, #tpu.dimension_semantics<parallel>, #tpu.dimension_semantics<arbitrary>], iteration_bounds = array<i64: 1, 1, 1>, scalar_prefetch = 0 : i64, scratch_operands = 0 : i64, tpu.core_type = #tpu.core_type<tc>, window_params = [{transform_indices = @transform_0, window_bounds = array<i64: 40, 64>}, {transform_indices = @transform_1, window_bounds = array<i64: 64, 64>}, {transform_indices = @transform_2, window_bounds = array<i64: 1, 64>}, {transform_indices = @transform_3, window_bounds = array<i64: 1, 64>}, {transform_indices = @transform_4, window_bounds = array<i64: 1, 64>}, {transform_indices = @transform_5, window_bounds = array<i64: 40, 64>}]} {
    %c0 = arith.constant 0 : index
    %c0_0 = arith.constant 0 : index
    %0 = vector.load %arg3[%c0, %c0_0] : memref<40x64xf32, #tpu.memory_space<vmem>>, vector<40x64xf32>
    %cst = arith.constant dense<0.000000e+00> : vector<40xf32>
    %1 = vector.multi_reduction <add>, %0, %cst [1] : vector<40x64xf32> to vector<40xf32>
    %2 = vector.shape_cast %1 : vector<40xf32> to vector<40x1xf32>
    %cst_1 = arith.constant 6.400000e+01 : f32
    %3 = vector.broadcast %cst_1 : f32 to vector<40x1xf32>
    %4 = arith.divf %2, %3 : vector<40x1xf32>
    %5 = vector.broadcast %4 : vector<40x1xf32> to vector<40x64xf32>
    %6 = arith.subf %0, %5 : vector<40x64xf32>
    %7 = arith.mulf %6, %6 : vector<40x64xf32>
    %cst_2 = arith.constant dense<0.000000e+00> : vector<40xf32>
    %8 = vector.multi_reduction <add>, %7, %cst_2 [1] : vector<40x64xf32> to vector<40xf32>
    %9 = vector.shape_cast %8 : vector<40xf32> to vector<40x1xf32>
    %cst_3 = arith.constant 6.400000e+01 : f32
    %10 = vector.broadcast %cst_3 : f32 to vector<40x1xf32>
    %11 = arith.divf %9, %10 : vector<40x1xf32>
    %12 = vector.broadcast %4 : vector<40x1xf32> to vector<40x64xf32>
    %13 = arith.subf %0, %12 : vector<40x64xf32>
    %cst_4 = arith.constant 9.99999974E-6 : f32
    %14 = vector.broadcast %cst_4 : f32 to vector<40x1xf32>
    %15 = arith.addf %11, %14 : vector<40x1xf32>
    %16 = math.rsqrt %15 : vector<40x1xf32>
    %17 = vector.broadcast %16 : vector<40x1xf32> to vector<40x64xf32>
    %18 = arith.mulf %13, %17 : vector<40x64xf32>
    %c0_5 = arith.constant 0 : index
    %c0_6 = arith.constant 0 : index
    %19 = vector.load %arg6[%c0_5, %c0_6] : memref<1x64xf32, #tpu.memory_space<vmem>>, vector<1x64xf32>
    %20 = vector.broadcast %19 : vector<1x64xf32> to vector<40x64xf32>
    %21 = arith.mulf %18, %20 : vector<40x64xf32>
    %c0_7 = arith.constant 0 : index
    %c0_8 = arith.constant 0 : index
    %22 = vector.load %arg7[%c0_7, %c0_8] : memref<1x64xf32, #tpu.memory_space<vmem>>, vector<1x64xf32>
    %23 = vector.broadcast %22 : vector<1x64xf32> to vector<40x64xf32>
    %24 = arith.addf %21, %23 : vector<40x64xf32>
    %25 = arith.truncf %24 : vector<40x64xf32> to vector<40x64xbf16>
    %c0_9 = arith.constant 0 : index
    %c0_10 = arith.constant 0 : index
    %26 = vector.load %arg4[%c0_9, %c0_10] : memref<64x64xbf16, #tpu.memory_space<vmem>>, vector<64x64xbf16>
    %cst_11 = arith.constant dense<0.000000e+00> : vector<40x64xf32>
    %27 = tpu.matmul %25, %26, %cst_11 {dimension_numbers = #tpu.dot_dimension_numbers<[1], [0], [0], [1], [0, 0, 1, 1], [], []>} : vector<40x64xbf16>, vector<64x64xbf16>, vector<40x64xf32> -> vector<40x64xf32>
    %c0_12 = arith.constant 0 : index
    %c0_13 = arith.constant 0 : index
    %28 = vector.load %arg5[%c0_12, %c0_13] : memref<1x64xf32, #tpu.memory_space<vmem>>, vector<1x64xf32>
    %29 = vector.broadcast %28 : vector<1x64xf32> to vector<40x64xf32>
    %30 = arith.addf %27, %29 : vector<40x64xf32>
    %c0_14 = arith.constant 0 : index
    %c0_15 = arith.constant 0 : index
    %31 = vector.load %arg8[%c0_14, %c0_15] : memref<40x64xf32, #tpu.memory_space<vmem>>, vector<40x64xf32>
    tpu.vector_store %arg8[%c0_14, %c0_15], %30 {strides = array<i32>} : memref<40x64xf32, #tpu.memory_space<vmem>>, vector<40x64xf32>,
    return
  }
  func.func @transform_0(%arg0: i32, %arg1: i32, %arg2: i32) -> (i32, i32) {
    %c0_i32 = arith.constant 0 : i32
    return %arg0, %arg2 : i32, i32
  }
  func.func @transform_1(%arg0: i32, %arg1: i32, %arg2: i32) -> (i32, i32) {
    %c0_i32 = arith.constant 0 : i32
    return %arg2, %arg1 : i32, i32
  }
  func.func @transform_2(%arg0: i32, %arg1: i32, %arg2: i32) -> (i32, i32) {
    %c0_i32 = arith.constant 0 : i32
    %c0_i32_0 = arith.constant 0 : i32
    return %c0_i32, %arg1 : i32, i32
  }
  func.func @transform_3(%arg0: i32, %arg1: i32, %arg2: i32) -> (i32, i32) {
    %c0_i32 = arith.constant 0 : i32
    %c0_i32_0 = arith.constant 0 : i32
    return %c0_i32, %arg2 : i32, i32
  }
  func.func @transform_4(%arg0: i32, %arg1: i32, %arg2: i32) -> (i32, i32) {
    %c0_i32 = arith.constant 0 : i32
    %c0_i32_0 = arith.constant 0 : i32
    return %c0_i32, %arg2 : i32, i32
  }
  func.func @transform_5(%arg0: i32, %arg1: i32, %arg2: i32) -> (i32, i32) {
    %c0_i32 = arith.constant 0 : i32
    return %arg0, %arg1 : i32, i32
  }
}

module attributes {stable_mosaic.version = 11 : i64} {
  func.func @kernel(%arg0: i32, %arg1: i32, %arg2: memref<1x4x4x192xf32, #tpu.memory_space<vmem>>, %arg3: memref<3x192x64xbf16, #tpu.memory_space<vmem>>, %arg4: memref<1x64xf32, #tpu.memory_space<vmem>>, %arg5: memref<1x4x4x64xf32, #tpu.memory_space<vmem>>) attributes {dimension_semantics = [#tpu.dimension_semantics<parallel>, #tpu.dimension_semantics<parallel>], iteration_bounds = array<i64: 2, 1>, scalar_prefetch = 0 : i64, scratch_operands = 0 : i64, tpu.core_type = #tpu.core_type<tc>, window_params = [{transform_indices = @transform_0, window_bounds = array<i64: 1, 4, 4, 192>}, {pipeline_mode = #tpu.pipeline_mode<synchronous>, transform_indices = @transform_1, window_bounds = array<i64: 3, 192, 64>}, {pipeline_mode = #tpu.pipeline_mode<synchronous>, transform_indices = @transform_2, window_bounds = array<i64: 1, 64>}, {transform_indices = @transform_3, window_bounds = array<i64: 1, 4, 4, 64>}]} {
    %c0 = arith.constant 0 : index
    %c0_0 = arith.constant 0 : index
    %c0_1 = arith.constant 0 : index
    %0 = vector.load %arg3[%c0, %c0_0, %c0_1] : memref<3x192x64xbf16, #tpu.memory_space<vmem>>, vector<1x192x64xbf16>
    %1 = vector.shape_cast %0 : vector<1x192x64xbf16> to vector<192x64xbf16>
    %c1 = arith.constant 1 : index
    %c0_2 = arith.constant 0 : index
    %c0_3 = arith.constant 0 : index
    %2 = vector.load %arg3[%c1, %c0_2, %c0_3] : memref<3x192x64xbf16, #tpu.memory_space<vmem>>, vector<1x192x64xbf16>
    %3 = vector.shape_cast %2 : vector<1x192x64xbf16> to vector<192x64xbf16>
    %c2 = arith.constant 2 : index
    %c0_4 = arith.constant 0 : index
    %c0_5 = arith.constant 0 : index
    %4 = vector.load %arg3[%c2, %c0_4, %c0_5] : memref<3x192x64xbf16, #tpu.memory_space<vmem>>, vector<1x192x64xbf16>
    %5 = vector.shape_cast %4 : vector<1x192x64xbf16> to vector<192x64xbf16>
    %c0_6 = arith.constant 0 : index
    %c0_7 = arith.constant 0 : index
    %6 = vector.load %arg4[%c0_6, %c0_7] : memref<1x64xf32, #tpu.memory_space<vmem>>, vector<1x64xf32>
    %c0_8 = arith.constant 0 : index
    %c0_9 = arith.constant 0 : index
    %c0_10 = arith.constant 0 : index
    %c0_11 = arith.constant 0 : index
    %7 = vector.load %arg2[%c0_8, %c0_9, %c0_10, %c0_11] : memref<1x4x4x192xf32, #tpu.memory_space<vmem>>, vector<1x1x4x192xf32>
    %8 = vector.shape_cast %7 : vector<1x1x4x192xf32> to vector<4x192xf32>
    %9 = arith.truncf %8 : vector<4x192xf32> to vector<4x192xbf16>
    %cst = arith.constant dense<0.000000e+00> : vector<4x64xf32>
    %10 = tpu.matmul %9, %3, %cst {dimension_numbers = #tpu.dot_dimension_numbers<[1], [0], [0], [1], [0, 0, 1, 1], [], []>} : vector<4x192xbf16>, vector<192x64xbf16>, vector<4x64xf32> -> vector<4x64xf32>
    %c0_12 = arith.constant 0 : index
    %c1_13 = arith.constant 1 : index
    %c0_14 = arith.constant 0 : index
    %c0_15 = arith.constant 0 : index
    %11 = vector.load %arg2[%c0_12, %c1_13, %c0_14, %c0_15] : memref<1x4x4x192xf32, #tpu.memory_space<vmem>>, vector<1x1x4x192xf32>
    %12 = vector.shape_cast %11 : vector<1x1x4x192xf32> to vector<4x192xf32>
    %13 = arith.truncf %12 : vector<4x192xf32> to vector<4x192xbf16>
    %cst_16 = arith.constant dense<0.000000e+00> : vector<4x64xf32>
    %14 = tpu.matmul %13, %5, %cst_16 {dimension_numbers = #tpu.dot_dimension_numbers<[1], [0], [0], [1], [0, 0, 1, 1], [], []>} : vector<4x192xbf16>, vector<192x64xbf16>, vector<4x64xf32> -> vector<4x64xf32>
    %15 = arith.addf %10, %14 : vector<4x64xf32>
    %16 = vector.broadcast %6 : vector<1x64xf32> to vector<4x64xf32>
    %17 = arith.addf %15, %16 : vector<4x64xf32>
    %c0_17 = arith.constant 0 : index
    %c0_18 = arith.constant 0 : index
    %c0_19 = arith.constant 0 : index
    %c0_20 = arith.constant 0 : index
    %18 = vector.load %arg5[%c0_17, %c0_18, %c0_19, %c0_20] : memref<1x4x4x64xf32, #tpu.memory_space<vmem>>, vector<1x1x4x64xf32>
    %19 = vector.shape_cast %18 : vector<1x1x4x64xf32> to vector<4x64xf32>
    %20 = vector.shape_cast %17 : vector<4x64xf32> to vector<1x1x4x64xf32>
    tpu.vector_store %arg5[%c0_17, %c0_18, %c0_19, %c0_20], %20 {strides = array<i32>} : memref<1x4x4x64xf32, #tpu.memory_space<vmem>>, vector<1x1x4x64xf32>,
    %c0_21 = arith.constant 0 : index
    %c1_22 = arith.constant 1 : index
    %c0_23 = arith.constant 0 : index
    %c0_24 = arith.constant 0 : index
    %21 = vector.load %arg2[%c0_21, %c1_22, %c0_23, %c0_24] : memref<1x4x4x192xf32, #tpu.memory_space<vmem>>, vector<1x1x4x192xf32>
    %22 = vector.shape_cast %21 : vector<1x1x4x192xf32> to vector<4x192xf32>
    %23 = arith.truncf %22 : vector<4x192xf32> to vector<4x192xbf16>
    %cst_25 = arith.constant dense<0.000000e+00> : vector<4x64xf32>
    %24 = tpu.matmul %23, %3, %cst_25 {dimension_numbers = #tpu.dot_dimension_numbers<[1], [0], [0], [1], [0, 0, 1, 1], [], []>} : vector<4x192xbf16>, vector<192x64xbf16>, vector<4x64xf32> -> vector<4x64xf32>
    %c0_26 = arith.constant 0 : index
    %c0_27 = arith.constant 0 : index
    %c0_28 = arith.constant 0 : index
    %c0_29 = arith.constant 0 : index
    %25 = vector.load %arg2[%c0_26, %c0_27, %c0_28, %c0_29] : memref<1x4x4x192xf32, #tpu.memory_space<vmem>>, vector<1x1x4x192xf32>
    %26 = vector.shape_cast %25 : vector<1x1x4x192xf32> to vector<4x192xf32>
    %27 = arith.truncf %26 : vector<4x192xf32> to vector<4x192xbf16>
    %cst_30 = arith.constant dense<0.000000e+00> : vector<4x64xf32>
    %28 = tpu.matmul %27, %1, %cst_30 {dimension_numbers = #tpu.dot_dimension_numbers<[1], [0], [0], [1], [0, 0, 1, 1], [], []>} : vector<4x192xbf16>, vector<192x64xbf16>, vector<4x64xf32> -> vector<4x64xf32>
    %29 = arith.addf %24, %28 : vector<4x64xf32>
    %c0_31 = arith.constant 0 : index
    %c2_32 = arith.constant 2 : index
    %c0_33 = arith.constant 0 : index
    %c0_34 = arith.constant 0 : index
    %30 = vector.load %arg2[%c0_31, %c2_32, %c0_33, %c0_34] : memref<1x4x4x192xf32, #tpu.memory_space<vmem>>, vector<1x1x4x192xf32>
    %31 = vector.shape_cast %30 : vector<1x1x4x192xf32> to vector<4x192xf32>
    %32 = arith.truncf %31 : vector<4x192xf32> to vector<4x192xbf16>
    %cst_35 = arith.constant dense<0.000000e+00> : vector<4x64xf32>
    %33 = tpu.matmul %32, %5, %cst_35 {dimension_numbers = #tpu.dot_dimension_numbers<[1], [0], [0], [1], [0, 0, 1, 1], [], []>} : vector<4x192xbf16>, vector<192x64xbf16>, vector<4x64xf32> -> vector<4x64xf32>
    %34 = arith.addf %29, %33 : vector<4x64xf32>
    %35 = vector.broadcast %6 : vector<1x64xf32> to vector<4x64xf32>
    %36 = arith.addf %34, %35 : vector<4x64xf32>
    %c0_36 = arith.constant 0 : index
    %c1_37 = arith.constant 1 : index
    %c0_38 = arith.constant 0 : index
    %c0_39 = arith.constant 0 : index
    %37 = vector.load %arg5[%c0_36, %c1_37, %c0_38, %c0_39] : memref<1x4x4x64xf32, #tpu.memory_space<vmem>>, vector<1x1x4x64xf32>
    %38 = vector.shape_cast %37 : vector<1x1x4x64xf32> to vector<4x64xf32>
    %39 = vector.shape_cast %36 : vector<4x64xf32> to vector<1x1x4x64xf32>
    tpu.vector_store %arg5[%c0_36, %c1_37, %c0_38, %c0_39], %39 {strides = array<i32>} : memref<1x4x4x64xf32, #tpu.memory_space<vmem>>, vector<1x1x4x64xf32>,
    %c0_40 = arith.constant 0 : index
    %c2_41 = arith.constant 2 : index
    %c0_42 = arith.constant 0 : index
    %c0_43 = arith.constant 0 : index
    %40 = vector.load %arg2[%c0_40, %c2_41, %c0_42, %c0_43] : memref<1x4x4x192xf32, #tpu.memory_space<vmem>>, vector<1x1x4x192xf32>
    %41 = vector.shape_cast %40 : vector<1x1x4x192xf32> to vector<4x192xf32>
    %42 = arith.truncf %41 : vector<4x192xf32> to vector<4x192xbf16>
    %cst_44 = arith.constant dense<0.000000e+00> : vector<4x64xf32>
    %43 = tpu.matmul %42, %3, %cst_44 {dimension_numbers = #tpu.dot_dimension_numbers<[1], [0], [0], [1], [0, 0, 1, 1], [], []>} : vector<4x192xbf16>, vector<192x64xbf16>, vector<4x64xf32> -> vector<4x64xf32>
    %c0_45 = arith.constant 0 : index
    %c1_46 = arith.constant 1 : index
    %c0_47 = arith.constant 0 : index
    %c0_48 = arith.constant 0 : index
    %44 = vector.load %arg2[%c0_45, %c1_46, %c0_47, %c0_48] : memref<1x4x4x192xf32, #tpu.memory_space<vmem>>, vector<1x1x4x192xf32>
    %45 = vector.shape_cast %44 : vector<1x1x4x192xf32> to vector<4x192xf32>
    %46 = arith.truncf %45 : vector<4x192xf32> to vector<4x192xbf16>
    %cst_49 = arith.constant dense<0.000000e+00> : vector<4x64xf32>
    %47 = tpu.matmul %46, %1, %cst_49 {dimension_numbers = #tpu.dot_dimension_numbers<[1], [0], [0], [1], [0, 0, 1, 1], [], []>} : vector<4x192xbf16>, vector<192x64xbf16>, vector<4x64xf32> -> vector<4x64xf32>
    %48 = arith.addf %43, %47 : vector<4x64xf32>
    %c0_50 = arith.constant 0 : index
    %c3 = arith.constant 3 : index
    %c0_51 = arith.constant 0 : index
    %c0_52 = arith.constant 0 : index
    %49 = vector.load %arg2[%c0_50, %c3, %c0_51, %c0_52] : memref<1x4x4x192xf32, #tpu.memory_space<vmem>>, vector<1x1x4x192xf32>
    %50 = vector.shape_cast %49 : vector<1x1x4x192xf32> to vector<4x192xf32>
    %51 = arith.truncf %50 : vector<4x192xf32> to vector<4x192xbf16>
    %cst_53 = arith.constant dense<0.000000e+00> : vector<4x64xf32>
    %52 = tpu.matmul %51, %5, %cst_53 {dimension_numbers = #tpu.dot_dimension_numbers<[1], [0], [0], [1], [0, 0, 1, 1], [], []>} : vector<4x192xbf16>, vector<192x64xbf16>, vector<4x64xf32> -> vector<4x64xf32>
    %53 = arith.addf %48, %52 : vector<4x64xf32>
    %54 = vector.broadcast %6 : vector<1x64xf32> to vector<4x64xf32>
    %55 = arith.addf %53, %54 : vector<4x64xf32>
    %c0_54 = arith.constant 0 : index
    %c2_55 = arith.constant 2 : index
    %c0_56 = arith.constant 0 : index
    %c0_57 = arith.constant 0 : index
    %56 = vector.load %arg5[%c0_54, %c2_55, %c0_56, %c0_57] : memref<1x4x4x64xf32, #tpu.memory_space<vmem>>, vector<1x1x4x64xf32>
    %57 = vector.shape_cast %56 : vector<1x1x4x64xf32> to vector<4x64xf32>
    %58 = vector.shape_cast %55 : vector<4x64xf32> to vector<1x1x4x64xf32>
    tpu.vector_store %arg5[%c0_54, %c2_55, %c0_56, %c0_57], %58 {strides = array<i32>} : memref<1x4x4x64xf32, #tpu.memory_space<vmem>>, vector<1x1x4x64xf32>,
    %c0_58 = arith.constant 0 : index
    %c3_59 = arith.constant 3 : index
    %c0_60 = arith.constant 0 : index
    %c0_61 = arith.constant 0 : index
    %59 = vector.load %arg2[%c0_58, %c3_59, %c0_60, %c0_61] : memref<1x4x4x192xf32, #tpu.memory_space<vmem>>, vector<1x1x4x192xf32>
    %60 = vector.shape_cast %59 : vector<1x1x4x192xf32> to vector<4x192xf32>
    %61 = arith.truncf %60 : vector<4x192xf32> to vector<4x192xbf16>
    %cst_62 = arith.constant dense<0.000000e+00> : vector<4x64xf32>
    %62 = tpu.matmul %61, %3, %cst_62 {dimension_numbers = #tpu.dot_dimension_numbers<[1], [0], [0], [1], [0, 0, 1, 1], [], []>} : vector<4x192xbf16>, vector<192x64xbf16>, vector<4x64xf32> -> vector<4x64xf32>
    %c0_63 = arith.constant 0 : index
    %c2_64 = arith.constant 2 : index
    %c0_65 = arith.constant 0 : index
    %c0_66 = arith.constant 0 : index
    %63 = vector.load %arg2[%c0_63, %c2_64, %c0_65, %c0_66] : memref<1x4x4x192xf32, #tpu.memory_space<vmem>>, vector<1x1x4x192xf32>
    %64 = vector.shape_cast %63 : vector<1x1x4x192xf32> to vector<4x192xf32>
    %65 = arith.truncf %64 : vector<4x192xf32> to vector<4x192xbf16>
    %cst_67 = arith.constant dense<0.000000e+00> : vector<4x64xf32>
    %66 = tpu.matmul %65, %1, %cst_67 {dimension_numbers = #tpu.dot_dimension_numbers<[1], [0], [0], [1], [0, 0, 1, 1], [], []>} : vector<4x192xbf16>, vector<192x64xbf16>, vector<4x64xf32> -> vector<4x64xf32>
    %67 = arith.addf %62, %66 : vector<4x64xf32>
    %68 = vector.broadcast %6 : vector<1x64xf32> to vector<4x64xf32>
    %69 = arith.addf %67, %68 : vector<4x64xf32>
    %c0_68 = arith.constant 0 : index
    %c3_69 = arith.constant 3 : index
    %c0_70 = arith.constant 0 : index
    %c0_71 = arith.constant 0 : index
    %70 = vector.load %arg5[%c0_68, %c3_69, %c0_70, %c0_71] : memref<1x4x4x64xf32, #tpu.memory_space<vmem>>, vector<1x1x4x64xf32>
    %71 = vector.shape_cast %70 : vector<1x1x4x64xf32> to vector<4x64xf32>
    %72 = vector.shape_cast %69 : vector<4x64xf32> to vector<1x1x4x64xf32>
    tpu.vector_store %arg5[%c0_68, %c3_69, %c0_70, %c0_71], %72 {strides = array<i32>} : memref<1x4x4x64xf32, #tpu.memory_space<vmem>>, vector<1x1x4x64xf32>,
    return
  }
  func.func @transform_0(%arg0: i32, %arg1: i32) -> (i32, i32, i32, i32) {
    %c0_i32 = arith.constant 0 : i32
    %c0_i32_0 = arith.constant 0 : i32
    %c0_i32_1 = arith.constant 0 : i32
    return %arg0, %c0_i32, %arg1, %c0_i32_0 : i32, i32, i32, i32
  }
  func.func @transform_1(%arg0: i32, %arg1: i32) -> (i32, i32, i32) {
    %c0_i32 = arith.constant 0 : i32
    %c0_i32_0 = arith.constant 0 : i32
    %c0_i32_1 = arith.constant 0 : i32
    %c0_i32_2 = arith.constant 0 : i32
    return %c0_i32, %c0_i32_0, %c0_i32_1 : i32, i32, i32
  }
  func.func @transform_2(%arg0: i32, %arg1: i32) -> (i32, i32) {
    %c0_i32 = arith.constant 0 : i32
    %c0_i32_0 = arith.constant 0 : i32
    %c0_i32_1 = arith.constant 0 : i32
    return %c0_i32, %c0_i32_0 : i32, i32
  }
  func.func @transform_3(%arg0: i32, %arg1: i32) -> (i32, i32, i32, i32) {
    %c0_i32 = arith.constant 0 : i32
    %c0_i32_0 = arith.constant 0 : i32
    %c0_i32_1 = arith.constant 0 : i32
    return %arg0, %c0_i32, %arg1, %c0_i32_0 : i32, i32, i32, i32
  }
}

module attributes {stable_mosaic.version = 11 : i64} {
  func.func @kernel(%arg0: i32, %arg1: memref<32x64xf32, #tpu.memory_space<vmem>>, %arg2: memref<1x64xf32, #tpu.memory_space<vmem>>, %arg3: memref<1x64xf32, #tpu.memory_space<vmem>>, %arg4: memref<1x64xf32, #tpu.memory_space<vmem>>, %arg5: memref<1x64xf32, #tpu.memory_space<vmem>>) attributes {dimension_semantics = [#tpu.dimension_semantics<arbitrary>], iteration_bounds = array<i64: 1>, scalar_prefetch = 0 : i64, scratch_operands = 0 : i64, tpu.core_type = #tpu.core_type<tc>, window_params = [{transform_indices = @transform_0, window_bounds = array<i64: 32, 64>}, {pipeline_mode = #tpu.pipeline_mode<synchronous>, transform_indices = @transform_1, window_bounds = array<i64: 1, 64>}, {pipeline_mode = #tpu.pipeline_mode<synchronous>, transform_indices = @transform_2, window_bounds = array<i64: 1, 64>}, {pipeline_mode = #tpu.pipeline_mode<synchronous>, transform_indices = @transform_3, window_bounds = array<i64: 1, 64>}, {pipeline_mode = #tpu.pipeline_mode<synchronous>, transform_indices = @transform_4, window_bounds = array<i64: 1, 64>}]} {
    %c0_i32 = arith.constant 0 : i32
    %0 = arith.cmpi eq, %arg0, %c0_i32 : i32
    %1 = arith.extui %0 : i1 to i32
    %c0_i32_0 = arith.constant 0 : i32
    %2 = arith.cmpi ne, %1, %c0_i32_0 : i32
    scf.if %2 {
      %cst_13 = arith.constant 0.000000e+00 : f32
      %18 = vector.broadcast %cst_13 : f32 to vector<1x64xf32>
      %c0_14 = arith.constant 0 : index
      %c0_15 = arith.constant 0 : index
      %19 = vector.load %arg4[%c0_14, %c0_15] : memref<1x64xf32, #tpu.memory_space<vmem>>, vector<1x64xf32>
      tpu.vector_store %arg4[%c0_14, %c0_15], %18 {strides = array<i32>} : memref<1x64xf32, #tpu.memory_space<vmem>>, vector<1x64xf32>,
      %cst_16 = arith.constant 0.000000e+00 : f32
      %20 = vector.broadcast %cst_16 : f32 to vector<1x64xf32>
      %c0_17 = arith.constant 0 : index
      %c0_18 = arith.constant 0 : index
      %21 = vector.load %arg5[%c0_17, %c0_18] : memref<1x64xf32, #tpu.memory_space<vmem>>, vector<1x64xf32>
      tpu.vector_store %arg5[%c0_17, %c0_18], %20 {strides = array<i32>} : memref<1x64xf32, #tpu.memory_space<vmem>>, vector<1x64xf32>,
    } else {
    }
    %c0 = arith.constant 0 : index
    %c0_1 = arith.constant 0 : index
    %3 = vector.load %arg1[%c0, %c0_1] : memref<32x64xf32, #tpu.memory_space<vmem>>, vector<32x64xf32>
    %c0_2 = arith.constant 0 : index
    %c0_3 = arith.constant 0 : index
    %4 = vector.load %arg4[%c0_2, %c0_3] : memref<1x64xf32, #tpu.memory_space<vmem>>, vector<1x64xf32>
    %cst = arith.constant dense<0.000000e+00> : vector<64xf32>
    %5 = vector.multi_reduction <add>, %3, %cst [0] : vector<32x64xf32> to vector<64xf32>
    %6 = vector.shape_cast %5 : vector<64xf32> to vector<1x64xf32>
    %7 = arith.addf %4, %6 : vector<1x64xf32>
    %c0_4 = arith.constant 0 : index
    %c0_5 = arith.constant 0 : index
    %8 = vector.load %arg4[%c0_4, %c0_5] : memref<1x64xf32, #tpu.memory_space<vmem>>, vector<1x64xf32>
    tpu.vector_store %arg4[%c0_4, %c0_5], %7 {strides = array<i32>} : memref<1x64xf32, #tpu.memory_space<vmem>>, vector<1x64xf32>,
    %c0_6 = arith.constant 0 : index
    %c0_7 = arith.constant 0 : index
    %9 = vector.load %arg5[%c0_6, %c0_7] : memref<1x64xf32, #tpu.memory_space<vmem>>, vector<1x64xf32>
    %10 = arith.mulf %3, %3 : vector<32x64xf32>
    %cst_8 = arith.constant dense<0.000000e+00> : vector<64xf32>
    %11 = vector.multi_reduction <add>, %10, %cst_8 [0] : vector<32x64xf32> to vector<64xf32>
    %12 = vector.shape_cast %11 : vector<64xf32> to vector<1x64xf32>
    %13 = arith.addf %9, %12 : vector<1x64xf32>
    %c0_9 = arith.constant 0 : index
    %c0_10 = arith.constant 0 : index
    %14 = vector.load %arg5[%c0_9, %c0_10] : memref<1x64xf32, #tpu.memory_space<vmem>>, vector<1x64xf32>
    tpu.vector_store %arg5[%c0_9, %c0_10], %13 {strides = array<i32>} : memref<1x64xf32, #tpu.memory_space<vmem>>, vector<1x64xf32>,
    %c0_i32_11 = arith.constant 0 : i32
    %15 = arith.cmpi eq, %arg0, %c0_i32_11 : i32
    %16 = arith.extui %15 : i1 to i32
    %c0_i32_12 = arith.constant 0 : i32
    %17 = arith.cmpi ne, %16, %c0_i32_12 : i32
    scf.if %17 {
      %c0_13 = arith.constant 0 : index
      %c0_14 = arith.constant 0 : index
      %18 = vector.load %arg4[%c0_13, %c0_14] : memref<1x64xf32, #tpu.memory_space<vmem>>, vector<1x64xf32>
      %cst_15 = arith.constant 3.200000e+01 : f32
      %19 = vector.broadcast %cst_15 : f32 to vector<1x64xf32>
      %20 = arith.divf %18, %19 : vector<1x64xf32>
      %c0_16 = arith.constant 0 : index
      %c0_17 = arith.constant 0 : index
      %21 = vector.load %arg5[%c0_16, %c0_17] : memref<1x64xf32, #tpu.memory_space<vmem>>, vector<1x64xf32>
      %cst_18 = arith.constant 3.200000e+01 : f32
      %22 = vector.broadcast %cst_18 : f32 to vector<1x64xf32>
      %23 = arith.divf %21, %22 : vector<1x64xf32>
      %24 = arith.mulf %20, %20 : vector<1x64xf32>
      %25 = arith.subf %23, %24 : vector<1x64xf32>
      %cst_19 = arith.constant 0.000000e+00 : f32
      %26 = vector.broadcast %cst_19 : f32 to vector<1x64xf32>
      %27 = arith.maximumf %25, %26 : vector<1x64xf32>
      %c0_20 = arith.constant 0 : index
      %c0_21 = arith.constant 0 : index
      %28 = vector.load %arg2[%c0_20, %c0_21] : memref<1x64xf32, #tpu.memory_space<vmem>>, vector<1x64xf32>
      %cst_22 = arith.constant 9.99999974E-6 : f32
      %29 = vector.broadcast %cst_22 : f32 to vector<1x64xf32>
      %30 = arith.addf %27, %29 : vector<1x64xf32>
      %31 = math.rsqrt %30 : vector<1x64xf32>
      %32 = arith.mulf %28, %31 : vector<1x64xf32>
      %c0_23 = arith.constant 0 : index
      %c0_24 = arith.constant 0 : index
      %33 = vector.load %arg4[%c0_23, %c0_24] : memref<1x64xf32, #tpu.memory_space<vmem>>, vector<1x64xf32>
      tpu.vector_store %arg4[%c0_23, %c0_24], %32 {strides = array<i32>} : memref<1x64xf32, #tpu.memory_space<vmem>>, vector<1x64xf32>,
      %c0_25 = arith.constant 0 : index
      %c0_26 = arith.constant 0 : index
      %34 = vector.load %arg3[%c0_25, %c0_26] : memref<1x64xf32, #tpu.memory_space<vmem>>, vector<1x64xf32>
      %35 = arith.mulf %20, %32 : vector<1x64xf32>
      %36 = arith.subf %34, %35 : vector<1x64xf32>
      %c0_27 = arith.constant 0 : index
      %c0_28 = arith.constant 0 : index
      %37 = vector.load %arg5[%c0_27, %c0_28] : memref<1x64xf32, #tpu.memory_space<vmem>>, vector<1x64xf32>
      tpu.vector_store %arg5[%c0_27, %c0_28], %36 {strides = array<i32>} : memref<1x64xf32, #tpu.memory_space<vmem>>, vector<1x64xf32>,
    } else {
    }
    return
  }
  func.func @transform_0(%arg0: i32) -> (i32, i32) {
    %c0_i32 = arith.constant 0 : i32
    %c0_i32_0 = arith.constant 0 : i32
    return %arg0, %c0_i32 : i32, i32
  }
  func.func @transform_1(%arg0: i32) -> (i32, i32) {
    %c0_i32 = arith.constant 0 : i32
    %c0_i32_0 = arith.constant 0 : i32
    %c0_i32_1 = arith.constant 0 : i32
    return %c0_i32, %c0_i32_0 : i32, i32
  }
  func.func @transform_2(%arg0: i32) -> (i32, i32) {
    %c0_i32 = arith.constant 0 : i32
    %c0_i32_0 = arith.constant 0 : i32
    %c0_i32_1 = arith.constant 0 : i32
    return %c0_i32, %c0_i32_0 : i32, i32
  }
  func.func @transform_3(%arg0: i32) -> (i32, i32) {
    %c0_i32 = arith.constant 0 : i32
    %c0_i32_0 = arith.constant 0 : i32
    %c0_i32_1 = arith.constant 0 : i32
    return %c0_i32, %c0_i32_0 : i32, i32
  }
  func.func @transform_4(%arg0: i32) -> (i32, i32) {
    %c0_i32 = arith.constant 0 : i32
    %c0_i32_0 = arith.constant 0 : i32
    %c0_i32_1 = arith.constant 0 : i32
    return %c0_i32, %c0_i32_0 : i32, i32
  }
}

module attributes {stable_mosaic.version = 11 : i64} {
  func.func @kernel(%arg0: i32, %arg1: memref<32x64xf32, #tpu.memory_space<vmem>>, %arg2: memref<1x64xf32, #tpu.memory_space<vmem>>, %arg3: memref<1x64xf32, #tpu.memory_space<vmem>>, %arg4: memref<32x64xf32, #tpu.memory_space<vmem>>) attributes {dimension_semantics = [#tpu.dimension_semantics<parallel>], iteration_bounds = array<i64: 1>, scalar_prefetch = 0 : i64, scratch_operands = 0 : i64, tpu.core_type = #tpu.core_type<tc>, window_params = [{transform_indices = @transform_0, window_bounds = array<i64: 32, 64>}, {pipeline_mode = #tpu.pipeline_mode<synchronous>, transform_indices = @transform_1, window_bounds = array<i64: 1, 64>}, {pipeline_mode = #tpu.pipeline_mode<synchronous>, transform_indices = @transform_2, window_bounds = array<i64: 1, 64>}, {transform_indices = @transform_3, window_bounds = array<i64: 32, 64>}]} {
    %c0 = arith.constant 0 : index
    %c0_0 = arith.constant 0 : index
    %0 = vector.load %arg1[%c0, %c0_0] : memref<32x64xf32, #tpu.memory_space<vmem>>, vector<32x64xf32>
    %c0_1 = arith.constant 0 : index
    %c0_2 = arith.constant 0 : index
    %1 = vector.load %arg2[%c0_1, %c0_2] : memref<1x64xf32, #tpu.memory_space<vmem>>, vector<1x64xf32>
    %2 = vector.broadcast %1 : vector<1x64xf32> to vector<32x64xf32>
    %3 = arith.mulf %0, %2 : vector<32x64xf32>
    %c0_3 = arith.constant 0 : index
    %c0_4 = arith.constant 0 : index
    %4 = vector.load %arg3[%c0_3, %c0_4] : memref<1x64xf32, #tpu.memory_space<vmem>>, vector<1x64xf32>
    %5 = vector.broadcast %4 : vector<1x64xf32> to vector<32x64xf32>
    %6 = arith.addf %3, %5 : vector<32x64xf32>
    %c0_5 = arith.constant 0 : index
    %c0_6 = arith.constant 0 : index
    %7 = vector.load %arg4[%c0_5, %c0_6] : memref<32x64xf32, #tpu.memory_space<vmem>>, vector<32x64xf32>
    tpu.vector_store %arg4[%c0_5, %c0_6], %6 {strides = array<i32>} : memref<32x64xf32, #tpu.memory_space<vmem>>, vector<32x64xf32>,
    return
  }
  func.func @transform_0(%arg0: i32) -> (i32, i32) {
    %c0_i32 = arith.constant 0 : i32
    %c0_i32_0 = arith.constant 0 : i32
    return %arg0, %c0_i32 : i32, i32
  }
  func.func @transform_1(%arg0: i32) -> (i32, i32) {
    %c0_i32 = arith.constant 0 : i32
    %c0_i32_0 = arith.constant 0 : i32
    %c0_i32_1 = arith.constant 0 : i32
    return %c0_i32, %c0_i32_0 : i32, i32
  }
  func.func @transform_2(%arg0: i32) -> (i32, i32) {
    %c0_i32 = arith.constant 0 : i32
    %c0_i32_0 = arith.constant 0 : i32
    %c0_i32_1 = arith.constant 0 : i32
    return %c0_i32, %c0_i32_0 : i32, i32
  }
  func.func @transform_3(%arg0: i32) -> (i32, i32) {
    %c0_i32 = arith.constant 0 : i32
    %c0_i32_0 = arith.constant 0 : i32
    return %arg0, %c0_i32 : i32, i32
  }
}

module attributes {stable_mosaic.version = 11 : i64} {
  func.func @kernel(%arg0: i32, %arg1: i32, %arg2: memref<1x4x4x64xf32, #tpu.memory_space<vmem>>, %arg3: memref<1x64xf32, #tpu.memory_space<vmem>>, %arg4: memref<1x64xf32, #tpu.memory_space<vmem>>, %arg5: memref<64x64xbf16, #tpu.memory_space<vmem>>, %arg6: memref<1x64xf32, #tpu.memory_space<vmem>>, %arg7: memref<3x64xf32, #tpu.memory_space<vmem>>, %arg8: memref<1x64xf32, #tpu.memory_space<vmem>>, %arg9: memref<64x64xbf16, #tpu.memory_space<vmem>>, %arg10: memref<1x64xf32, #tpu.memory_space<vmem>>, %arg11: memref<1x4x4x64xf32, #tpu.memory_space<vmem>>) attributes {dimension_semantics = [#tpu.dimension_semantics<parallel>, #tpu.dimension_semantics<parallel>], iteration_bounds = array<i64: 2, 1>, scalar_prefetch = 0 : i64, scratch_operands = 0 : i64, tpu.core_type = #tpu.core_type<tc>, window_params = [{transform_indices = @transform_0, window_bounds = array<i64: 1, 4, 4, 64>}, {pipeline_mode = #tpu.pipeline_mode<synchronous>, transform_indices = @transform_1, window_bounds = array<i64: 1, 64>}, {pipeline_mode = #tpu.pipeline_mode<synchronous>, transform_indices = @transform_2, window_bounds = array<i64: 1, 64>}, {pipeline_mode = #tpu.pipeline_mode<synchronous>, transform_indices = @transform_3, window_bounds = array<i64: 64, 64>}, {pipeline_mode = #tpu.pipeline_mode<synchronous>, transform_indices = @transform_4, window_bounds = array<i64: 1, 64>}, {pipeline_mode = #tpu.pipeline_mode<synchronous>, transform_indices = @transform_5, window_bounds = array<i64: 3, 64>}, {pipeline_mode = #tpu.pipeline_mode<synchronous>, transform_indices = @transform_6, window_bounds = array<i64: 1, 64>}, {pipeline_mode = #tpu.pipeline_mode<synchronous>, transform_indices = @transform_7, window_bounds = array<i64: 64, 64>}, {pipeline_mode = #tpu.pipeline_mode<synchronous>, transform_indices = @transform_8, window_bounds = array<i64: 1, 64>}, {transform_indices = @transform_9, window_bounds = array<i64: 1, 4, 4, 64>}]} {
    %c0 = arith.constant 0 : index
    %c0_0 = arith.constant 0 : index
    %0 = vector.load %arg3[%c0, %c0_0] : memref<1x64xf32, #tpu.memory_space<vmem>>, vector<1x64xf32>
    %c0_1 = arith.constant 0 : index
    %c0_2 = arith.constant 0 : index
    %1 = vector.load %arg4[%c0_1, %c0_2] : memref<1x64xf32, #tpu.memory_space<vmem>>, vector<1x64xf32>
    %c0_3 = arith.constant 0 : index
    %c0_4 = arith.constant 0 : index
    %2 = vector.load %arg5[%c0_3, %c0_4] : memref<64x64xbf16, #tpu.memory_space<vmem>>, vector<64x64xbf16>
    %c0_5 = arith.constant 0 : index
    %c0_6 = arith.constant 0 : index
    %3 = vector.load %arg9[%c0_5, %c0_6] : memref<64x64xbf16, #tpu.memory_space<vmem>>, vector<64x64xbf16>
    %c0_7 = arith.constant 0 : index
    %c0_8 = arith.constant 0 : index
    %4 = vector.load %arg6[%c0_7, %c0_8] : memref<1x64xf32, #tpu.memory_space<vmem>>, vector<1x64xf32>
    %c0_9 = arith.constant 0 : index
    %c0_10 = arith.constant 0 : index
    %5 = vector.load %arg10[%c0_9, %c0_10] : memref<1x64xf32, #tpu.memory_space<vmem>>, vector<1x64xf32>
    %c0_11 = arith.constant 0 : index
    %c0_12 = arith.constant 0 : index
    %6 = vector.load %arg8[%c0_11, %c0_12] : memref<1x64xf32, #tpu.memory_space<vmem>>, vector<1x64xf32>
    %c0_13 = arith.constant 0 : index
    %c0_14 = arith.constant 0 : index
    %7 = vector.load %arg7[%c0_13, %c0_14] : memref<3x64xf32, #tpu.memory_space<vmem>>, vector<1x64xf32>
    %c1 = arith.constant 1 : index
    %c0_15 = arith.constant 0 : index
    %8 = vector.load %arg7[%c1, %c0_15] : memref<3x64xf32, #tpu.memory_space<vmem>>, vector<1x64xf32>
    %c2 = arith.constant 2 : index
    %c0_16 = arith.constant 0 : index
    %9 = vector.load %arg7[%c2, %c0_16] : memref<3x64xf32, #tpu.memory_space<vmem>>, vector<1x64xf32>
    %c0_17 = arith.constant 0 : index
    %c0_18 = arith.constant 0 : index
    %c0_19 = arith.constant 0 : index
    %c0_20 = arith.constant 0 : index
    %10 = vector.load %arg2[%c0_17, %c0_18, %c0_19, %c0_20] : memref<1x4x4x64xf32, #tpu.memory_space<vmem>>, vector<1x1x4x64xf32>
    %11 = vector.shape_cast %10 : vector<1x1x4x64xf32> to vector<4x64xf32>
    %12 = vector.broadcast %0 : vector<1x64xf32> to vector<4x64xf32>
    %13 = arith.mulf %11, %12 : vector<4x64xf32>
    %14 = vector.broadcast %1 : vector<1x64xf32> to vector<4x64xf32>
    %15 = arith.addf %13, %14 : vector<4x64xf32>
    %16 = arith.truncf %15 : vector<4x64xf32> to vector<4x64xbf16>
    %cst = arith.constant dense<0.000000e+00> : vector<4x64xf32>
    %17 = tpu.matmul %16, %2, %cst {dimension_numbers = #tpu.dot_dimension_numbers<[1], [0], [0], [1], [0, 0, 1, 1], [], []>} : vector<4x64xbf16>, vector<64x64xbf16>, vector<4x64xf32> -> vector<4x64xf32>
    %18 = vector.broadcast %4 : vector<1x64xf32> to vector<4x64xf32>
    %19 = arith.addf %17, %18 : vector<4x64xf32>
    %c0_21 = arith.constant 0 : index
    %c1_22 = arith.constant 1 : index
    %c0_23 = arith.constant 0 : index
    %c0_24 = arith.constant 0 : index
    %20 = vector.load %arg2[%c0_21, %c1_22, %c0_23, %c0_24] : memref<1x4x4x64xf32, #tpu.memory_space<vmem>>, vector<1x1x4x64xf32>
    %21 = vector.shape_cast %20 : vector<1x1x4x64xf32> to vector<4x64xf32>
    %22 = vector.broadcast %0 : vector<1x64xf32> to vector<4x64xf32>
    %23 = arith.mulf %21, %22 : vector<4x64xf32>
    %24 = vector.broadcast %1 : vector<1x64xf32> to vector<4x64xf32>
    %25 = arith.addf %23, %24 : vector<4x64xf32>
    %26 = arith.truncf %25 : vector<4x64xf32> to vector<4x64xbf16>
    %cst_25 = arith.constant dense<0.000000e+00> : vector<4x64xf32>
    %27 = tpu.matmul %26, %2, %cst_25 {dimension_numbers = #tpu.dot_dimension_numbers<[1], [0], [0], [1], [0, 0, 1, 1], [], []>} : vector<4x64xbf16>, vector<64x64xbf16>, vector<4x64xf32> -> vector<4x64xf32>
    %28 = vector.broadcast %4 : vector<1x64xf32> to vector<4x64xf32>
    %29 = arith.addf %27, %28 : vector<4x64xf32>
    %30 = vector.broadcast %8 : vector<1x64xf32> to vector<4x64xf32>
    %31 = arith.mulf %19, %30 : vector<4x64xf32>
    %32 = vector.broadcast %6 : vector<1x64xf32> to vector<4x64xf32>
    %33 = arith.addf %31, %32 : vector<4x64xf32>
    %34 = vector.broadcast %9 : vector<1x64xf32> to vector<4x64xf32>
    %35 = arith.mulf %29, %34 : vector<4x64xf32>
    %36 = arith.addf %33, %35 : vector<4x64xf32>
    %37 = arith.truncf %36 : vector<4x64xf32> to vector<4x64xbf16>
    %cst_26 = arith.constant dense<0.000000e+00> : vector<4x64xf32>
    %38 = tpu.matmul %37, %3, %cst_26 {dimension_numbers = #tpu.dot_dimension_numbers<[1], [0], [0], [1], [0, 0, 1, 1], [], []>} : vector<4x64xbf16>, vector<64x64xbf16>, vector<4x64xf32> -> vector<4x64xf32>
    %39 = vector.broadcast %5 : vector<1x64xf32> to vector<4x64xf32>
    %40 = arith.addf %38, %39 : vector<4x64xf32>
    %c0_27 = arith.constant 0 : index
    %c0_28 = arith.constant 0 : index
    %c0_29 = arith.constant 0 : index
    %c0_30 = arith.constant 0 : index
    %41 = vector.load %arg2[%c0_27, %c0_28, %c0_29, %c0_30] : memref<1x4x4x64xf32, #tpu.memory_space<vmem>>, vector<1x1x4x64xf32>
    %42 = vector.shape_cast %41 : vector<1x1x4x64xf32> to vector<4x64xf32>
    %43 = arith.addf %42, %40 : vector<4x64xf32>
    %c0_31 = arith.constant 0 : index
    %c0_32 = arith.constant 0 : index
    %c0_33 = arith.constant 0 : index
    %c0_34 = arith.constant 0 : index
    %44 = vector.load %arg11[%c0_31, %c0_32, %c0_33, %c0_34] : memref<1x4x4x64xf32, #tpu.memory_space<vmem>>, vector<1x1x4x64xf32>
    %45 = vector.shape_cast %44 : vector<1x1x4x64xf32> to vector<4x64xf32>
    %46 = vector.shape_cast %43 : vector<4x64xf32> to vector<1x1x4x64xf32>
    tpu.vector_store %arg11[%c0_31, %c0_32, %c0_33, %c0_34], %46 {strides = array<i32>} : memref<1x4x4x64xf32, #tpu.memory_space<vmem>>, vector<1x1x4x64xf32>,
    %c0_35 = arith.constant 0 : index
    %c2_36 = arith.constant 2 : index
    %c0_37 = arith.constant 0 : index
    %c0_38 = arith.constant 0 : index
    %47 = vector.load %arg2[%c0_35, %c2_36, %c0_37, %c0_38] : memref<1x4x4x64xf32, #tpu.memory_space<vmem>>, vector<1x1x4x64xf32>
    %48 = vector.shape_cast %47 : vector<1x1x4x64xf32> to vector<4x64xf32>
    %49 = vector.broadcast %0 : vector<1x64xf32> to vector<4x64xf32>
    %50 = arith.mulf %48, %49 : vector<4x64xf32>
    %51 = vector.broadcast %1 : vector<1x64xf32> to vector<4x64xf32>
    %52 = arith.addf %50, %51 : vector<4x64xf32>
    %53 = arith.truncf %52 : vector<4x64xf32> to vector<4x64xbf16>
    %cst_39 = arith.constant dense<0.000000e+00> : vector<4x64xf32>
    %54 = tpu.matmul %53, %2, %cst_39 {dimension_numbers = #tpu.dot_dimension_numbers<[1], [0], [0], [1], [0, 0, 1, 1], [], []>} : vector<4x64xbf16>, vector<64x64xbf16>, vector<4x64xf32> -> vector<4x64xf32>
    %55 = vector.broadcast %4 : vector<1x64xf32> to vector<4x64xf32>
    %56 = arith.addf %54, %55 : vector<4x64xf32>
    %57 = vector.broadcast %8 : vector<1x64xf32> to vector<4x64xf32>
    %58 = arith.mulf %29, %57 : vector<4x64xf32>
    %59 = vector.broadcast %6 : vector<1x64xf32> to vector<4x64xf32>
    %60 = arith.addf %58, %59 : vector<4x64xf32>
    %61 = vector.broadcast %7 : vector<1x64xf32> to vector<4x64xf32>
    %62 = arith.mulf %19, %61 : vector<4x64xf32>
    %63 = arith.addf %60, %62 : vector<4x64xf32>
    %64 = vector.broadcast %9 : vector<1x64xf32> to vector<4x64xf32>
    %65 = arith.mulf %56, %64 : vector<4x64xf32>
    %66 = arith.addf %63, %65 : vector<4x64xf32>
    %67 = arith.truncf %66 : vector<4x64xf32> to vector<4x64xbf16>
    %cst_40 = arith.constant dense<0.000000e+00> : vector<4x64xf32>
    %68 = tpu.matmul %67, %3, %cst_40 {dimension_numbers = #tpu.dot_dimension_numbers<[1], [0], [0], [1], [0, 0, 1, 1], [], []>} : vector<4x64xbf16>, vector<64x64xbf16>, vector<4x64xf32> -> vector<4x64xf32>
    %69 = vector.broadcast %5 : vector<1x64xf32> to vector<4x64xf32>
    %70 = arith.addf %68, %69 : vector<4x64xf32>
    %c0_41 = arith.constant 0 : index
    %c1_42 = arith.constant 1 : index
    %c0_43 = arith.constant 0 : index
    %c0_44 = arith.constant 0 : index
    %71 = vector.load %arg2[%c0_41, %c1_42, %c0_43, %c0_44] : memref<1x4x4x64xf32, #tpu.memory_space<vmem>>, vector<1x1x4x64xf32>
    %72 = vector.shape_cast %71 : vector<1x1x4x64xf32> to vector<4x64xf32>
    %73 = arith.addf %72, %70 : vector<4x64xf32>
    %c0_45 = arith.constant 0 : index
    %c1_46 = arith.constant 1 : index
    %c0_47 = arith.constant 0 : index
    %c0_48 = arith.constant 0 : index
    %74 = vector.load %arg11[%c0_45, %c1_46, %c0_47, %c0_48] : memref<1x4x4x64xf32, #tpu.memory_space<vmem>>, vector<1x1x4x64xf32>
    %75 = vector.shape_cast %74 : vector<1x1x4x64xf32> to vector<4x64xf32>
    %76 = vector.shape_cast %73 : vector<4x64xf32> to vector<1x1x4x64xf32>
    tpu.vector_store %arg11[%c0_45, %c1_46, %c0_47, %c0_48], %76 {strides = array<i32>} : memref<1x4x4x64xf32, #tpu.memory_space<vmem>>, vector<1x1x4x64xf32>,
    %c0_49 = arith.constant 0 : index
    %c3 = arith.constant 3 : index
    %c0_50 = arith.constant 0 : index
    %c0_51 = arith.constant 0 : index
    %77 = vector.load %arg2[%c0_49, %c3, %c0_50, %c0_51] : memref<1x4x4x64xf32, #tpu.memory_space<vmem>>, vector<1x1x4x64xf32>
    %78 = vector.shape_cast %77 : vector<1x1x4x64xf32> to vector<4x64xf32>
    %79 = vector.broadcast %0 : vector<1x64xf32> to vector<4x64xf32>
    %80 = arith.mulf %78, %79 : vector<4x64xf32>
    %81 = vector.broadcast %1 : vector<1x64xf32> to vector<4x64xf32>
    %82 = arith.addf %80, %81 : vector<4x64xf32>
    %83 = arith.truncf %82 : vector<4x64xf32> to vector<4x64xbf16>
    %cst_52 = arith.constant dense<0.000000e+00> : vector<4x64xf32>
    %84 = tpu.matmul %83, %2, %cst_52 {dimension_numbers = #tpu.dot_dimension_numbers<[1], [0], [0], [1], [0, 0, 1, 1], [], []>} : vector<4x64xbf16>, vector<64x64xbf16>, vector<4x64xf32> -> vector<4x64xf32>
    %85 = vector.broadcast %4 : vector<1x64xf32> to vector<4x64xf32>
    %86 = arith.addf %84, %85 : vector<4x64xf32>
    %87 = vector.broadcast %8 : vector<1x64xf32> to vector<4x64xf32>
    %88 = arith.mulf %56, %87 : vector<4x64xf32>
    %89 = vector.broadcast %6 : vector<1x64xf32> to vector<4x64xf32>
    %90 = arith.addf %88, %89 : vector<4x64xf32>
    %91 = vector.broadcast %7 : vector<1x64xf32> to vector<4x64xf32>
    %92 = arith.mulf %29, %91 : vector<4x64xf32>
    %93 = arith.addf %90, %92 : vector<4x64xf32>
    %94 = vector.broadcast %9 : vector<1x64xf32> to vector<4x64xf32>
    %95 = arith.mulf %86, %94 : vector<4x64xf32>
    %96 = arith.addf %93, %95 : vector<4x64xf32>
    %97 = arith.truncf %96 : vector<4x64xf32> to vector<4x64xbf16>
    %cst_53 = arith.constant dense<0.000000e+00> : vector<4x64xf32>
    %98 = tpu.matmul %97, %3, %cst_53 {dimension_numbers = #tpu.dot_dimension_numbers<[1], [0], [0], [1], [0, 0, 1, 1], [], []>} : vector<4x64xbf16>, vector<64x64xbf16>, vector<4x64xf32> -> vector<4x64xf32>
    %99 = vector.broadcast %5 : vector<1x64xf32> to vector<4x64xf32>
    %100 = arith.addf %98, %99 : vector<4x64xf32>
    %c0_54 = arith.constant 0 : index
    %c2_55 = arith.constant 2 : index
    %c0_56 = arith.constant 0 : index
    %c0_57 = arith.constant 0 : index
    %101 = vector.load %arg2[%c0_54, %c2_55, %c0_56, %c0_57] : memref<1x4x4x64xf32, #tpu.memory_space<vmem>>, vector<1x1x4x64xf32>
    %102 = vector.shape_cast %101 : vector<1x1x4x64xf32> to vector<4x64xf32>
    %103 = arith.addf %102, %100 : vector<4x64xf32>
    %c0_58 = arith.constant 0 : index
    %c2_59 = arith.constant 2 : index
    %c0_60 = arith.constant 0 : index
    %c0_61 = arith.constant 0 : index
    %104 = vector.load %arg11[%c0_58, %c2_59, %c0_60, %c0_61] : memref<1x4x4x64xf32, #tpu.memory_space<vmem>>, vector<1x1x4x64xf32>
    %105 = vector.shape_cast %104 : vector<1x1x4x64xf32> to vector<4x64xf32>
    %106 = vector.shape_cast %103 : vector<4x64xf32> to vector<1x1x4x64xf32>
    tpu.vector_store %arg11[%c0_58, %c2_59, %c0_60, %c0_61], %106 {strides = array<i32>} : memref<1x4x4x64xf32, #tpu.memory_space<vmem>>, vector<1x1x4x64xf32>,
    %107 = vector.broadcast %8 : vector<1x64xf32> to vector<4x64xf32>
    %108 = arith.mulf %86, %107 : vector<4x64xf32>
    %109 = vector.broadcast %6 : vector<1x64xf32> to vector<4x64xf32>
    %110 = arith.addf %108, %109 : vector<4x64xf32>
    %111 = vector.broadcast %7 : vector<1x64xf32> to vector<4x64xf32>
    %112 = arith.mulf %56, %111 : vector<4x64xf32>
    %113 = arith.addf %110, %112 : vector<4x64xf32>
    %114 = arith.truncf %113 : vector<4x64xf32> to vector<4x64xbf16>
    %cst_62 = arith.constant dense<0.000000e+00> : vector<4x64xf32>
    %115 = tpu.matmul %114, %3, %cst_62 {dimension_numbers = #tpu.dot_dimension_numbers<[1], [0], [0], [1], [0, 0, 1, 1], [], []>} : vector<4x64xbf16>, vector<64x64xbf16>, vector<4x64xf32> -> vector<4x64xf32>
    %116 = vector.broadcast %5 : vector<1x64xf32> to vector<4x64xf32>
    %117 = arith.addf %115, %116 : vector<4x64xf32>
    %c0_63 = arith.constant 0 : index
    %c3_64 = arith.constant 3 : index
    %c0_65 = arith.constant 0 : index
    %c0_66 = arith.constant 0 : index
    %118 = vector.load %arg2[%c0_63, %c3_64, %c0_65, %c0_66] : memref<1x4x4x64xf32, #tpu.memory_space<vmem>>, vector<1x1x4x64xf32>
    %119 = vector.shape_cast %118 : vector<1x1x4x64xf32> to vector<4x64xf32>
    %120 = arith.addf %119, %117 : vector<4x64xf32>
    %c0_67 = arith.constant 0 : index
    %c3_68 = arith.constant 3 : index
    %c0_69 = arith.constant 0 : index
    %c0_70 = arith.constant 0 : index
    %121 = vector.load %arg11[%c0_67, %c3_68, %c0_69, %c0_70] : memref<1x4x4x64xf32, #tpu.memory_space<vmem>>, vector<1x1x4x64xf32>
    %122 = vector.shape_cast %121 : vector<1x1x4x64xf32> to vector<4x64xf32>
    %123 = vector.shape_cast %120 : vector<4x64xf32> to vector<1x1x4x64xf32>
    tpu.vector_store %arg11[%c0_67, %c3_68, %c0_69, %c0_70], %123 {strides = array<i32>} : memref<1x4x4x64xf32, #tpu.memory_space<vmem>>, vector<1x1x4x64xf32>,
    return
  }
  func.func @transform_0(%arg0: i32, %arg1: i32) -> (i32, i32, i32, i32) {
    %c0_i32 = arith.constant 0 : i32
    %c0_i32_0 = arith.constant 0 : i32
    %c0_i32_1 = arith.constant 0 : i32
    return %arg0, %c0_i32, %arg1, %c0_i32_0 : i32, i32, i32, i32
  }
  func.func @transform_1(%arg0: i32, %arg1: i32) -> (i32, i32) {
    %c0_i32 = arith.constant 0 : i32
    %c0_i32_0 = arith.constant 0 : i32
    %c0_i32_1 = arith.constant 0 : i32
    return %c0_i32, %c0_i32_0 : i32, i32
  }
  func.func @transform_2(%arg0: i32, %arg1: i32) -> (i32, i32) {
    %c0_i32 = arith.constant 0 : i32
    %c0_i32_0 = arith.constant 0 : i32
    %c0_i32_1 = arith.constant 0 : i32
    return %c0_i32, %c0_i32_0 : i32, i32
  }
  func.func @transform_3(%arg0: i32, %arg1: i32) -> (i32, i32) {
    %c0_i32 = arith.constant 0 : i32
    %c0_i32_0 = arith.constant 0 : i32
    %c0_i32_1 = arith.constant 0 : i32
    return %c0_i32, %c0_i32_0 : i32, i32
  }
  func.func @transform_4(%arg0: i32, %arg1: i32) -> (i32, i32) {
    %c0_i32 = arith.constant 0 : i32
    %c0_i32_0 = arith.constant 0 : i32
    %c0_i32_1 = arith.constant 0 : i32
    return %c0_i32, %c0_i32_0 : i32, i32
  }
  func.func @transform_5(%arg0: i32, %arg1: i32) -> (i32, i32) {
    %c0_i32 = arith.constant 0 : i32
    %c0_i32_0 = arith.constant 0 : i32
    %c0_i32_1 = arith.constant 0 : i32
    return %c0_i32, %c0_i32_0 : i32, i32
  }
  func.func @transform_6(%arg0: i32, %arg1: i32) -> (i32, i32) {
    %c0_i32 = arith.constant 0 : i32
    %c0_i32_0 = arith.constant 0 : i32
    %c0_i32_1 = arith.constant 0 : i32
    return %c0_i32, %c0_i32_0 : i32, i32
  }
  func.func @transform_7(%arg0: i32, %arg1: i32) -> (i32, i32) {
    %c0_i32 = arith.constant 0 : i32
    %c0_i32_0 = arith.constant 0 : i32
    %c0_i32_1 = arith.constant 0 : i32
    return %c0_i32, %c0_i32_0 : i32, i32
  }
  func.func @transform_8(%arg0: i32, %arg1: i32) -> (i32, i32) {
    %c0_i32 = arith.constant 0 : i32
    %c0_i32_0 = arith.constant 0 : i32
    %c0_i32_1 = arith.constant 0 : i32
    return %c0_i32, %c0_i32_0 : i32, i32
  }
  func.func @transform_9(%arg0: i32, %arg1: i32) -> (i32, i32, i32, i32) {
    %c0_i32 = arith.constant 0 : i32
    %c0_i32_0 = arith.constant 0 : i32
    %c0_i32_1 = arith.constant 0 : i32
    return %arg0, %c0_i32, %arg1, %c0_i32_0 : i32, i32, i32, i32
  }
}

module attributes {stable_mosaic.version = 11 : i64} {
  func.func @kernel(%arg0: i32, %arg1: memref<1x5x192xbf16, #tpu.memory_space<vmem>>, %arg2: memref<1x5x64xbf16, #tpu.memory_space<vmem>>) attributes {dimension_semantics = [#tpu.dimension_semantics<parallel>], iteration_bounds = array<i64: 8>, scalar_prefetch = 0 : i64, scratch_operands = 0 : i64, tpu.core_type = #tpu.core_type<tc>, window_params = [{transform_indices = @transform_0, window_bounds = array<i64: 1, 5, 192>}, {transform_indices = @transform_1, window_bounds = array<i64: 1, 5, 64>}]} {
    %c0 = arith.constant 0 : index
    %c0_0 = arith.constant 0 : index
    %c0_1 = arith.constant 0 : index
    %0 = vector.load %arg1[%c0, %c0_0, %c0_1] : memref<1x5x192xbf16, #tpu.memory_space<vmem>>, vector<1x5x64xbf16>
    %1 = vector.shape_cast %0 : vector<1x5x64xbf16> to vector<5x64xbf16>
    %2 = arith.extf %1 : vector<5x64xbf16> to vector<5x64xf32>
    %cst = arith.constant 1.250000e-01 : f32
    %3 = vector.broadcast %cst : f32 to vector<5x64xf32>
    %4 = arith.mulf %2, %3 : vector<5x64xf32>
    %c0_2 = arith.constant 0 : index
    %c0_3 = arith.constant 0 : index
    %c64 = arith.constant 64 : index
    %5 = vector.load %arg1[%c0_2, %c0_3, %c64] : memref<1x5x192xbf16, #tpu.memory_space<vmem>>, vector<1x5x64xbf16>
    %6 = vector.shape_cast %5 : vector<1x5x64xbf16> to vector<5x64xbf16>
    %c0_4 = arith.constant 0 : index
    %c0_5 = arith.constant 0 : index
    %c128 = arith.constant 128 : index
    %7 = vector.load %arg1[%c0_4, %c0_5, %c128] : memref<1x5x192xbf16, #tpu.memory_space<vmem>>, vector<1x5x64xbf16>
    %8 = vector.shape_cast %7 : vector<1x5x64xbf16> to vector<5x64xbf16>
    %9 = arith.truncf %4 : vector<5x64xf32> to vector<5x64xbf16>
    %cst_6 = arith.constant dense<0.000000e+00> : vector<5x5xf32>
    %10 = tpu.matmul %9, %6, %cst_6 {dimension_numbers = #tpu.dot_dimension_numbers<[1], [1], [0], [0], [0, 0, 1, 0], [], []>} : vector<5x64xbf16>, vector<5x64xbf16>, vector<5x5xf32> -> vector<5x5xf32>
    %cst_7 = arith.constant dense<0xFF800000> : vector<5xf32>
    %11 = vector.multi_reduction <maximumf>, %10, %cst_7 [1] : vector<5x5xf32> to vector<5xf32>
    %12 = vector.shape_cast %11 : vector<5xf32> to vector<5x1xf32>
    %13 = vector.broadcast %12 : vector<5x1xf32> to vector<5x5xf32>
    %14 = arith.subf %10, %13 : vector<5x5xf32>
    %15 = math.exp %14 : vector<5x5xf32>
    %cst_8 = arith.constant dense<0.000000e+00> : vector<5xf32>
    %16 = vector.multi_reduction <add>, %15, %cst_8 [1] : vector<5x5xf32> to vector<5xf32>
    %17 = vector.shape_cast %16 : vector<5xf32> to vector<5x1xf32>
    %18 = arith.truncf %15 : vector<5x5xf32> to vector<5x5xbf16>
    %cst_9 = arith.constant dense<0.000000e+00> : vector<5x64xf32>
    %19 = tpu.matmul %18, %8, %cst_9 {dimension_numbers = #tpu.dot_dimension_numbers<[1], [0], [0], [1], [0, 0, 1, 1], [], []>} : vector<5x5xbf16>, vector<5x64xbf16>, vector<5x64xf32> -> vector<5x64xf32>
    %20 = tpu.reciprocal %17 {approx = true} : vector<5x1xf32> -> vector<5x1xf32>
    %21 = vector.broadcast %20 : vector<5x1xf32> to vector<5x64xf32>
    %22 = arith.mulf %19, %21 : vector<5x64xf32>
    %23 = arith.truncf %22 : vector<5x64xf32> to vector<5x64xbf16>
    %c0_10 = arith.constant 0 : index
    %c0_11 = arith.constant 0 : index
    %c0_12 = arith.constant 0 : index
    %24 = vector.load %arg2[%c0_10, %c0_11, %c0_12] : memref<1x5x64xbf16, #tpu.memory_space<vmem>>, vector<1x5x64xbf16>
    %25 = vector.shape_cast %24 : vector<1x5x64xbf16> to vector<5x64xbf16>
    %26 = vector.shape_cast %23 : vector<5x64xbf16> to vector<1x5x64xbf16>
    tpu.vector_store %arg2[%c0_10, %c0_11, %c0_12], %26 {strides = array<i32>} : memref<1x5x64xbf16, #tpu.memory_space<vmem>>, vector<1x5x64xbf16>,
    return
  }
  func.func @transform_0(%arg0: i32) -> (i32, i32, i32) {
    %c0_i32 = arith.constant 0 : i32
    %c0_i32_0 = arith.constant 0 : i32
    %c0_i32_1 = arith.constant 0 : i32
    return %arg0, %c0_i32, %c0_i32_0 : i32, i32, i32
  }
  func.func @transform_1(%arg0: i32) -> (i32, i32, i32) {
    %c0_i32 = arith.constant 0 : i32
    %c0_i32_0 = arith.constant 0 : i32
    %c0_i32_1 = arith.constant 0 : i32
    return %arg0, %c0_i32, %c0_i32_0 : i32, i32, i32
  }
}

module attributes {stable_mosaic.version = 11 : i64} {
  func.func @kernel(%arg0: i32, %arg1: i32, %arg2: i32, %arg3: memref<40x64xbf16, #tpu.memory_space<vmem>>, %arg4: memref<64x64xbf16, #tpu.memory_space<vmem>>, %arg5: memref<1x64xf32, #tpu.memory_space<vmem>>, %arg6: memref<40x64xf32, #tpu.memory_space<vmem>>) attributes {dimension_semantics = [#tpu.dimension_semantics<parallel>, #tpu.dimension_semantics<parallel>, #tpu.dimension_semantics<arbitrary>], iteration_bounds = array<i64: 1, 1, 1>, scalar_prefetch = 0 : i64, scratch_operands = 0 : i64, tpu.core_type = #tpu.core_type<tc>, window_params = [{transform_indices = @transform_0, window_bounds = array<i64: 40, 64>}, {transform_indices = @transform_1, window_bounds = array<i64: 64, 64>}, {transform_indices = @transform_2, window_bounds = array<i64: 1, 64>}, {transform_indices = @transform_3, window_bounds = array<i64: 40, 64>}]} {
    %c0 = arith.constant 0 : index
    %c0_0 = arith.constant 0 : index
    %0 = vector.load %arg3[%c0, %c0_0] : memref<40x64xbf16, #tpu.memory_space<vmem>>, vector<40x64xbf16>
    %c0_1 = arith.constant 0 : index
    %c0_2 = arith.constant 0 : index
    %1 = vector.load %arg4[%c0_1, %c0_2] : memref<64x64xbf16, #tpu.memory_space<vmem>>, vector<64x64xbf16>
    %cst = arith.constant dense<0.000000e+00> : vector<40x64xf32>
    %2 = tpu.matmul %0, %1, %cst {dimension_numbers = #tpu.dot_dimension_numbers<[1], [0], [0], [1], [0, 0, 1, 1], [], []>} : vector<40x64xbf16>, vector<64x64xbf16>, vector<40x64xf32> -> vector<40x64xf32>
    %c0_3 = arith.constant 0 : index
    %c0_4 = arith.constant 0 : index
    %3 = vector.load %arg5[%c0_3, %c0_4] : memref<1x64xf32, #tpu.memory_space<vmem>>, vector<1x64xf32>
    %4 = vector.broadcast %3 : vector<1x64xf32> to vector<40x64xf32>
    %5 = arith.addf %2, %4 : vector<40x64xf32>
    %c0_5 = arith.constant 0 : index
    %c0_6 = arith.constant 0 : index
    %6 = vector.load %arg6[%c0_5, %c0_6] : memref<40x64xf32, #tpu.memory_space<vmem>>, vector<40x64xf32>
    tpu.vector_store %arg6[%c0_5, %c0_6], %5 {strides = array<i32>} : memref<40x64xf32, #tpu.memory_space<vmem>>, vector<40x64xf32>,
    return
  }
  func.func @transform_0(%arg0: i32, %arg1: i32, %arg2: i32) -> (i32, i32) {
    %c0_i32 = arith.constant 0 : i32
    return %arg0, %arg2 : i32, i32
  }
  func.func @transform_1(%arg0: i32, %arg1: i32, %arg2: i32) -> (i32, i32) {
    %c0_i32 = arith.constant 0 : i32
    return %arg2, %arg1 : i32, i32
  }
  func.func @transform_2(%arg0: i32, %arg1: i32, %arg2: i32) -> (i32, i32) {
    %c0_i32 = arith.constant 0 : i32
    %c0_i32_0 = arith.constant 0 : i32
    return %c0_i32, %arg1 : i32, i32
  }
  func.func @transform_3(%arg0: i32, %arg1: i32, %arg2: i32) -> (i32, i32) {
    %c0_i32 = arith.constant 0 : i32
    return %arg0, %arg1 : i32, i32
  }
}

module attributes {stable_mosaic.version = 11 : i64} {
  func.func @kernel(%arg0: i32, %arg1: i32, %arg2: i32, %arg3: memref<32x64xf32, #tpu.memory_space<vmem>>, %arg4: memref<64x128xbf16, #tpu.memory_space<vmem>>, %arg5: memref<1x128xf32, #tpu.memory_space<vmem>>, %arg6: memref<1x64xf32, #tpu.memory_space<vmem>>, %arg7: memref<1x64xf32, #tpu.memory_space<vmem>>, %arg8: memref<32x128xbf16, #tpu.memory_space<vmem>>) attributes {dimension_semantics = [#tpu.dimension_semantics<parallel>, #tpu.dimension_semantics<parallel>, #tpu.dimension_semantics<arbitrary>], iteration_bounds = array<i64: 1, 2, 1>, scalar_prefetch = 0 : i64, scratch_operands = 0 : i64, tpu.core_type = #tpu.core_type<tc>, window_params = [{transform_indices = @transform_0, window_bounds = array<i64: 32, 64>}, {transform_indices = @transform_1, window_bounds = array<i64: 64, 128>}, {transform_indices = @transform_2, window_bounds = array<i64: 1, 128>}, {transform_indices = @transform_3, window_bounds = array<i64: 1, 64>}, {transform_indices = @transform_4, window_bounds = array<i64: 1, 64>}, {transform_indices = @transform_5, window_bounds = array<i64: 32, 128>}]} {
    %c0 = arith.constant 0 : index
    %c0_0 = arith.constant 0 : index
    %0 = vector.load %arg3[%c0, %c0_0] : memref<32x64xf32, #tpu.memory_space<vmem>>, vector<32x64xf32>
    %c0_1 = arith.constant 0 : index
    %c0_2 = arith.constant 0 : index
    %1 = vector.load %arg6[%c0_1, %c0_2] : memref<1x64xf32, #tpu.memory_space<vmem>>, vector<1x64xf32>
    %2 = vector.broadcast %1 : vector<1x64xf32> to vector<32x64xf32>
    %3 = arith.mulf %0, %2 : vector<32x64xf32>
    %c0_3 = arith.constant 0 : index
    %c0_4 = arith.constant 0 : index
    %4 = vector.load %arg7[%c0_3, %c0_4] : memref<1x64xf32, #tpu.memory_space<vmem>>, vector<1x64xf32>
    %5 = vector.broadcast %4 : vector<1x64xf32> to vector<32x64xf32>
    %6 = arith.addf %3, %5 : vector<32x64xf32>
    %7 = arith.truncf %6 : vector<32x64xf32> to vector<32x64xbf16>
    %c0_5 = arith.constant 0 : index
    %c0_6 = arith.constant 0 : index
    %8 = vector.load %arg4[%c0_5, %c0_6] : memref<64x128xbf16, #tpu.memory_space<vmem>>, vector<64x128xbf16>
    %cst = arith.constant dense<0.000000e+00> : vector<32x128xf32>
    %9 = tpu.matmul %7, %8, %cst {dimension_numbers = #tpu.dot_dimension_numbers<[1], [0], [0], [1], [0, 0, 1, 1], [], []>} : vector<32x64xbf16>, vector<64x128xbf16>, vector<32x128xf32> -> vector<32x128xf32>
    %c0_7 = arith.constant 0 : index
    %c0_8 = arith.constant 0 : index
    %10 = vector.load %arg5[%c0_7, %c0_8] : memref<1x128xf32, #tpu.memory_space<vmem>>, vector<1x128xf32>
    %11 = vector.broadcast %10 : vector<1x128xf32> to vector<32x128xf32>
    %12 = arith.addf %9, %11 : vector<32x128xf32>
    %cst_9 = arith.constant 5.000000e-01 : f32
    %13 = vector.broadcast %cst_9 : f32 to vector<32x128xf32>
    %14 = arith.mulf %13, %12 : vector<32x128xf32>
    %cst_10 = arith.constant 0.707106769 : f32
    %15 = vector.broadcast %cst_10 : f32 to vector<32x128xf32>
    %16 = arith.mulf %12, %15 : vector<32x128xf32>
    %17 = math.erf %16 : vector<32x128xf32>
    %cst_11 = arith.constant 1.000000e+00 : f32
    %18 = vector.broadcast %cst_11 : f32 to vector<32x128xf32>
    %19 = arith.addf %18, %17 : vector<32x128xf32>
    %20 = arith.mulf %14, %19 : vector<32x128xf32>
    %21 = arith.truncf %20 : vector<32x128xf32> to vector<32x128xbf16>
    %c0_12 = arith.constant 0 : index
    %c0_13 = arith.constant 0 : index
    %22 = vector.load %arg8[%c0_12, %c0_13] : memref<32x128xbf16, #tpu.memory_space<vmem>>, vector<32x128xbf16>
    tpu.vector_store %arg8[%c0_12, %c0_13], %21 {strides = array<i32>} : memref<32x128xbf16, #tpu.memory_space<vmem>>, vector<32x128xbf16>,
    return
  }
  func.func @transform_0(%arg0: i32, %arg1: i32, %arg2: i32) -> (i32, i32) {
    %c0_i32 = arith.constant 0 : i32
    return %arg0, %arg2 : i32, i32
  }
  func.func @transform_1(%arg0: i32, %arg1: i32, %arg2: i32) -> (i32, i32) {
    %c0_i32 = arith.constant 0 : i32
    return %arg2, %arg1 : i32, i32
  }
  func.func @transform_2(%arg0: i32, %arg1: i32, %arg2: i32) -> (i32, i32) {
    %c0_i32 = arith.constant 0 : i32
    %c0_i32_0 = arith.constant 0 : i32
    return %c0_i32, %arg1 : i32, i32
  }
  func.func @transform_3(%arg0: i32, %arg1: i32, %arg2: i32) -> (i32, i32) {
    %c0_i32 = arith.constant 0 : i32
    %c0_i32_0 = arith.constant 0 : i32
    return %c0_i32, %arg2 : i32, i32
  }
  func.func @transform_4(%arg0: i32, %arg1: i32, %arg2: i32) -> (i32, i32) {
    %c0_i32 = arith.constant 0 : i32
    %c0_i32_0 = arith.constant 0 : i32
    return %c0_i32, %arg2 : i32, i32
  }
  func.func @transform_5(%arg0: i32, %arg1: i32, %arg2: i32) -> (i32, i32) {
    %c0_i32 = arith.constant 0 : i32
    return %arg0, %arg1 : i32, i32
  }
}

module attributes {stable_mosaic.version = 11 : i64} {
  func.func @kernel(%arg0: i32, %arg1: i32, %arg2: i32, %arg3: memref<32x256xbf16, #tpu.memory_space<vmem>>, %arg4: memref<256x64xbf16, #tpu.memory_space<vmem>>, %arg5: memref<1x64xf32, #tpu.memory_space<vmem>>, %arg6: memref<32x64xf32, #tpu.memory_space<vmem>>, %arg7: memref<32x64xf32, #tpu.memory_space<vmem>>) attributes {dimension_semantics = [#tpu.dimension_semantics<parallel>, #tpu.dimension_semantics<parallel>, #tpu.dimension_semantics<arbitrary>], iteration_bounds = array<i64: 1, 1, 1>, scalar_prefetch = 0 : i64, scratch_operands = 0 : i64, tpu.core_type = #tpu.core_type<tc>, window_params = [{transform_indices = @transform_0, window_bounds = array<i64: 32, 256>}, {transform_indices = @transform_1, window_bounds = array<i64: 256, 64>}, {transform_indices = @transform_2, window_bounds = array<i64: 1, 64>}, {transform_indices = @transform_3, window_bounds = array<i64: 32, 64>}, {transform_indices = @transform_4, window_bounds = array<i64: 32, 64>}]} {
    %c0 = arith.constant 0 : index
    %c0_0 = arith.constant 0 : index
    %0 = vector.load %arg3[%c0, %c0_0] : memref<32x256xbf16, #tpu.memory_space<vmem>>, vector<32x256xbf16>
    %c0_1 = arith.constant 0 : index
    %c0_2 = arith.constant 0 : index
    %1 = vector.load %arg4[%c0_1, %c0_2] : memref<256x64xbf16, #tpu.memory_space<vmem>>, vector<256x64xbf16>
    %cst = arith.constant dense<0.000000e+00> : vector<32x64xf32>
    %2 = tpu.matmul %0, %1, %cst {dimension_numbers = #tpu.dot_dimension_numbers<[1], [0], [0], [1], [0, 0, 1, 1], [], []>} : vector<32x256xbf16>, vector<256x64xbf16>, vector<32x64xf32> -> vector<32x64xf32>
    %c0_3 = arith.constant 0 : index
    %c0_4 = arith.constant 0 : index
    %3 = vector.load %arg5[%c0_3, %c0_4] : memref<1x64xf32, #tpu.memory_space<vmem>>, vector<1x64xf32>
    %4 = vector.broadcast %3 : vector<1x64xf32> to vector<32x64xf32>
    %5 = arith.addf %2, %4 : vector<32x64xf32>
    %c0_5 = arith.constant 0 : index
    %c0_6 = arith.constant 0 : index
    %6 = vector.load %arg6[%c0_5, %c0_6] : memref<32x64xf32, #tpu.memory_space<vmem>>, vector<32x64xf32>
    %7 = arith.addf %5, %6 : vector<32x64xf32>
    %c0_7 = arith.constant 0 : index
    %c0_8 = arith.constant 0 : index
    %8 = vector.load %arg7[%c0_7, %c0_8] : memref<32x64xf32, #tpu.memory_space<vmem>>, vector<32x64xf32>
    tpu.vector_store %arg7[%c0_7, %c0_8], %7 {strides = array<i32>} : memref<32x64xf32, #tpu.memory_space<vmem>>, vector<32x64xf32>,
    return
  }
  func.func @transform_0(%arg0: i32, %arg1: i32, %arg2: i32) -> (i32, i32) {
    %c0_i32 = arith.constant 0 : i32
    return %arg0, %arg2 : i32, i32
  }
  func.func @transform_1(%arg0: i32, %arg1: i32, %arg2: i32) -> (i32, i32) {
    %c0_i32 = arith.constant 0 : i32
    return %arg2, %arg1 : i32, i32
  }
  func.func @transform_2(%arg0: i32, %arg1: i32, %arg2: i32) -> (i32, i32) {
    %c0_i32 = arith.constant 0 : i32
    %c0_i32_0 = arith.constant 0 : i32
    return %c0_i32, %arg1 : i32, i32
  }
  func.func @transform_3(%arg0: i32, %arg1: i32, %arg2: i32) -> (i32, i32) {
    %c0_i32 = arith.constant 0 : i32
    return %arg0, %arg1 : i32, i32
  }
  func.func @transform_4(%arg0: i32, %arg1: i32, %arg2: i32) -> (i32, i32) {
    %c0_i32 = arith.constant 0 : i32
    return %arg0, %arg1 : i32, i32
  }
}

module attributes {stable_mosaic.version = 11 : i64} {
  func.func @kernel(%arg0: i32, %arg1: i32, %arg2: i32, %arg3: memref<8x64xf32, #tpu.memory_space<vmem>>, %arg4: memref<64x64xbf16, #tpu.memory_space<vmem>>, %arg5: memref<1x64xf32, #tpu.memory_space<vmem>>, %arg6: memref<1x64xf32, #tpu.memory_space<vmem>>, %arg7: memref<8x64xf32, #tpu.memory_space<vmem>>) attributes {dimension_semantics = [#tpu.dimension_semantics<parallel>, #tpu.dimension_semantics<parallel>, #tpu.dimension_semantics<arbitrary>], iteration_bounds = array<i64: 1, 1, 1>, scalar_prefetch = 0 : i64, scratch_operands = 0 : i64, tpu.core_type = #tpu.core_type<tc>, window_params = [{transform_indices = @transform_0, window_bounds = array<i64: 8, 64>}, {transform_indices = @transform_1, window_bounds = array<i64: 64, 64>}, {transform_indices = @transform_2, window_bounds = array<i64: 1, 64>}, {transform_indices = @transform_3, window_bounds = array<i64: 1, 64>}, {transform_indices = @transform_4, window_bounds = array<i64: 8, 64>}]} {
    %c0 = arith.constant 0 : index
    %c0_0 = arith.constant 0 : index
    %0 = vector.load %arg3[%c0, %c0_0] : memref<8x64xf32, #tpu.memory_space<vmem>>, vector<8x64xf32>
    %c0_1 = arith.constant 0 : index
    %c0_2 = arith.constant 0 : index
    %1 = vector.load %arg5[%c0_1, %c0_2] : memref<1x64xf32, #tpu.memory_space<vmem>>, vector<1x64xf32>
    %2 = vector.broadcast %1 : vector<1x64xf32> to vector<8x64xf32>
    %3 = arith.mulf %0, %2 : vector<8x64xf32>
    %c0_3 = arith.constant 0 : index
    %c0_4 = arith.constant 0 : index
    %4 = vector.load %arg6[%c0_3, %c0_4] : memref<1x64xf32, #tpu.memory_space<vmem>>, vector<1x64xf32>
    %5 = vector.broadcast %4 : vector<1x64xf32> to vector<8x64xf32>
    %6 = arith.addf %3, %5 : vector<8x64xf32>
    %7 = arith.truncf %6 : vector<8x64xf32> to vector<8x64xbf16>
    %c0_5 = arith.constant 0 : index
    %c0_6 = arith.constant 0 : index
    %8 = vector.load %arg4[%c0_5, %c0_6] : memref<64x64xbf16, #tpu.memory_space<vmem>>, vector<64x64xbf16>
    %cst = arith.constant dense<0.000000e+00> : vector<8x64xf32>
    %9 = tpu.matmul %7, %8, %cst {dimension_numbers = #tpu.dot_dimension_numbers<[1], [0], [0], [1], [0, 0, 1, 1], [], []>} : vector<8x64xbf16>, vector<64x64xbf16>, vector<8x64xf32> -> vector<8x64xf32>
    %c0_7 = arith.constant 0 : index
    %c0_8 = arith.constant 0 : index
    %10 = vector.load %arg7[%c0_7, %c0_8] : memref<8x64xf32, #tpu.memory_space<vmem>>, vector<8x64xf32>
    tpu.vector_store %arg7[%c0_7, %c0_8], %9 {strides = array<i32>} : memref<8x64xf32, #tpu.memory_space<vmem>>, vector<8x64xf32>,
    return
  }
  func.func @transform_0(%arg0: i32, %arg1: i32, %arg2: i32) -> (i32, i32) {
    %c0_i32 = arith.constant 0 : i32
    return %arg0, %arg2 : i32, i32
  }
  func.func @transform_1(%arg0: i32, %arg1: i32, %arg2: i32) -> (i32, i32) {
    %c0_i32 = arith.constant 0 : i32
    return %arg2, %arg1 : i32, i32
  }
  func.func @transform_2(%arg0: i32, %arg1: i32, %arg2: i32) -> (i32, i32) {
    %c0_i32 = arith.constant 0 : i32
    %c0_i32_0 = arith.constant 0 : i32
    return %c0_i32, %arg2 : i32, i32
  }
  func.func @transform_3(%arg0: i32, %arg1: i32, %arg2: i32) -> (i32, i32) {
    %c0_i32 = arith.constant 0 : i32
    %c0_i32_0 = arith.constant 0 : i32
    return %c0_i32, %arg2 : i32, i32
  }
  func.func @transform_4(%arg0: i32, %arg1: i32, %arg2: i32) -> (i32, i32) {
    %c0_i32 = arith.constant 0 : i32
    return %arg0, %arg1 : i32, i32
  }
}

module attributes {stable_mosaic.version = 11 : i64} {
  func.func @kernel(%arg0: i32, %arg1: i32, %arg2: i32, %arg3: memref<8x64xf32, #tpu.memory_space<vmem>>, %arg4: memref<64x32xbf16, #tpu.memory_space<vmem>>, %arg5: memref<1x64xf32, #tpu.memory_space<vmem>>, %arg6: memref<1x64xf32, #tpu.memory_space<vmem>>, %arg7: memref<8x32xf32, #tpu.memory_space<vmem>>) attributes {dimension_semantics = [#tpu.dimension_semantics<parallel>, #tpu.dimension_semantics<parallel>, #tpu.dimension_semantics<arbitrary>], iteration_bounds = array<i64: 1, 1, 1>, scalar_prefetch = 0 : i64, scratch_operands = 0 : i64, tpu.core_type = #tpu.core_type<tc>, window_params = [{transform_indices = @transform_0, window_bounds = array<i64: 8, 64>}, {transform_indices = @transform_1, window_bounds = array<i64: 64, 32>}, {transform_indices = @transform_2, window_bounds = array<i64: 1, 64>}, {transform_indices = @transform_3, window_bounds = array<i64: 1, 64>}, {transform_indices = @transform_4, window_bounds = array<i64: 8, 32>}]} {
    %c0 = arith.constant 0 : index
    %c0_0 = arith.constant 0 : index
    %0 = vector.load %arg3[%c0, %c0_0] : memref<8x64xf32, #tpu.memory_space<vmem>>, vector<8x64xf32>
    %cst = arith.constant dense<0.000000e+00> : vector<8xf32>
    %1 = vector.multi_reduction <add>, %0, %cst [1] : vector<8x64xf32> to vector<8xf32>
    %2 = vector.shape_cast %1 : vector<8xf32> to vector<8x1xf32>
    %cst_1 = arith.constant 6.400000e+01 : f32
    %3 = vector.broadcast %cst_1 : f32 to vector<8x1xf32>
    %4 = arith.divf %2, %3 : vector<8x1xf32>
    %5 = vector.broadcast %4 : vector<8x1xf32> to vector<8x64xf32>
    %6 = arith.subf %0, %5 : vector<8x64xf32>
    %7 = arith.mulf %6, %6 : vector<8x64xf32>
    %cst_2 = arith.constant dense<0.000000e+00> : vector<8xf32>
    %8 = vector.multi_reduction <add>, %7, %cst_2 [1] : vector<8x64xf32> to vector<8xf32>
    %9 = vector.shape_cast %8 : vector<8xf32> to vector<8x1xf32>
    %cst_3 = arith.constant 6.400000e+01 : f32
    %10 = vector.broadcast %cst_3 : f32 to vector<8x1xf32>
    %11 = arith.divf %9, %10 : vector<8x1xf32>
    %12 = vector.broadcast %4 : vector<8x1xf32> to vector<8x64xf32>
    %13 = arith.subf %0, %12 : vector<8x64xf32>
    %cst_4 = arith.constant 9.99999974E-6 : f32
    %14 = vector.broadcast %cst_4 : f32 to vector<8x1xf32>
    %15 = arith.addf %11, %14 : vector<8x1xf32>
    %16 = math.rsqrt %15 : vector<8x1xf32>
    %17 = vector.broadcast %16 : vector<8x1xf32> to vector<8x64xf32>
    %18 = arith.mulf %13, %17 : vector<8x64xf32>
    %c0_5 = arith.constant 0 : index
    %c0_6 = arith.constant 0 : index
    %19 = vector.load %arg5[%c0_5, %c0_6] : memref<1x64xf32, #tpu.memory_space<vmem>>, vector<1x64xf32>
    %20 = vector.broadcast %19 : vector<1x64xf32> to vector<8x64xf32>
    %21 = arith.mulf %18, %20 : vector<8x64xf32>
    %c0_7 = arith.constant 0 : index
    %c0_8 = arith.constant 0 : index
    %22 = vector.load %arg6[%c0_7, %c0_8] : memref<1x64xf32, #tpu.memory_space<vmem>>, vector<1x64xf32>
    %23 = vector.broadcast %22 : vector<1x64xf32> to vector<8x64xf32>
    %24 = arith.addf %21, %23 : vector<8x64xf32>
    %25 = arith.truncf %24 : vector<8x64xf32> to vector<8x64xbf16>
    %c0_9 = arith.constant 0 : index
    %c0_10 = arith.constant 0 : index
    %26 = vector.load %arg4[%c0_9, %c0_10] : memref<64x32xbf16, #tpu.memory_space<vmem>>, vector<64x32xbf16>
    %cst_11 = arith.constant dense<0.000000e+00> : vector<8x32xf32>
    %27 = tpu.matmul %25, %26, %cst_11 {dimension_numbers = #tpu.dot_dimension_numbers<[1], [0], [0], [1], [0, 0, 1, 1], [], []>} : vector<8x64xbf16>, vector<64x32xbf16>, vector<8x32xf32> -> vector<8x32xf32>
    %c0_12 = arith.constant 0 : index
    %c0_13 = arith.constant 0 : index
    %28 = vector.load %arg7[%c0_12, %c0_13] : memref<8x32xf32, #tpu.memory_space<vmem>>, vector<8x32xf32>
    tpu.vector_store %arg7[%c0_12, %c0_13], %27 {strides = array<i32>} : memref<8x32xf32, #tpu.memory_space<vmem>>, vector<8x32xf32>,
    return
  }
  func.func @transform_0(%arg0: i32, %arg1: i32, %arg2: i32) -> (i32, i32) {
    %c0_i32 = arith.constant 0 : i32
    return %arg0, %arg2 : i32, i32
  }
  func.func @transform_1(%arg0: i32, %arg1: i32, %arg2: i32) -> (i32, i32) {
    %c0_i32 = arith.constant 0 : i32
    return %arg2, %arg1 : i32, i32
  }
  func.func @transform_2(%arg0: i32, %arg1: i32, %arg2: i32) -> (i32, i32) {
    %c0_i32 = arith.constant 0 : i32
    %c0_i32_0 = arith.constant 0 : i32
    return %c0_i32, %arg2 : i32, i32
  }
  func.func @transform_3(%arg0: i32, %arg1: i32, %arg2: i32) -> (i32, i32) {
    %c0_i32 = arith.constant 0 : i32
    %c0_i32_0 = arith.constant 0 : i32
    return %c0_i32, %arg2 : i32, i32
  }
  func.func @transform_4(%arg0: i32, %arg1: i32, %arg2: i32) -> (i32, i32) {
    %c0_i32 = arith.constant 0 : i32
    return %arg0, %arg1 : i32, i32
  }
}

</mosaic_0001>

<bundles_post_ra>
// kernel: _lambda_.39
= control target key start
LH: loop header
LB: loop body
LE: loop exit
PB: predicated region body
PF: predicated region fallthrough
CT: control target
= control target key end

     0   :  { %vm120_vm0 = vcmask 523264   ;;  %s336_s1 = inlined_call_operand.vmem [shape: bf16[192,64], index: 1, kind: input, shape index: {}]   ;;  %s337_s0 = inlined_call_operand.vmem [shape: f32[32,192], index: 0, kind: input, shape index: {}]   ;;  %s338_s2 = inlined_call_operand.vmem [shape: f32[32,64], index: 2, kind: output, shape index: {}]  }
   0x1   :  { %v230_v0 = vld [vmem:[%s336_s1 + $0x38] sm:$0xff]  ;;  %v229_v2 = vld [vmem:[%s336_s1 + $0x30] sm:$0xff]  ;;  %v228_v4 = vld [vmem:[%s336_s1 + $0x28] sm:$0xff] }
   0x2   :  { %v234_v1 = vld [vmem:[%s336_s1 + $0x58] sm:$0xff]  ;;  %127 = vmatpush.bf16.msra.mxu0 %v230_v0  ;;  %235 = vmatpush.bf16.msra.mxu2 %v230_v0  ;;  %v233_v3 = vld [vmem:[%s336_s1 + $0x50] sm:$0xff]  ;;  %v232_v5 = vld [vmem:[%s336_s1 + $0x48] sm:$0xff] }
   0x3   :  { %150 = vmatpush.bf16.msra.mxu1 %v234_v1  ;;  %v227_v6 = vld [vmem:[%s336_s1 + $0x20] sm:$0xff]  ;;  %v13_v8 = vld [vmem:[%s337_s0 + $0x8] sm:$0xff]  ;;  %v15_v9 = vld [vmem:[%s337_s0 + $0x18] sm:$0xff] }
   0x4   :  { %v231_v7 = vld [vmem:[%s336_s1 + $0x40] sm:$0xff]  ;;  %v21_v10 = vpack.c.bf16 %v15_v9, %v13_v8  ;;  %v226_v11 = vld [vmem:[%s336_s1 + $0x18] sm:$0xff]  ;;  %v225_v12 = vld [vmem:[%s336_s1 + $0x10] sm:$0xff] }
   0x5   :  { %v224_v13 = vld [vmem:[%s336_s1 + $0x8] sm:$0xff]  ;;  %v223_v14 = vld [vmem:[%s336_s1] sm:$0xff]  ;;  %v14_v16 = vld [vmem:[%s337_s0 + $0x10] sm:$0xff] }
   0x6   :  { %128 = vmatpush.bf16.msra.mxu0 %v229_v2  ;;  %236 = vmatpush.bf16.msra.mxu2 %v229_v2  ;;  %v12_v15 = vld [vmem:[%s337_s0] sm:$0xff]  ;;  %v18_v18 = vld [vmem:[%s337_s0 + $0x30] sm:$0xff]  ;;  %v17_v19 = vld [vmem:[%s337_s0 + $0x28] sm:$0xff] }
   0x7   :  { %151 = vmatpush.bf16.msra.mxu1 %v233_v3  ;;  %v16_v17 = vld [vmem:[%s337_s0 + $0x20] sm:$0xff]  ;;  %v19_v20 = vld [vmem:[%s337_s0 + $0x38] sm:$0xff]  ;;  %v20_v21 = vpack.c.bf16 %v14_v16, %v12_v15 }
   0x8   :  { %v22_v22 = vpack.c.bf16 %v18_v18, %v16_v17  ;;  %v23_v23 = vpack.c.bf16 %v19_v20, %v17_v19 }
   0xa   :  { %129 = vmatpush.bf16.msra.mxu0 %v228_v4  ;;  %237 = vmatpush.bf16.msra.mxu2 %v228_v4 }
   0xb   :  { %152 = vmatpush.bf16.msra.mxu1 %v232_v5 }
   0xe   :  { %130 = vmatpush.bf16.msra.mxu0 %v227_v6  ;;  %238 = vmatpush.bf16.msra.mxu2 %v227_v6 }
   0xf   :  { %153 = vmatpush.bf16.msra.mxu1 %v231_v7 }
  0x12   :  { %221 = vmatmul.msk.bf16.vlgmr.msra.gmra.mxu1 %vm120_vm0, %v21_v10  ;;  %131 = vmatpush.bf16.msra.mxu0 %v226_v11 }
  0x13   :  { %239 = vmatpush.bf16.msra.mxu2 %v226_v11 }
  0x16   :  { %132 = vmatpush.bf16.msra.mxu0 %v225_v12 }
  0x17   :  { %240 = vmatpush.bf16.msra.mxu2 %v225_v12 }
  0x1a   :  { %133 = vmatpush.bf16.msra.mxu0 %v224_v13 }
  0x1b   :  { %241 = vmatpush.bf16.msra.mxu2 %v224_v13 }
  0x1e   :  { %134 = vmatpush.bf16.msra.mxu0 %v223_v14 }
  0x1f   :  { %242 = vmatpush.bf16.msra.mxu2 %v223_v14 }
  0x21   :  { %135 = vmatmul.bf16.vlgmr.msra.gmra.mxu0 %v20_v21 }
  0x22   :  { %140 = vmatmul.bf16.vlgmr.msra.gmra.mxu2 %v22_v22  ;;  %222 = vmatmul.msk.bf16.gmra.mxu1 %vm120_vm0, %v23_v23 }
  0x8f   :  { %v155_v24 = vpop.f32.mrf.mxu1 }
  0x97   :  { %v157_v25 = vpop.f32.mrf.mxu1 }
  0x9e   :  { %v136_v26 = vpop.f32.mrf.mxu0 }
  0x9f   :  { %v156_v27 = vadd.f32 %v155_v24, %v136_v26  ;;  %v160_v28 = vpop.f32.mrf.mxu1 }
  0xa1   :  { %165 = vst.msk [vmem:[%s338_s2] sm:$0xff] %vm120_vm0, %v156_v27 }
  0xa5   :  { %v141_v29 = vpop.f32.mrf.mxu2 }
  0xa6   :  { %v161_v30 = vadd.f32 %v160_v28, %v141_v29  ;;  %v138_v31 = vpop.f32.mrf.mxu0 }
  0xa7   :  { %v158_v32 = vadd.f32 %v157_v25, %v138_v31  ;;  %v162_v33 = vpop.f32.mrf.mxu1 }
  0xa8   :  { %167 = vst.msk [vmem:[%s338_s2 + $0x10] sm:$0xff] %vm120_vm0, %v161_v30 }
  0xa9   :  { %166 = vst.msk [vmem:[%s338_s2 + $0x8] sm:$0xff] %vm120_vm0, %v158_v32 }
  0xad   :  { %v143_v34 = vpop.f32.mrf.mxu2 }
  0xae   :  { %v163_v35 = vadd.f32 %v162_v33, %v143_v34 }
  0xb0   :  { %168 = vst.msk [vmem:[%s338_s2 + $0x18] sm:$0xff] %vm120_vm0, %v163_v35 }

// kernel: _lambda_.40
= control target key start
LH: loop header
LB: loop body
LE: loop exit
PB: predicated region body
PF: predicated region fallthrough
CT: control target
= control target key end

     0   :  { %s386_s18 = smov 0   ;;  %s422_s0 = inlined_call_operand.vmem [shape: f32[8,4,64], index: 0, kind: input, shape index: {}]   ;;  %s423_s1 = inlined_call_operand.vmem [shape: f32[1,64], index: 1, kind: input, shape index: {}]   ;;  %s424_s2 = inlined_call_operand.vmem [shape: f32[5,64], index: 2, kind: input, shape index: {}]   ;;  %s425_s3 = inlined_call_operand.vmem [shape: f32[1,64], index: 3, kind: input, shape index: {}]   ;;  %s426_s4 = inlined_call_operand.vmem [shape: f32[1,64], index: 4, kind: input, shape index: {}]   ;;  %s427_s5 = inlined_call_operand.vmem [shape: f32[8,5,64], index: 5, kind: output, shape index: {}]  }
   0x1 LB: > { %s323_s19 = sadd.s32 4294967295, %s353_s18   ;;  %p327_p0 = scmp.ge.s32.totalorder %s353_s18, 1  ;;  %s353_s18 = sphi %s386_s18, %s15_s18  }
   0x2   : > { %p186_p1 = scmp.lt.s32.totalorder %s353_s18, 9 }
   0x4   : > { %p187_p2 = pnand %p327_p0, %p186_p1 }
   0x5   : > { %p212_p3 = scmp.lt.s32.totalorder (!%p187_p2), %s323_s19, 7 }
   0x6   : > { %190 = sbr.rel (%p187_p2) target bundleno = 289 (0x121), region = 40 }
   0xb   : > { %s429_s19 = smov (!%p212_p3, %s323_s19), 7  ;;  %v220_v0 = vld [vmem:[%s423_s1] sm:$0x1]  ;;  %vm225_vm0 = vcmask 1040384   ;;  %vm229_vm1 = vcmask 520192   ;;  %v355_v7 = vmov 64.0  }
   0xc   : > { %s328_s20 = sshll.u32 %s429_s19, 2  ;;  %v227_v3 = vld [vmem:[%s424_s2] sm:$0x1f]  ;;  %343 = vrcp.f32 %v355_v7  ;;  %s329_s30 = sshll.u32 %s429_s19, 3 }
   0xd   : > { %s215_s23 = scalar_lea.vmem %s422_s0, %s328_s20  ;;  %v341_v28 = vld [vmem:[%s425_s3] ss:$0 sm:$0xff]  ;;  %s219_s10 = scalar_lea.vmem %s427_s5, %s329_s30 }
   0xe   : > { %v221_v1 = vld [vmem:[%s215_s23] sm:$0xf] }
   0xf   : > { %v223_v2 = vrot.slane %v221_v1, 7  ;;  %v342_v30 = vld [vmem:[%s426_s4] ss:$0 sm:$0xff] }
  0x11   : > { %v226_v4 = vsel %vm225_vm0, %v220_v0, %v223_v2 }
  0x12   : > { %v228_v5 = vadd.f32 %v227_v3, %v226_v4  ;;  %v344_v8 = vpop.eup %343 }
  0x13   : > { %v234_v9 = vmul.f32 64.0, %v344_v8  ;;  %vm238_vm2 = vweird.f32 %v344_v8 }
  0x14   : > { %v230_v6 = vsel %vm229_vm1, %v228_v5, 0.0 }
  0x15   : > { %231 = vadd.xlane.f32.xlu0 %v230_v6  ;;  %v235_v10 = vsub.f32 1.0, %v234_v9 }
  0x17   : > { %v236_v11 = vmul.f32 %v344_v8, %v235_v10 }
  0x19   : > { %v237_v12 = vadd.f32 %v344_v8, %v236_v11 }
  0x1b   : > { %v239_v13 = vsel %vm238_vm2, %v344_v8, %v237_v12 }
  0x88   : > { %v232_v14 = vpop.xlane.xlu0 %231 }
  0x89   : > { %v240_v15 = vmul.f32 %v239_v13, %v232_v14 }
  0x8b   : > { %v241_v16 = vsub.f32 %v228_v5, %v240_v15 }
  0x8d   : > { %v242_v17 = vmul.f32 %v241_v16, %v241_v16 }
  0x8f   : > { %v243_v18 = vsel %vm229_vm1, %v242_v17, 0.0 }
  0x90   : > { %244 = vadd.xlane.f32.xlu0 %v243_v18 }
 0x103   : > { %v245_v19 = vpop.xlane.xlu0 %244 }
 0x104   : > { %v246_v20 = vmul.f32 %v245_v19, %v239_v13 }
 0x106   : > { %v247_v21 = vadd.f32 1e-05, %v246_v20 }
 0x108   : > { %345 = vrsqrt.f32 %v247_v21  ;;  %vm254_vm4 = vweird.f32 %v247_v21 }
 0x10e   : > { %v346_v22 = vpop.eup %345 }
 0x10f   : > { %v249_v23 = vmul.f32 %v346_v22, %v247_v21  ;;  %vm255_vm3 = vweird.f32 %v346_v22 }
 0x110   : > { %vm256_vm5 = vmor %vm254_vm4, %vm255_vm3 }
 0x111   : > { %v250_v24 = vmul.f32 %v346_v22, %v249_v23 }
 0x113   : > { %v251_v25 = vmul.f32 0.5, %v250_v24 }
 0x115   : > { %v252_v26 = vsub.f32 1.5, %v251_v25 }
 0x117   : > { %v253_v27 = vmul.f32 %v346_v22, %v252_v26 }
 0x119   : > { %v257_v29 = vsel %vm256_vm5, %v346_v22, %v253_v27 }
 0x11a   : > { %v258_v31 = vmul.f32 %v257_v29, %v241_v16 }
 0x11c   : > { %v263_v32 = vmul.f32 %v341_v28, %v258_v31 }
 0x11e   : > { %v268_v33 = vadd.f32 %v342_v30, %v263_v32 }
 0x120   : > { %269 = vst.msk [vmem:[%s219_s10] sm:$0x1f] %vm229_vm1, %v268_v33 }
 0x121 PF: > { %s15_s18 = sadd.s32 1, %s353_s18  }
 0x122   : > { %p12_p4 = scmp.ge.s32.totalorder %s15_s18, 10  }
 0x124   :  { %14 = sbr.rel (!%p12_p4) target bundleno = 1 (0x1), region = 70 }

// kernel: _lambda_.41
= control target key start
LH: loop header
LB: loop body
LE: loop exit
PB: predicated region body
PF: predicated region fallthrough
CT: control target
= control target key end

     0   :  { %vm26_vm0 = vcmask 523264   ;;  %v360_v10 = vmov 64.0   ;;  %s563_s0 = inlined_call_operand.vmem [shape: f32[40,64], index: 0, kind: input, shape index: {}]   ;;  %s564_s3 = inlined_call_operand.vmem [shape: f32[1,64], index: 3, kind: input, shape index: {}]   ;;  %s565_s4 = inlined_call_operand.vmem [shape: f32[1,64], index: 4, kind: input, shape index: {}]   ;;  %s566_s1 = inlined_call_operand.vmem [shape: bf16[64,192], index: 1, kind: input, shape index: {}]   ;;  %s567_s2 = inlined_call_operand.vmem [shape: f32[1,192], index: 2, kind: input, shape index: {}]   ;;  %s568_s5 = inlined_call_operand.vmem [shape: bf16[40,192], index: 5, kind: output, shape index: {}]  }
   0x1   :  { %v25_v0 = vld [vmem:[%s563_s0 + $0x20] sm:$0xff]  ;;  %v23_v1 = vld [vmem:[%s563_s0 + $0x10] sm:$0xff]  ;;  %v22_v4 = vld [vmem:[%s563_s0 + $0x8] sm:$0xff]  ;;  %348 = vrcp.f32 %v360_v10 }
   0x2   :  { %v39_v2 = vsel %vm26_vm0, %v25_v0, 0.0  ;;  %v33_v3 = vsel %vm26_vm0, %v23_v1, 0.0  ;;  %v30_v5 = vsel %vm26_vm0, %v22_v4, 0.0  ;;  %v24_v6 = vld [vmem:[%s563_s0 + $0x18] sm:$0xff]  ;;  %v21_v7 = vld [vmem:[%s563_s0] sm:$0xff] }
   0x3   :  { %40 = vadd.xlane.f32.xlu1 %v39_v2  ;;  %34 = vadd.xlane.f32.xlu0 %v33_v3  ;;  %v36_v8 = vsel %vm26_vm0, %v24_v6, 0.0  ;;  %v27_v9 = vsel %vm26_vm0, %v21_v7, 0.0  ;;  %v317_v42 = vld [vmem:[%s566_s1 + $0x30] sm:$0xf]  ;;  %v336_v43 = vld [vmem:[%s566_s1 + $0x34] sm:$0xf0] }
   0x4   :  { %31 = vadd.xlane.f32.xlu2 %v30_v5  ;;  %v335_v44 = vld [vmem:[%s566_s1 + $0x34] sm:$0xf]  ;;  %v318_v45 = vor.u32 %v336_v43, %v317_v42  ;;  %v319_v46 = vld [vmem:[%s566_s1 + $0x38] sm:$0xf0]  ;;  %v309_v48 = vld [vmem:[%s566_s1 + $0x20] sm:$0xf] }
   0x5   :  { %v322_v47 = vor.u32 %v335_v44, %v319_v46  ;;  %v334_v49 = vld [vmem:[%s566_s1 + $0x24] sm:$0xf0]  ;;  %v333_v50 = vld [vmem:[%s566_s1 + $0x24] sm:$0xf]  ;;  %v311_v52 = vld [vmem:[%s566_s1 + $0x28] sm:$0xf0] }
   0x6   :  { %337 = vmatpush.bf16.msra.mxu2 %v318_v45  ;;  %232 = vmatpush.bf16.msra.mxu0 %v318_v45  ;;  %v310_v51 = vor.u32 %v334_v49, %v309_v48  ;;  %v314_v53 = vor.u32 %v333_v50, %v311_v52  ;;  %v301_v54 = vld [vmem:[%s566_s1 + $0x10] sm:$0xf]  ;;  %v332_v55 = vld [vmem:[%s566_s1 + $0x14] sm:$0xf0]  ;;  %v331_v56 = vld [vmem:[%s566_s1 + $0x14] sm:$0xf] }
   0x7   :  { %v349_v11 = vpop.eup %348  ;;  %341 = vmatpush.bf16.msra.mxu3 %v322_v47  ;;  %255 = vmatpush.bf16.msra.mxu1 %v322_v47  ;;  %v302_v57 = vor.u32 %v332_v55, %v301_v54  ;;  %v303_v58 = vld [vmem:[%s566_s1 + $0x18] sm:$0xf0]  ;;  %v329_v2 = vld [vmem:[%s566_s1 + $0x4] sm:$0xf]  ;;  %v295_v5 = vld [vmem:[%s566_s1 + $0x8] sm:$0xf0] }
   0x8   :  { %v43_v12 = vmul.f32 64.0, %v349_v11  ;;  %vm47_vm1 = vweird.f32 %v349_v11  ;;  %v306_v61 = vor.u32 %v331_v56, %v303_v58  ;;  %v346_v45 = vld [vmem:[%s564_s3] ss:$0 sm:$0xff] }
   0x9   :  { %v347_v54 = vld [vmem:[%s565_s4] ss:$0 sm:$0xff] }
   0xa   :  { %v44_v13 = vsub.f32 1.0, %v43_v12  ;;  %338 = vmatpush.bf16.msra.mxu2 %v310_v51  ;;  %233 = vmatpush.bf16.msra.mxu0 %v310_v51 }
   0xb   :  { %37 = vadd.xlane.f32.xlu0 %v36_v8  ;;  %28 = vadd.xlane.f32.xlu1 %v27_v9 }
   0xc   :  { %v45_v14 = vmul.f32 %v349_v11, %v44_v13  ;;  %342 = vmatpush.bf16.msra.mxu3 %v314_v53  ;;  %256 = vmatpush.bf16.msra.mxu1 %v314_v53 }
   0xe   :  { %v46_v15 = vadd.f32 %v349_v11, %v45_v14  ;;  %339 = vmatpush.bf16.msra.mxu2 %v302_v57  ;;  %234 = vmatpush.bf16.msra.mxu0 %v302_v57 }
  0x10   :  { %v411_v16 = vsel %vm47_vm1, %v349_v11, %v46_v15  ;;  %343 = vmatpush.bf16.msra.mxu3 %v306_v61  ;;  %257 = vmatpush.bf16.msra.mxu1 %v306_v61 }
  0x76   :  { %v41_v17 = vpop.xlane.xlu1 %40  ;;  %v35_v18 = vpop.xlane.xlu0 %34 }
  0x77   :  { %v53_v19 = vmul.f32 %v411_v16, %v41_v17  ;;  %v51_v20 = vmul.f32 %v411_v16, %v35_v18  ;;  %v32_v25 = vpop.xlane.xlu2 %31 }
  0x78   :  { %v50_v32 = vmul.f32 %v411_v16, %v32_v25 }
  0x79   :  { %v415_v21 = vsub.f32 %v25_v0, %v53_v19  ;;  %v417_v22 = vsub.f32 %v23_v1, %v51_v20  ;;  %v293_v0 = vld [vmem:[%s566_s1] sm:$0xf]  ;;  %v330_v1 = vld [vmem:[%s566_s1 + $0x4] sm:$0xf0] }
  0x7a   :  { %v434_v36 = vsub.f32 %v22_v4, %v50_v32  ;;  %v294_v4 = vor.u32 %v330_v1, %v293_v0 }
  0x7b   :  { %v61_v23 = vmul.f32 %v417_v22, %v417_v22  ;;  %v63_v24 = vmul.f32 %v415_v21, %v415_v21 }
  0x7c   :  { %v60_v40 = vmul.f32 %v434_v36, %v434_v36  ;;  %340 = vmatpush.bf16.msra.mxu2 %v294_v4  ;;  %235 = vmatpush.bf16.msra.mxu0 %v294_v4 }
  0x7d   :  { %v70_v26 = vsel %vm26_vm0, %v61_v23, 0.0  ;;  %v76_v27 = vsel %vm26_vm0, %v63_v24, 0.0 }
  0x7e   :  { %v38_v28 = vpop.xlane.xlu0 %37  ;;  %71 = vadd.xlane.f32.xlu2 %v70_v26  ;;  %77 = vadd.xlane.f32.xlu1 %v76_v27  ;;  %v29_v29 = vpop.xlane.xlu1 %28  ;;  %v67_v41 = vsel %vm26_vm0, %v60_v40, 0.0 }
  0x7f   :  { %v52_v30 = vmul.f32 %v411_v16, %v38_v28  ;;  %v49_v31 = vmul.f32 %v411_v16, %v29_v29 }
  0x81   :  { %v428_v33 = vsub.f32 %v24_v6, %v52_v30  ;;  %v430_v34 = vsub.f32 %v21_v7, %v49_v31  ;;  %v298_v6 = vor.u32 %v329_v2, %v295_v5 }
  0x83   :  { %v62_v35 = vmul.f32 %v428_v33, %v428_v33  ;;  %v59_v37 = vmul.f32 %v430_v34, %v430_v34  ;;  %344 = vmatpush.bf16.msra.mxu3 %v298_v6  ;;  %258 = vmatpush.bf16.msra.mxu1 %v298_v6 }
  0x85   :  { %v73_v38 = vsel %vm26_vm0, %v62_v35, 0.0  ;;  %v64_v39 = vsel %vm26_vm0, %v59_v37, 0.0 }
  0x86   :  { %74 = vadd.xlane.f32.xlu0 %v73_v38  ;;  %65 = vadd.xlane.f32.xlu2 %v64_v39 }
  0x8e   :  { %68 = vadd.xlane.f32.xlu0 %v67_v41 }
  0xf1   :  { %v72_v59 = vpop.xlane.xlu2 %71  ;;  %v78_v60 = vpop.xlane.xlu1 %77 }
  0xf2   :  { %v81_v62 = vmul.f32 %v72_v59, %v411_v16  ;;  %v83_v63 = vmul.f32 %v78_v60, %v411_v16 }
  0xf4   :  { %v86_v3 = vadd.f32 1e-05, %v81_v62  ;;  %v493_v7 = vadd.f32 1e-05, %v83_v63 }
  0xf6   :  { %350 = vrsqrt.f32 %v86_v3  ;;  %vm115_vm3 = vweird.f32 %v86_v3  ;;  %vm135_vm11 = vweird.f32 %v493_v7 }
  0xf7   :  { %352 = vrsqrt.f32 %v493_v7 }
  0xf9   :  { %v75_v8 = vpop.xlane.xlu0 %74  ;;  %v66_v9 = vpop.xlane.xlu2 %65 }
  0xfa   :  { %v82_v10 = vmul.f32 %v75_v8, %v411_v16  ;;  %v79_v11 = vmul.f32 %v66_v9, %v411_v16 }
  0xfc   :  { %v351_v12 = vpop.eup %350  ;;  %v87_v13 = vadd.f32 1e-05, %v82_v10  ;;  %v84_v14 = vadd.f32 1e-05, %v79_v11 }
  0xfd   :  { %v110_v15 = vmul.f32 %v351_v12, %v86_v3  ;;  %v498_v18 = vpop.eup %352  ;;  %vm116_vm2 = vweird.f32 %v351_v12 }
  0xfe   :  { %354 = vrsqrt.f32 %v87_v13  ;;  %v130_v25 = vmul.f32 %v498_v18, %v493_v7  ;;  %vm117_vm4 = vmor %vm115_vm3, %vm116_vm2  ;;  %vm95_vm6 = vweird.f32 %v84_v14  ;;  %vm125_vm8 = vweird.f32 %v87_v13 }
  0xff   :  { %v111_v17 = vmul.f32 %v351_v12, %v110_v15  ;;  %356 = vrsqrt.f32 %v84_v14  ;;  %vm136_vm12 = vweird.f32 %v498_v18  ;;  %vm279_vm2 = vcmask 1043456  }
 0x100   :  { %v131_v32 = vmul.f32 %v498_v18, %v130_v25  ;;  %vm137_vm15 = vmor %vm135_vm11, %vm136_vm12  ;;  %vm280_vm3 = vcmask 523268  }
 0x101   :  { %v112_v19 = vmul.f32 0.5, %v111_v17  ;;  %v69_v20 = vpop.xlane.xlu0 %68 }
 0x102   :  { %v80_v23 = vmul.f32 %v69_v20, %v411_v16  ;;  %v132_v40 = vmul.f32 0.5, %v131_v32 }
 0x103   :  { %v113_v24 = vsub.f32 1.5, %v112_v19 }
 0x104   :  { %v355_v26 = vpop.eup %354  ;;  %v85_v27 = vadd.f32 1e-05, %v80_v23  ;;  %v133_v50 = vsub.f32 1.5, %v132_v40 }
 0x105   :  { %v357_v28 = vpop.eup %356  ;;  %v114_v29 = vmul.f32 %v351_v12, %v113_v24  ;;  %v120_v30 = vmul.f32 %v355_v26, %v87_v13  ;;  %vm126_vm5 = vweird.f32 %v355_v26 }
 0x106   :  { %v90_v31 = vmul.f32 %v357_v28, %v84_v14  ;;  %358 = vrsqrt.f32 %v85_v27  ;;  %vm96_vm7 = vweird.f32 %v357_v28  ;;  %vm127_vm9 = vmor %vm125_vm8, %vm126_vm5  ;;  %v134_v58 = vmul.f32 %v498_v18, %v133_v50 }
 0x107   :  { %v121_v35 = vmul.f32 %v355_v26, %v120_v30  ;;  %v118_v38 = vsel %vm117_vm4, %v351_v12, %v114_v29  ;;  %vm508_vm10 = vmor %vm95_vm6, %vm96_vm7  ;;  %vm105_vm13 = vweird.f32 %v85_v27 }
 0x108   :  { %v91_v37 = vmul.f32 %v357_v28, %v90_v31  ;;  %v141_v43 = vmul.f32 %v118_v38, %v417_v22  ;;  %v138_v0 = vsel %vm137_vm15, %v498_v18, %v134_v58  ;;  %vm534_vm4 = vmor %vm280_vm3, %vm279_vm2 }
 0x109   :  { %v122_v16 = vmul.f32 0.5, %v121_v35  ;;  %v143_v5 = vmul.f32 %v138_v0, %v415_v21 }
 0x10a   :  { %v92_v39 = vmul.f32 0.5, %v91_v37  ;;  %v150_v22 = vmul.f32 %v346_v45, %v141_v43 }
 0x10b   :  { %v123_v41 = vsub.f32 1.5, %v122_v16  ;;  %v152_v8 = vmul.f32 %v346_v45, %v143_v5 }
 0x10c   :  { %v359_v42 = vpop.eup %358  ;;  %v93_v44 = vsub.f32 1.5, %v92_v39  ;;  %v159_v60 = vadd.f32 %v347_v54, %v150_v22 }
 0x10d   :  { %v124_v46 = vmul.f32 %v355_v26, %v123_v41  ;;  %v100_v47 = vmul.f32 %v359_v42, %v85_v27  ;;  %vm106_vm14 = vweird.f32 %v359_v42  ;;  %v161_v9 = vadd.f32 %v347_v54, %v152_v8 }
 0x10e   :  { %v94_v48 = vmul.f32 %v357_v28, %v93_v44  ;;  %vm107_vm1 = vmor %vm105_vm13, %vm106_vm14 }
 0x10f   :  { %v128_v51 = vsel %vm127_vm9, %v355_v26, %v124_v46  ;;  %v101_v52 = vmul.f32 %v359_v42, %v100_v47  ;;  %v164_v10 = vpack.c.bf16 %v161_v9, %v161_v9 }
 0x110   :  { %v142_v53 = vmul.f32 %v128_v51, %v428_v33  ;;  %v98_v55 = vsel %vm508_vm10, %v357_v28, %v94_v48 }
 0x111   :  { %v102_v56 = vmul.f32 0.5, %v101_v52  ;;  %v139_v33 = vmul.f32 %v98_v55, %v430_v34 }
 0x112   :  { %v151_v57 = vmul.f32 %v346_v45, %v142_v53 }
 0x113   :  { %v103_v59 = vsub.f32 1.5, %v102_v56  ;;  %v148_v3 = vmul.f32 %v346_v45, %v139_v33 }
 0x114   :  { %v160_v61 = vadd.f32 %v347_v54, %v151_v57 }
 0x115   :  { %v104_v62 = vmul.f32 %v359_v42, %v103_v59  ;;  %v157_v6 = vadd.f32 %v347_v54, %v148_v3 }
 0x116   :  { %v163_v63 = vpack.c.bf16 %v160_v61, %v159_v60 }
 0x117   :  { %v108_v1 = vsel %vm107_vm1, %v359_v42, %v104_v62 }
 0x118   :  { %v140_v2 = vmul.f32 %v108_v1, %v434_v36  ;;  %324 = vmatmul.msk.bf16.vlgmr.msra.gmra.mxu2 %vm26_vm0, %v163_v63  ;;  %327 = vmatmul.msk.bf16.vlgmr.msra.gmra.mxu3 %vm26_vm0, %v163_v63  ;;  %v173_v36 = vld [vmem:[%s567_s2] sm:$0x3] }
 0x119   :  { %v175_v11 = vperm.slane %v173_v36, 0  ;;  %v176_v21 = vperm.slane %v173_v36, 1 }
 0x11a   :  { %v149_v4 = vmul.f32 %v346_v45, %v140_v2 }
 0x11c   :  { %v158_v34 = vadd.f32 %v347_v54, %v149_v4 }
 0x11e   :  { %v162_v7 = vpack.c.bf16 %v158_v34, %v157_v6 }
 0x120   :  { %323 = vmatmul.msk.bf16.vlgmr.msra.gmra.mxu0 %vm26_vm0, %v162_v7  ;;  %326 = vmatmul.msk.bf16.vlgmr.msra.gmra.mxu1 %vm26_vm0, %v162_v7 }
 0x128   :  { %325 = vmatmul.msk.bf16.gmra.mxu2 %vm26_vm0, %v164_v10  ;;  %328 = vmatmul.msk.bf16.gmra.mxu3 %vm26_vm0, %v164_v10 }
 0x19b   :  { %v242_v12 = vpop.f32.mrf.mxu2  ;;  %v265_v13 = vpop.f32.mrf.mxu3 }
 0x19c   :  { %v243_v14 = vadd.f32 %v242_v12, %v175_v11  ;;  %v266_v15 = vadd.f32 %v265_v13, %v176_v21 }
 0x19d   :  { %v237_v18 = vpop.f32.mrf.mxu0  ;;  %v260_v19 = vpop.f32.mrf.mxu1 }
 0x19e   :  { %v276_v20 = vpack.c.bf16 %v266_v15, %v243_v14  ;;  %v238_v23 = vadd.f32 %v237_v18, %v175_v11  ;;  %v261_v24 = vadd.f32 %v260_v19, %v176_v21 }
 0x1a0   :  { %284 = vst.msk [vmem:[%s568_s5 + $0x10] sm:$0xff] %vm534_vm4, %v276_v20  ;;  %v274_v25 = vpack.c.bf16 %v261_v24, %v238_v23 }
 0x1a2   :  { %282 = vst.msk [vmem:[%s568_s5] sm:$0xff] %vm534_vm4, %v274_v25 }
 0x1a3   :  { %v244_v26 = vpop.f32.mrf.mxu2  ;;  %v267_v27 = vpop.f32.mrf.mxu3 }
 0x1a4   :  { %v245_v28 = vadd.f32 %v244_v26, %v175_v11  ;;  %v268_v29 = vadd.f32 %v267_v27, %v176_v21 }
 0x1a5   :  { %v239_v30 = vpop.f32.mrf.mxu0  ;;  %v262_v31 = vpop.f32.mrf.mxu1 }
 0x1a6   :  { %v277_v32 = vpack.c.bf16 %v268_v29, %v245_v28  ;;  %v240_v35 = vadd.f32 %v239_v30, %v175_v11  ;;  %v263_v37 = vadd.f32 %v262_v31, %v176_v21 }
 0x1a8   :  { %285 = vst.msk [vmem:[%s568_s5 + $0x18] sm:$0xff] %vm534_vm4, %v277_v32  ;;  %v275_v38 = vpack.c.bf16 %v263_v37, %v240_v35 }
 0x1aa   :  { %283 = vst.msk [vmem:[%s568_s5 + $0x8] sm:$0xff] %vm534_vm4, %v275_v38 }
 0x1ab   :  { %v247_v16 = vpop.f32.mrf.mxu2  ;;  %v270_v39 = vpop.f32.mrf.mxu3 }
 0x1ac   :  { %v248_v40 = vadd.f32 %v247_v16, %v175_v11  ;;  %v271_v41 = vadd.f32 %v270_v39, %v176_v21 }
 0x1ae   :  { %v278_v42 = vpack.c.bf16 %v271_v41, %v248_v40 }
 0x1b0   :  { %286 = vst.msk [vmem:[%s568_s5 + $0x20] sm:$0xff] %vm534_vm4, %v278_v42 }
 0x1b3   :  { %v249_v43 = vpop.f32.mrf.mxu2  ;;  %v272_v44 = vpop.f32.mrf.mxu3 }

// kernel: _lambda_.43
= control target key start
LH: loop header
LB: loop body
LE: loop exit
PB: predicated region body
PF: predicated region fallthrough
CT: control target
= control target key end

     0   :  { %vm72_vm0 = vcmask 523264   ;;  %s253_s1 = inlined_call_operand.vmem [shape: bf16[64,64], index: 1, kind: input, shape index: {}]   ;;  %s254_s2 = inlined_call_operand.vmem [shape: f32[1,64], index: 2, kind: input, shape index: {}]   ;;  %s255_s0 = inlined_call_operand.vmem [shape: bf16[40,64], index: 0, kind: input, shape index: {}]   ;;  %s256_s3 = inlined_call_operand.vmem [shape: f32[40,64], index: 3, kind: input, shape index: {}]   ;;  %s257_s4 = inlined_call_operand.vmem [shape: f32[40,64], index: 4, kind: output, shape index: {}]  }
   0x1   :  { %v156_v0 = vld [vmem:[%s253_s1 + $0x18] sm:$0xff]  ;;  %v155_v1 = vld [vmem:[%s253_s1 + $0x10] sm:$0xff]  ;;  %v154_v2 = vld [vmem:[%s253_s1 + $0x8] sm:$0xff] }
   0x2   :  { %86 = vmatpush.bf16.msra.mxu0 %v156_v0  ;;  %157 = vmatpush.bf16.msra.mxu1 %v156_v0  ;;  %v22_v3 = vld [vmem:[%s255_s0 + $0x10] sm:$0xf]  ;;  %v153_v4 = vld [vmem:[%s253_s1] sm:$0xff]  ;;  %v152_v7 = vld [vmem:[%s255_s0 + $0x8] sm:$0xff] }
   0x3   :  { %158 = vmatpush.bf16.msra.mxu2 %v156_v0  ;;  %v44_v5 = vunpack.c.l.b16 %v22_v3  ;;  %v151_v6 = vld [vmem:[%s255_s0] sm:$0xff]  ;;  %v107_v13 = vld [vmem:[%s256_s3 + $0x10] sm:$0xff]  ;;  %v106_v22 = vld [vmem:[%s256_s3 + $0x8] sm:$0xff] }
   0x4   :  { %v165_v9 = vld [vmem:[%s254_s2] ss:$0 sm:$0xff]  ;;  %v108_v24 = vld [vmem:[%s256_s3 + $0x18] sm:$0xff] }
   0x5   :  { %v47_v8 = vpack.c.b16 %v44_v5, %v44_v5  ;;  %v105_v11 = vld [vmem:[%s256_s3] sm:$0xff] }
   0x6   :  { %87 = vmatpush.bf16.msra.mxu0 %v155_v1  ;;  %159 = vmatpush.bf16.msra.mxu1 %v155_v1  ;;  %v109_v19 = vld [vmem:[%s256_s3 + $0x20] sm:$0xff] }
   0x7   :  { %160 = vmatpush.bf16.msra.mxu2 %v155_v1 }
   0xa   :  { %88 = vmatpush.bf16.msra.mxu0 %v154_v2  ;;  %161 = vmatpush.bf16.msra.mxu1 %v154_v2 }
   0xb   :  { %162 = vmatpush.bf16.msra.mxu2 %v154_v2 }
   0xe   :  { %89 = vmatpush.bf16.msra.mxu0 %v153_v4  ;;  %163 = vmatpush.bf16.msra.mxu1 %v153_v4 }
   0xf   :  { %164 = vmatpush.bf16.msra.mxu2 %v153_v4 }
  0x11   :  { %148 = vmatmul.msk.bf16.vlgmr.msra.gmra.mxu0 %vm72_vm0, %v151_v6  ;;  %149 = vmatmul.msk.bf16.vlgmr.msra.gmra.mxu1 %vm72_vm0, %v152_v7 }
  0x12   :  { %150 = vmatmul.msk.bf16.vlgmr.msra.gmra.mxu2 %vm72_vm0, %v47_v8 }
  0x8e   :  { %v91_v10 = vpop.f32.mrf.mxu0  ;;  %v96_v12 = vpop.f32.mrf.mxu1 }
  0x8f   :  { %v92_v14 = vadd.f32 %v165_v9, %v91_v10  ;;  %v97_v15 = vadd.f32 %v165_v9, %v96_v12 }
  0x91   :  { %v110_v16 = vadd.f32 %v105_v11, %v92_v14  ;;  %v112_v17 = vadd.f32 %v107_v13, %v97_v15 }
  0x93   :  { %115 = vst.msk [vmem:[%s257_s4] sm:$0xff] %vm72_vm0, %v110_v16 }
  0x94   :  { %117 = vst.msk [vmem:[%s257_s4 + $0x10] sm:$0xff] %vm72_vm0, %v112_v17 }
  0x95   :  { %v101_v18 = vpop.f32.mrf.mxu2 }
  0x96   :  { %v102_v20 = vadd.f32 %v165_v9, %v101_v18  ;;  %v93_v21 = vpop.f32.mrf.mxu0  ;;  %v98_v23 = vpop.f32.mrf.mxu1 }
  0x97   :  { %v94_v25 = vadd.f32 %v165_v9, %v93_v21  ;;  %v99_v26 = vadd.f32 %v165_v9, %v98_v23 }
  0x98   :  { %v114_v27 = vadd.f32 %v109_v19, %v102_v20 }
  0x99   :  { %v111_v28 = vadd.f32 %v106_v22, %v94_v25  ;;  %v113_v29 = vadd.f32 %v108_v24, %v99_v26 }
  0x9a   :  { %119 = vst.msk [vmem:[%s257_s4 + $0x20] sm:$0xff] %vm72_vm0, %v114_v27 }
  0x9b   :  { %116 = vst.msk [vmem:[%s257_s4 + $0x8] sm:$0xff] %vm72_vm0, %v111_v28 }
  0x9c   :  { %118 = vst.msk [vmem:[%s257_s4 + $0x18] sm:$0xff] %vm72_vm0, %v113_v29 }
  0x9d   :  { %v103_v30 = vpop.f32.mrf.mxu2 }

// kernel: _lambda_.42
= control target key start
LH: loop header
LB: loop body
LE: loop exit
PB: predicated region body
PF: predicated region fallthrough
CT: control target
= control target key end

     0   :  { %s378_s6 = smov 0   ;;  %s413_s0 = inlined_call_operand.vmem [shape: bf16[8,5,192], index: 0, kind: input, shape index: {}]   ;;  %s414_s1 = inlined_call_operand.vmem [shape: bf16[8,5,64], index: 1, kind: output, shape index: {}]  }
   0x1 LB: > { %s321_s7 = sadd.s32 4294967295, %s362_s6   ;;  %p325_p0 = scmp.ge.s32.totalorder %s362_s6, 1  ;;  %s362_s6 = sphi %s378_s6, %s11_s6  }
   0x2   : > { %p87_p1 = scmp.lt.s32.totalorder %s362_s6, 9 }
   0x4   : > { %p88_p2 = pnand %p325_p0, %p87_p1 }
   0x5   : > { %p106_p3 = scmp.lt.s32.totalorder (!%p88_p2), %s321_s7, 7  ;;  %s364_s12 = smov (!%p88_p2), 32  }
   0x6   : > { %91 = sbr.rel (%p88_p2) target bundleno = 657 (0x291), region = 24  ;;  %s365_s13 = smov (!%p88_p2), 64  }
   0x7   : > { %s366_s14 = smov (!%p88_p2), 96  }
   0xb   : > { %s416_s7 = smov (!%p106_p3, %s321_s7), 7  ;;  %vm126_vm0 = vcmask 261120   ;;  %vm146_vm1 = vcmask 36864   ;;  %vm161_vm2 = vcmask 1041408   ;;  %vm162_vm3 = vcmask 1042432  }
   0xc   : > { %s335_s8 = sshll.u32 %s416_s7, 3  ;;  %v367_v26 = vmov 65535   ;;  %vm157_vm4 = vcmask 39936   ;;  %s328_s15 = sshll.u32 %s416_s7, 2  ;;  %vm184_vm5 = vcmask 256000   ;;  %vm263_vm8 = vcmask 518400  }
   0xd   : > { %s392_s11 = scalar_lea.vmem %s413_s0, %s335_s8  ;;  %v163_v27 = vsel %vm161_vm2, 4294967295, %v367_v26  ;;  %s114_s18 = scalar_lea.vmem %s414_s1, %s328_s15  ;;  %vm185_vm6 = vsmask.f32 2304 }
   0xe   : > { %v190_v0 = vld [vmem:[%s392_s11] sm:$0x7]  ;;  %v193_v9 = vld [vmem:[%s392_s11 + $0x4] sm:$0x7]  ;;  %v164_v29 = vsel %vm162_vm3, %v163_v27, 0  ;;  %vm186_vm7 = vmand %vm184_vm5, %vm185_vm6 }
   0xf   : > { %v116_v1 = vld [vmem:[%s392_s11] sm:$0x7]  ;;  %v199_v2 = vunpack.c.l.b16 %v190_v0  ;;  %v191_v3 = vunpack.c.l.bf16 %v190_v0  ;;  %v233_v10 = vunpack.c.l.b16 %v193_v9  ;;  %v119_v28 = vld [vmem:[%s392_s11 + $0x4] sm:$0x7]  ;;  %vm264_vm9 = vmand %vm263_vm8, %vm185_vm6 }
  0x10   : > { %v122_v4 = vunpack.c.l.b16 %v116_v1  ;;  %v117_v12 = vunpack.c.l.bf16 %v116_v1  ;;  %v166_v30 = vand.u32 %v164_v29, %v119_v28  ;;  %v187_v49 = vld [vmem:[%s114_s18] sm:$0x7] }
  0x11   : > { %v200_v5 = vpack.c.b16 %v199_v2, %v199_v2  ;;  %v192_v7 = vmul.f32 0.17677669, %v191_v3  ;;  %v234_v11 = vpack.c.b16 %v233_v10, %v233_v10 }
  0x12   : > { %v123_v6 = vpack.c.b16 %v122_v4, %v122_v4  ;;  %v118_v17 = vmul.f32 0.17677669, %v117_v12  ;;  %175 = vmatpush.bf16.msra.mxu1 %v166_v30 }
  0x13   : > { %201 = vrot.lane.b32.xlu0 %v200_v5, %s364_s12  ;;  %v194_v8 = vpack.c.bf16 %v192_v7, %v192_v7  ;;  %235 = vrot.lane.b32.xlu2 %v234_v11, %s366_s14 }
  0x14   : > { %124 = vrot.lane.b32.xlu1 %v123_v6, %s365_s13  ;;  %v120_v18 = vpack.c.bf16 %v118_v17, %v118_v17 }
  0x1b   : > { %196 = vrot.lane.b32.xlu0 %v194_v8, %s366_s14 }
  0x6d   : > { %v236_v31 = vpop.permute.xlu2 %235 }
  0x6e   : > { %v241_v32 = vand.u32 %v236_v31, %v164_v29 }
  0x70   : > { %250 = vmatpush.bf16.msra.mxu3 %v241_v32 }
  0x85   : > { %v202_v13 = vpop.permute.xlu0 %201 }
  0x86   : > { %v125_v14 = vpop.permute.xlu1 %124  ;;  %v207_v16 = vsel %vm126_vm0, %v202_v13, 0 }
  0x87   : > { %v131_v15 = vsel %vm126_vm0, %v125_v14, 0  ;;  %216 = vmatpush.bf16.xpose.msra.mxu2 %v207_v16 }
  0x88   : > { %140 = vmatpush.bf16.xpose.msra.mxu0 %v131_v15 }
  0x8d   : > { %v197_v19 = vpop.permute.xlu0 %196 }
  0x8e   : > { %331 = vmatmul.msk.bf16.vlgmr.msra.gmra.mxu2 %vm126_vm0, %v197_v19 }
  0x8f   : > { %329 = vmatmul.msk.bf16.vlgmr.msra.gmra.mxu0 %vm126_vm0, %v120_v18 }
 0x10c   : > { %v142_v20 = vpop.f32.mrf.mxu0 }
 0x10d   : > { %v147_v21 = vsel %vm146_vm1, %v142_v20, -inf }
 0x10e   : > { %148 = vmax.xlane.f32.xlu2 %v147_v21 }
 0x111   : > { %v218_v22 = vpop.f32.mrf.mxu2 }
 0x112   : > { %v222_v23 = vsel %vm146_vm1, %v218_v22, -inf }
 0x113   : > { %223 = vmax.xlane.f32.xlu1 %v222_v23 }
 0x114   : > { %v144_v24 = vpop.f32.mrf.mxu0 }
 0x119   : > { %v220_v25 = vpop.f32.mrf.mxu2 }
 0x181   : > { %v149_v33 = vpop.xlane.xlu2 %148 }
 0x182   : > { %v150_v34 = vsub.f32 %v142_v20, %v149_v33 }
 0x184   : > { %v151_v35 = vmul.f32 1.442695, %v150_v34 }
 0x186   : > { %348 = vpow2.f32 %v151_v35  ;;  %v224_v36 = vpop.xlane.xlu1 %223 }
 0x187   : > { %v225_v37 = vsub.f32 %v218_v22, %v224_v36 }
 0x189   : > { %v226_v38 = vmul.f32 1.442695, %v225_v37 }
 0x18b   : > { %350 = vpow2.f32 %v226_v38 }
 0x18c   : > { %v349_v39 = vpop.eup %348 }
 0x18d   : > { %v156_v40 = vpack.c.bf16 %v349_v39, %v349_v39  ;;  %v153_v41 = vsel %vm146_vm1, %v349_v39, 0.0 }
 0x18e   : > { %154 = vadd.xlane.f32.xlu2 %v153_v41 }
 0x18f   : > { %330 = vmatmul.msk.bf16.vlgmr.msra.gmra.mxu1 %vm157_vm4, %v156_v40 }
 0x191   : > { %v351_v42 = vpop.eup %350 }
 0x192   : > { %v228_v43 = vsel %vm146_vm1, %v351_v42, 0.0  ;;  %v231_v44 = vpack.c.bf16 %v351_v42, %v351_v42 }
 0x193   : > { %229 = vadd.xlane.f32.xlu0 %v228_v43 }
 0x194   : > { %332 = vmatmul.msk.bf16.vlgmr.msra.gmra.mxu3 %vm157_vm4, %v231_v44 }
 0x201   : > { %v155_v45 = vpop.xlane.xlu2 %154 }
 0x202   : > { %352 = vrcp.f32 %v155_v45 }
 0x206   : > { %v230_v50 = vpop.xlane.xlu0 %229 }
 0x207   : > { %354 = vrcp.f32 %v230_v50 }
 0x208   : > { %v353_v46 = vpop.eup %352 }
 0x20c   : > { %v177_v47 = vpop.f32.mrf.mxu1 }
 0x20d   : > { %v182_v48 = vmul.f32 %v353_v46, %v177_v47  ;;  %v355_v54 = vpop.eup %354 }
 0x20f   : > { %v183_v51 = vpack.c.bf16 %v182_v48, %v182_v48 }
 0x211   : > { %v188_v52 = vsel %vm186_vm7, %v183_v51, %v187_v49 }
 0x212   : > { %189 = vst [vmem:[%s114_s18] sm:$0x7] %v188_v52 }
 0x214   : > { %v179_v53 = vpop.f32.mrf.mxu1 }
 0x217   : > { %v252_v55 = vpop.f32.mrf.mxu3 }
 0x218   : > { %v257_v56 = vmul.f32 %v355_v54, %v252_v55 }
 0x219   : > { %v265_v60 = vld [vmem:[%s114_s18] sm:$0x7] }
 0x21a   : > { %v258_v57 = vpack.c.bf16 %v257_v56, %v257_v56 }
 0x21c   : > { %260 = vrot.lane.b32.xlu1 %v258_v57, %s364_s12 }
 0x21f   : > { %v254_v58 = vpop.f32.mrf.mxu3 }
 0x28e   : > { %v261_v59 = vpop.permute.xlu1 %260 }
 0x28f   : > { %v266_v61 = vsel %vm264_vm9, %v261_v59, %v265_v60 }
 0x290   : > { %267 = vst [vmem:[%s114_s18] sm:$0x7] %v266_v61 }
 0x291 PF: > { %s11_s6 = sadd.s32 1, %s362_s6  }
 0x292   : > { %p8_p4 = scmp.ge.s32.totalorder %s11_s6, 10  }
 0x294   :  { %10 = sbr.rel (!%p8_p4) target bundleno = 1 (0x1), region = 54 }

// kernel: _lambda_.44
= control target key start
LH: loop header
LB: loop body
LE: loop exit
PB: predicated region body
PF: predicated region fallthrough
CT: control target
= control target key end

     0   :  { %s1164_s18 = smov 0   ;;  %s1166_s19 = smov 0   ;;  %s1397_s0 = inlined_call_operand.vmem [shape: f32[40,64], index: 0, kind: input, shape index: {}]   ;;  %s1398_s1 = inlined_call_operand.vmem [shape: bf16[64,256], index: 1, kind: input, shape index: {}]   ;;  %s1399_s2 = inlined_call_operand.vmem [shape: f32[1,256], index: 2, kind: input, shape index: {}]   ;;  %s1400_s3 = inlined_call_operand.vmem [shape: f32[1,64], index: 3, kind: input, shape index: {}]   ;;  %s1401_s4 = inlined_call_operand.vmem [shape: f32[1,64], index: 4, kind: input, shape index: {}]   ;;  %s1402_s5 = inlined_call_operand.vmem [shape: bf16[40,256], index: 5, kind: output, shape index: {}]  }
   0x1   :  { %s1168_s20 = smov 0   ;;  %s1170_s21 = smov 0  }
   0x2   :  { %s1172_s22 = smov 0  }
   0x3 LB: > { %s30_s23 = sadd.s32 1, %s1127_s21  ;;  %s944_s24 = sadd.s32 4294967295, %s1131_s22   ;;  %s1131_s22 = sphi %s1172_s22, %s15_s22   ;;  %s1127_s21 = sphi %s1170_s21, %s1415_s21   ;;  %s1123_s20 = sphi %s1168_s20, %s1414_s20   ;;  %s1119_s19 = sphi %s1166_s19, %s1413_s19   ;;  %s1115_s18 = sphi %s1164_s18, %s1412_s18  }
   0x4   : > { %p32_p0 = scmp.ge.s32.totalorder %s30_s23, 2  ;;  %p78_p1 = scmp.ne.s32.totalorder %s1119_s19, %s1115_s18 }
   0x5   : > { %p79_p2 = scmp.eq.s32.totalorder %s1131_s22, 0  ;;  %p188_p4 = scmp.eq.s32.totalorder %s944_s24, 1 }
   0x6   : > { %s1417_s23 = smov (%p32_p0, %s30_s23), 0  ;;  %s71_s26 = sadd.s32 1, %s1119_s19 }
   0x7   : > { %p80_p3 = por %p79_p2, %p78_p1  ;;  %s67_s25 = ssub.s32 %s1127_s21, %s1417_s23 }
   0x8   : > { %p69_p5 = scmp.eq.s32.totalorder %s67_s25, 0  ;;  %p1199_p6 = por %p188_p4, %p78_p1 }
   0x9   : > { %p950_p7 = scmp.ge.s32.totalorder %s1131_s22, 2 }
   0xa   : > { %s1204_s28 = scalar_select %p69_p5, %s1119_s19, %s71_s26  }
   0xb   : > { %234 = sbr.rel (%p950_p7) target bundleno = 28 (0x1c), region = 28 }
  0x10   : > { %237 = sbr.rel (!%p80_p3) target bundleno = 28 (0x1c), region = 32  ;;  %s239_s29 = sand.u32 (%p80_p3), 1, %s1119_s19  }
  0x11   : > { %s952_s30 = sshll.u32 (%p80_p3), %s1127_s21, 2  ;;  %s951_s6 = sshll.u32 (%p80_p3), %s239_s29, 5 }
  0x12   : > { %s246_s9 = scalar_lea.vmem (%p80_p3), %s1398_s1, %s952_s30  ;;  %s241_s10 = scalar_lea.vmem (%p80_p3), [#allocation3], %s951_s6 }
  0x13   : > { %v263_v0 = vld [vmem:[%s246_s9] sm:$0xf] (%p80_p3)  ;;  %v265_v1 = vld [vmem:[%s246_s9 + $0x8] sm:$0xf] (%p80_p3)  ;;  %v267_v2 = vld [vmem:[%s246_s9 + $0x10] sm:$0xf] (%p80_p3) }
  0x14   : > { %264 = vst [vmem:[%s241_s10] sm:$0xf] (%p80_p3), %v263_v0  ;;  %v269_v3 = vld [vmem:[%s246_s9 + $0x18] sm:$0xf] (%p80_p3)  ;;  %v271_v4 = vld [vmem:[%s246_s9 + $0x20] sm:$0xf] (%p80_p3) }
  0x15   : > { %266 = vst [vmem:[%s241_s10 + $0x4] sm:$0xf] %v265_v1  ;;  %v273_v5 = vld [vmem:[%s246_s9 + $0x28] sm:$0xf]  ;;  %v275_v6 = vld [vmem:[%s246_s9 + $0x30] sm:$0xf] }
  0x16   : > { %268 = vst [vmem:[%s241_s10 + $0x8] sm:$0xf] %v267_v2  ;;  %v277_v7 = vld [vmem:[%s246_s9 + $0x38] sm:$0xf] }
  0x17   : > { %270 = vst [vmem:[%s241_s10 + $0xc] sm:$0xf] %v269_v3 }
  0x18   : > { %272 = vst [vmem:[%s241_s10 + $0x10] sm:$0xf] %v271_v4 }
  0x19   : > { %274 = vst [vmem:[%s241_s10 + $0x14] sm:$0xf] %v273_v5 }
  0x1a   : > { %276 = vst [vmem:[%s241_s10 + $0x18] sm:$0xf] %v275_v6 }
  0x1b   : > { %278 = vst [vmem:[%s241_s10 + $0x1c] sm:$0xf] %v277_v7 }
  0x1c PF: > { %p953_p8 = scmp.ge.s32.totalorder %s1131_s22, 1  ;;  %p323_p9 = scmp.lt.s32.totalorder %s1131_s22, 3 }
  0x1e   : > { %p324_p10 = pnand %p953_p8, %p323_p9 }
  0x1f   : > { %s330_s11 = sand.u32 (!%p324_p10), 1, %s1115_s18   ;;  %p383_p11 = scmp.lt.s32.totalorder (!%p324_p10), %s1123_s20, 1 }
  0x20   : > { %327 = sbr.rel (%p324_p10) target bundleno = 530 (0x212), region = 77  ;;  %s954_s12 = sshll.u32 (!%p324_p10), %s330_s11, 5 }
  0x21   : > { %s1016_s13 = smul.u32 (!%p324_p10), 20, %s330_s11  ;;  %s1223_s24 = scalar_lea.vmem (!%p324_p10), [#allocation3], %s954_s12 }
  0x22   : > { %p955_p12 = scmp.ne.s32.totalorder (!%p324_p10), %s1123_s20, 0 }
  0x23   : > { %s1225_s25 = scalar_lea.vmem (!%p324_p10), [#allocation4], %s1016_s13 }
  0x25   : > { %s1217_s14 = scalar_select %p383_p11, %s1123_s20, 1 }
  0x26   : > { %397 = sbr.rel (%p955_p12) target bundleno = 331 (0x14b), region = 85 }
  0x27   : > { %s385_s17 = scalar_lea.vmem %s1399_s2, %s1217_s14 }
  0x2b   : > { %v400_v8 = vld [vmem:[%s1397_s0 + $0x10] sm:$0xff]  ;;  %vm403_vm0 = vcmask 523264   ;;  %v398_v9 = vld [vmem:[%s1397_s0] sm:$0xff]  ;;  %v401_v14 = vld [vmem:[%s1397_s0 + $0x18] sm:$0xff]  ;;  %v1133_v18 = vmov 64.0   ;;  %vm544_vm11 = vcmask 519168  }
  0x2c   : > { %v410_v10 = vsel %vm403_vm0, %v400_v8, 0.0  ;;  %v404_v11 = vsel %vm403_vm0, %v398_v9, 0.0  ;;  %v402_v12 = vld [vmem:[%s1397_s0 + $0x20] sm:$0xff]  ;;  %v399_v15 = vld [vmem:[%s1397_s0 + $0x8] sm:$0xff]  ;;  %v413_v16 = vsel %vm403_vm0, %v401_v14, 0.0  ;;  %1060 = vrcp.f32 %v1133_v18 }
  0x2d   : > { %411 = vadd.xlane.f32.xlu1 %v410_v10  ;;  %405 = vadd.xlane.f32.xlu0 %v404_v11  ;;  %v416_v13 = vsel %vm403_vm0, %v402_v12, 0.0  ;;  %v407_v17 = vsel %vm403_vm0, %v399_v15, 0.0 }
  0x2e   : > { %417 = vadd.xlane.f32.xlu2 %v416_v13 }
  0x32   : > { %v1061_v19 = vpop.eup %1060 }
  0x33   : > { %v420_v20 = vmul.f32 64.0, %v1061_v19  ;;  %vm424_vm1 = vweird.f32 %v1061_v19 }
  0x35   : > { %414 = vadd.xlane.f32.xlu1 %v413_v16  ;;  %408 = vadd.xlane.f32.xlu0 %v407_v17  ;;  %v421_v21 = vsub.f32 1.0, %v420_v20  ;;  %v1059_v20 = vld [vmem:[%s1401_s4] ss:$0 sm:$0xff] }
  0x37   : > { %v422_v22 = vmul.f32 %v1061_v19, %v421_v21 }
  0x39   : > { %v423_v23 = vadd.f32 %v1061_v19, %v422_v22 }
  0x3b   : > { %v425_v24 = vsel %vm424_vm1, %v1061_v19, %v423_v23 }
  0xa0   : > { %v412_v25 = vpop.xlane.xlu1 %411  ;;  %v406_v26 = vpop.xlane.xlu0 %405 }
  0xa1   : > { %v428_v27 = vmul.f32 %v425_v24, %v412_v25  ;;  %v426_v28 = vmul.f32 %v425_v24, %v406_v26  ;;  %v418_v33 = vpop.xlane.xlu2 %417 }
  0xa2   : > { %v430_v40 = vmul.f32 %v425_v24, %v418_v33 }
  0xa3   : > { %v1248_v29 = vsub.f32 %v400_v8, %v428_v27  ;;  %v1250_v30 = vsub.f32 %v398_v9, %v426_v28 }
  0xa4   : > { %v1262_v43 = vsub.f32 %v402_v12, %v430_v40 }
  0xa5   : > { %v438_v31 = vmul.f32 %v1248_v29, %v1248_v29  ;;  %v436_v32 = vmul.f32 %v1250_v30, %v1250_v30 }
  0xa6   : > { %v440_v48 = vmul.f32 %v1262_v43, %v1262_v43 }
  0xa7   : > { %v447_v34 = vsel %vm403_vm0, %v438_v31, 0.0  ;;  %v441_v35 = vsel %vm403_vm0, %v436_v32, 0.0 }
  0xa8   : > { %448 = vadd.xlane.f32.xlu1 %v447_v34  ;;  %v415_v36 = vpop.xlane.xlu1 %414  ;;  %442 = vadd.xlane.f32.xlu2 %v441_v35  ;;  %v409_v37 = vpop.xlane.xlu0 %408  ;;  %v453_v49 = vsel %vm403_vm0, %v440_v48, 0.0 }
  0xa9   : > { %v429_v38 = vmul.f32 %v425_v24, %v415_v36  ;;  %v427_v39 = vmul.f32 %v425_v24, %v409_v37 }
  0xab   : > { %v1258_v41 = vsub.f32 %v401_v14, %v429_v38  ;;  %v1260_v42 = vsub.f32 %v399_v15, %v427_v39  ;;  %v1058_v15 = vld [vmem:[%s1400_s3] ss:$0 sm:$0xff] }
  0xad   : > { %v439_v44 = vmul.f32 %v1258_v41, %v1258_v41  ;;  %v437_v45 = vmul.f32 %v1260_v42, %v1260_v42 }
  0xaf   : > { %v450_v46 = vsel %vm403_vm0, %v439_v44, 0.0  ;;  %v444_v47 = vsel %vm403_vm0, %v437_v45, 0.0 }
  0xb0   : > { %451 = vadd.xlane.f32.xlu2 %v450_v46  ;;  %445 = vadd.xlane.f32.xlu0 %v444_v47 }
  0xb8   : > { %454 = vadd.xlane.f32.xlu0 %v453_v49 }
 0x11b   : > { %v449_v50 = vpop.xlane.xlu1 %448  ;;  %v443_v51 = vpop.xlane.xlu2 %442 }
 0x11c   : > { %v458_v52 = vmul.f32 %v449_v50, %v425_v24  ;;  %v456_v53 = vmul.f32 %v443_v51, %v425_v24 }
 0x11e   : > { %v463_v54 = vadd.f32 1e-05, %v458_v52  ;;  %v461_v55 = vadd.f32 1e-05, %v456_v53 }
 0x120   : > { %1062 = vrsqrt.f32 %v463_v54  ;;  %vm492_vm2 = vweird.f32 %v463_v54  ;;  %vm472_vm6 = vweird.f32 %v461_v55 }
 0x121   : > { %1064 = vrsqrt.f32 %v461_v55 }
 0x123   : > { %v452_v56 = vpop.xlane.xlu2 %451  ;;  %v446_v57 = vpop.xlane.xlu0 %445 }
 0x124   : > { %v459_v58 = vmul.f32 %v452_v56, %v425_v24  ;;  %v457_v59 = vmul.f32 %v446_v57, %v425_v24 }
 0x126   : > { %v1063_v60 = vpop.eup %1062  ;;  %v464_v61 = vadd.f32 1e-05, %v459_v58  ;;  %v462_v62 = vadd.f32 1e-05, %v457_v59 }
 0x127   : > { %v1065_v63 = vpop.eup %1064  ;;  %v487_v0 = vmul.f32 %v1063_v60, %v463_v54  ;;  %vm493_vm3 = vweird.f32 %v1063_v60 }
 0x128   : > { %v467_v1 = vmul.f32 %v1065_v63, %v461_v55  ;;  %1066 = vrsqrt.f32 %v464_v61  ;;  %vm473_vm4 = vweird.f32 %v1065_v63  ;;  %vm494_vm5 = vmor %vm492_vm2, %vm493_vm3  ;;  %vm502_vm8 = vweird.f32 %v464_v61 }
 0x129   : > { %v488_v2 = vmul.f32 %v1063_v60, %v487_v0  ;;  %1068 = vrsqrt.f32 %v462_v62  ;;  %vm474_vm7 = vmor %vm472_vm6, %vm473_vm4  ;;  %vm482_vm13 = vweird.f32 %v462_v62 }
 0x12a   : > { %v468_v3 = vmul.f32 %v1065_v63, %v467_v1 }
 0x12b   : > { %v489_v4 = vmul.f32 0.5, %v488_v2  ;;  %v455_v5 = vpop.xlane.xlu0 %454 }
 0x12c   : > { %v469_v6 = vmul.f32 0.5, %v468_v3  ;;  %v460_v7 = vmul.f32 %v455_v5, %v425_v24 }
 0x12d   : > { %v490_v8 = vsub.f32 1.5, %v489_v4 }
 0x12e   : > { %v1067_v9 = vpop.eup %1066  ;;  %v470_v10 = vsub.f32 1.5, %v469_v6  ;;  %v465_v11 = vadd.f32 1e-05, %v460_v7 }
 0x12f   : > { %v1069_v12 = vpop.eup %1068  ;;  %v491_v13 = vmul.f32 %v1063_v60, %v490_v8  ;;  %v497_v14 = vmul.f32 %v1067_v9, %v464_v61  ;;  %vm503_vm9 = vweird.f32 %v1067_v9 }
 0x130   : > { %v471_v16 = vmul.f32 %v1065_v63, %v470_v10  ;;  %v477_v17 = vmul.f32 %v1069_v12, %v462_v62  ;;  %1070 = vrsqrt.f32 %v465_v11  ;;  %vm483_vm10 = vweird.f32 %v1069_v12  ;;  %vm504_vm12 = vmor %vm502_vm8, %vm503_vm9 }
 0x131   : > { %v495_v18 = vsel %vm494_vm5, %v1063_v60, %v491_v13  ;;  %v498_v19 = vmul.f32 %v1067_v9, %v497_v14  ;;  %vm484_vm14 = vmor %vm482_vm13, %vm483_vm10  ;;  %vm512_vm0 = vweird.f32 %v465_v11 }
 0x132   : > { %v518_v21 = vmul.f32 %v495_v18, %v1248_v29  ;;  %v475_v22 = vsel %vm474_vm7, %v1065_v63, %v471_v16  ;;  %v478_v23 = vmul.f32 %v1069_v12, %v477_v17 }
 0x133   : > { %v516_v24 = vmul.f32 %v475_v22, %v1250_v30  ;;  %v499_v25 = vmul.f32 0.5, %v498_v19 }
 0x134   : > { %v527_v26 = vmul.f32 %v1058_v15, %v518_v21  ;;  %v479_v27 = vmul.f32 0.5, %v478_v23 }
 0x135   : > { %v525_v28 = vmul.f32 %v1058_v15, %v516_v24  ;;  %v500_v31 = vsub.f32 1.5, %v499_v25 }
 0x136   : > { %v1071_v32 = vpop.eup %1070  ;;  %v536_v33 = vadd.f32 %v1059_v20, %v527_v26  ;;  %v480_v34 = vsub.f32 1.5, %v479_v27 }
 0x137   : > { %v534_v35 = vadd.f32 %v1059_v20, %v525_v28  ;;  %v501_v36 = vmul.f32 %v1067_v9, %v500_v31  ;;  %v507_v37 = vmul.f32 %v1071_v32, %v465_v11  ;;  %vm513_vm15 = vweird.f32 %v1071_v32 }
 0x138   : > { %v541_v29 = vpack.c.bf16 %v536_v33, %v536_v33  ;;  %v481_v38 = vmul.f32 %v1069_v12, %v480_v34  ;;  %vm514_vm1 = vmor %vm512_vm0, %vm513_vm15 }
 0x139   : > { %v539_v30 = vpack.c.bf16 %v534_v35, %v534_v35  ;;  %v505_v39 = vsel %vm504_vm12, %v1067_v9, %v501_v36  ;;  %v508_v40 = vmul.f32 %v1071_v32, %v507_v37 }
 0x13a   : > { %547 = vst.msk [vmem:[#allocation2 + $0x8] sm:$0xf] %vm544_vm11, %v541_v29  ;;  %v519_v44 = vmul.f32 %v505_v39, %v1258_v41  ;;  %v485_v45 = vsel %vm484_vm14, %v1069_v12, %v481_v38 }
 0x13b   : > { %545 = vst.msk [vmem:[#allocation2] sm:$0xf] %vm544_vm11, %v539_v30  ;;  %v517_v46 = vmul.f32 %v485_v45, %v1260_v42  ;;  %v509_v47 = vmul.f32 0.5, %v508_v40 }
 0x13c   : > { %v528_v48 = vmul.f32 %v1058_v15, %v519_v44 }
 0x13d   : > { %v526_v49 = vmul.f32 %v1058_v15, %v517_v46  ;;  %v510_v50 = vsub.f32 1.5, %v509_v47 }
 0x13e   : > { %v537_v51 = vadd.f32 %v1059_v20, %v528_v48 }
 0x13f   : > { %v535_v52 = vadd.f32 %v1059_v20, %v526_v49  ;;  %v511_v53 = vmul.f32 %v1071_v32, %v510_v50 }
 0x140   : > { %v542_v54 = vpack.c.bf16 %v537_v51, %v537_v51 }
 0x141   : > { %v540_v55 = vpack.c.bf16 %v535_v52, %v535_v52  ;;  %v515_v56 = vsel %vm514_vm1, %v1071_v32, %v511_v53 }
 0x142   : > { %548 = vst.msk [vmem:[#allocation2 + $0xc] sm:$0xf] %vm544_vm11, %v542_v54  ;;  %v520_v41 = vmul.f32 %v515_v56, %v1262_v43 }
 0x143   : > { %546 = vst.msk [vmem:[#allocation2 + $0x4] sm:$0xf] %vm544_vm11, %v540_v55 }
 0x144   : > { %v529_v42 = vmul.f32 %v1058_v15, %v520_v41 }
 0x146   : > { %v538_v57 = vadd.f32 %v1059_v20, %v529_v42 }
 0x148   : > { %v543_v58 = vpack.c.bf16 %v538_v57, %v538_v57 }
 0x14a   : > { %549 = vst.msk [vmem:[#allocation2 + $0x10] sm:$0xf] %vm544_vm11, %v543_v58 }
 0x14b PF: > { %v996_v59 = vld [vmem:[%s1223_s24 + $0x18] sm:$0xff]  ;;  %v995_v60 = vld [vmem:[%s1223_s24 + $0x10] sm:$0xff]  ;;  %v994_v43 = vld [vmem:[%s1223_s24 + $0x8] sm:$0xff]  ;;  %vm604_vm2 = vcmask 523264   ;;  %s988_s14 = sshll.u32 (%p1199_p6), %s1123_s20, 2 }
 0x14c   : > { %618 = vmatpush.bf16.msra.mxu0 %v996_v59  ;;  %1008 = vmatpush.bf16.msra.mxu1 %v996_v59  ;;  %v993_v62 = vld [vmem:[%s1223_s24] sm:$0xff]  ;;  %v991_v0 = vld [vmem:[#allocation2] sm:$0xff]  ;;  %v992_v1 = vld [vmem:[#allocation2 + $0x8] sm:$0xff]  ;;  %s763_s18 = scalar_lea.vmem (%p1199_p6), %s1402_s5, %s988_s14 }
 0x14d   : > { %1009 = vmatpush.bf16.msra.mxu2 %v996_v59  ;;  %v1072_v3 = vld [vmem:[%s385_s17] ss:$0 sm:$0xff] }
 0x150   : > { %619 = vmatpush.bf16.msra.mxu0 %v995_v60  ;;  %1010 = vmatpush.bf16.msra.mxu1 %v995_v60 }
 0x151   : > { %1011 = vmatpush.bf16.msra.mxu2 %v995_v60  ;;  %v554_v61 = vld [vmem:[#allocation2 + $0x10] sm:$0xf] }
 0x152   : > { %v576_v63 = vunpack.c.l.b16 %v554_v61 }
 0x154   : > { %620 = vmatpush.bf16.msra.mxu0 %v994_v43  ;;  %1012 = vmatpush.bf16.msra.mxu1 %v994_v43  ;;  %v579_v2 = vpack.c.b16 %v576_v63, %v576_v63 }
 0x155   : > { %1013 = vmatpush.bf16.msra.mxu2 %v994_v43 }
 0x158   : > { %621 = vmatpush.bf16.msra.mxu0 %v993_v62  ;;  %1014 = vmatpush.bf16.msra.mxu1 %v993_v62 }
 0x159   : > { %1015 = vmatpush.bf16.msra.mxu2 %v993_v62 }
 0x15b   : > { %980 = vmatmul.msk.bf16.vlgmr.msra.gmra.mxu0 %vm604_vm2, %v991_v0  ;;  %981 = vmatmul.msk.bf16.vlgmr.msra.gmra.mxu1 %vm604_vm2, %v992_v1 }
 0x15c   : > { %982 = vmatmul.msk.bf16.vlgmr.msra.gmra.mxu2 %vm604_vm2, %v579_v2 }
 0x1d8   : > { %v623_v4 = vpop.f32.mrf.mxu0  ;;  %v628_v5 = vpop.f32.mrf.mxu1 }
 0x1d9   : > { %v1298_v6 = vadd.f32 %v1072_v3, %v623_v4  ;;  %v1300_v7 = vadd.f32 %v1072_v3, %v628_v5 }
 0x1db   : > { %v983_v8 = vmul.f32 -1.702, %v1298_v6  ;;  %v985_v9 = vmul.f32 -1.702, %v1300_v7 }
 0x1dd   : > { %v647_v10 = vmul.f32 1.442695, %v983_v8  ;;  %v651_v11 = vmul.f32 1.442695, %v985_v9 }
 0x1df   : > { %1073 = vpow2.f32 %v647_v10  ;;  %v633_v12 = vpop.f32.mrf.mxu2 }
 0x1e0   : > { %1075 = vpow2.f32 %v651_v11  ;;  %v1304_v13 = vadd.f32 %v1072_v3, %v633_v12  ;;  %v625_v14 = vpop.f32.mrf.mxu0  ;;  %v630_v15 = vpop.f32.mrf.mxu1 }
 0x1e1   : > { %v1306_v16 = vadd.f32 %v1072_v3, %v625_v14  ;;  %v1308_v17 = vadd.f32 %v1072_v3, %v630_v15 }
 0x1e2   : > { %v987_v18 = vmul.f32 -1.702, %v1304_v13 }
 0x1e3   : > { %v984_v19 = vmul.f32 -1.702, %v1306_v16  ;;  %v986_v20 = vmul.f32 -1.702, %v1308_v17 }
 0x1e4   : > { %v655_v21 = vmul.f32 1.442695, %v987_v18 }
 0x1e5   : > { %v1074_v22 = vpop.eup %1073  ;;  %v649_v23 = vmul.f32 1.442695, %v984_v19  ;;  %v653_v26 = vmul.f32 1.442695, %v986_v20 }
 0x1e6   : > { %v1076_v24 = vpop.eup %1075  ;;  %v657_v25 = vadd.f32 1.0, %v1074_v22  ;;  %1077 = vpow2.f32 %v655_v21 }
 0x1e7   : > { %v1313_v27 = vadd.f32 1.0, %v1076_v24  ;;  %1079 = vpow2.f32 %v649_v23  ;;  %v635_v28 = vpop.f32.mrf.mxu2 }
 0x1e8   : > { %1081 = vrcp.f32 %v657_v25  ;;  %v671_v45 = vand.u32 2147483647, %v657_v25  ;;  %v673_v46 = vand.u32 2147483648, %v657_v25  ;;  %vm667_vm3 = vweird.f32 %v657_v25 }
 0x1e9   : > { %1083 = vrcp.f32 %v1313_v27  ;;  %vm697_vm4 = vweird.f32 %v1313_v27  ;;  %v701_v48 = vand.u32 2147483647, %v1313_v27  ;;  %v703_v53 = vand.u32 2147483648, %v1313_v27 }
 0x1ea   : > { %1085 = vpow2.f32 %v653_v26  ;;  %vm1327_vm6 = vcmp.eq.f32.partialorder %v671_v45, 8.507059e+37  ;;  %v674_v55 = vor.u32 1.1754944e-38, %v673_v46 }
 0x1eb   : > { %v704_v24 = vor.u32 1.1754944e-38, %v703_v53 }
 0x1ec   : > { %v1078_v31 = vpop.eup %1077 }
 0x1ed   : > { %v1080_v32 = vpop.eup %1079  ;;  %v661_v33 = vadd.f32 1.0, %v1078_v31 }
 0x1ee   : > { %v1082_v34 = vpop.eup %1081  ;;  %v658_v35 = vadd.f32 1.0, %v1080_v32 }
 0x1ef   : > { %v1316_v36 = vpop.eup %1083  ;;  %v663_v37 = vmul.f32 %v1082_v34, %v657_v25  ;;  %1087 = vrcp.f32 %v661_v33  ;;  %vm668_vm5 = vweird.f32 %v1082_v34  ;;  %v731_v42 = vand.u32 2147483647, %v661_v33 }
 0x1f0   : > { %v1086_v29 = vpop.eup %1085  ;;  %v693_v38 = vmul.f32 %v1316_v36, %v1313_v27  ;;  %1089 = vrcp.f32 %v658_v35  ;;  %v733_v57 = vand.u32 2147483648, %v661_v33  ;;  %v686_v58 = vand.u32 2147483647, %v658_v35  ;;  %vm1332_vm7 = vmor %vm667_vm3, %vm668_vm5 }
 0x1f1   : > { %v664_v30 = vsub.f32 1.0, %v663_v37  ;;  %v1320_v44 = vadd.f32 1.0, %v1086_v29  ;;  %v688_v59 = vand.u32 2147483648, %v658_v35  ;;  %vm727_vm8 = vweird.f32 %v661_v33 }
 0x1f2   : > { %v694_v40 = vsub.f32 1.0, %v693_v38  ;;  %vm698_vm10 = vweird.f32 %v1316_v36  ;;  %vm682_vm11 = vweird.f32 %v658_v35  ;;  %vm732_vm14 = vcmp.eq.f32.partialorder %v731_v42, 8.507059e+37 }
 0x1f3   : > { %v665_v39 = vmul.f32 %v1082_v34, %v664_v30  ;;  %1091 = vrcp.f32 %v1320_v44  ;;  %v734_v4 = vor.u32 1.1754944e-38, %v733_v57  ;;  %vm1341_vm15 = vcmp.eq.f32.partialorder %v686_v58, 8.507059e+37  ;;  %vm1347_vm0 = vmor %vm697_vm4, %vm698_vm10 }
 0x1f4   : > { %v695_v52 = vmul.f32 %v1316_v36, %v694_v40  ;;  %v689_v8 = vor.u32 1.1754944e-38, %v688_v59  ;;  %v716_v14 = vand.u32 2147483647, %v1320_v44  ;;  %v718_v20 = vand.u32 2147483648, %v1320_v44 }
 0x1f5   : > { %v1088_v47 = vpop.eup %1087  ;;  %v666_v51 = vadd.f32 %v1082_v34, %v665_v39  ;;  %vm702_vm3 = vcmp.eq.f32.partialorder %v701_v48, 8.507059e+37  ;;  %vm712_vm4 = vweird.f32 %v1320_v44 }
 0x1f6   : > { %v723_v49 = vmul.f32 %v1088_v47, %v661_v33  ;;  %v1090_v50 = vpop.eup %1089  ;;  %vm728_vm9 = vweird.f32 %v1088_v47  ;;  %v696_v0 = vadd.f32 %v1316_v36, %v695_v52 }
 0x1f7   : > { %v678_v41 = vmul.f32 %v1090_v50, %v658_v35  ;;  %v670_v63 = vsel %vm1332_vm7, %v1082_v34, %v666_v51  ;;  %vm683_vm12 = vweird.f32 %v1090_v50  ;;  %vm729_vm13 = vmor %vm727_vm8, %vm728_vm9 }
 0x1f8   : > { %v724_v56 = vsub.f32 1.0, %v723_v49  ;;  %v675_v15 = vsel %vm1327_vm6, %v674_v55, %v670_v63  ;;  %v700_v18 = vsel %vm1347_vm0, %v1316_v36, %v696_v0  ;;  %vm684_vm1 = vmor %vm682_vm11, %vm683_vm12  ;;  %vm717_vm6 = vcmp.eq.f32.partialorder %v716_v14, 8.507059e+37 }
 0x1f9   : > { %v679_v61 = vsub.f32 1.0, %v678_v41  ;;  %v1092_v62 = vpop.eup %1091  ;;  %v737_v26 = vmul.f32 %v675_v15, %v1298_v6  ;;  %v705_v32 = vsel %vm702_vm3, %v704_v24, %v700_v18 }
 0x1fa   : > { %v725_v43 = vmul.f32 %v1088_v47, %v724_v56  ;;  %v708_v3 = vmul.f32 %v1092_v62, %v1320_v44  ;;  %vm713_vm2 = vweird.f32 %v1092_v62  ;;  %v739_v36 = vmul.f32 %v705_v32, %v1300_v7 }
 0x1fb   : > { %v680_v2 = vmul.f32 %v1090_v50, %v679_v61  ;;  %vm714_vm5 = vmor %vm712_vm4, %vm713_vm2 }
 0x1fc   : > { %v726_v1 = vadd.f32 %v1088_v47, %v725_v43  ;;  %v709_v12 = vsub.f32 1.0, %v708_v3 }
 0x1fd   : > { %v681_v11 = vadd.f32 %v1090_v50, %v680_v2 }
 0x1fe   : > { %v730_v10 = vsel %vm729_vm13, %v1088_v47, %v726_v1  ;;  %v710_v23 = vmul.f32 %v1092_v62, %v709_v12 }
 0x1ff   : > { %v735_v19 = vsel %vm732_vm14, %v734_v4, %v730_v10  ;;  %v685_v22 = vsel %vm684_vm1, %v1090_v50, %v681_v11 }
 0x200   : > { %v741_v21 = vmul.f32 %v735_v19, %v1304_v13  ;;  %v690_v25 = vsel %vm1341_vm15, %v689_v8, %v685_v22  ;;  %v711_v31 = vadd.f32 %v1092_v62, %v710_v23  ;;  %v719_v13 = vor.u32 1.1754944e-38, %v718_v20 }
 0x201   : > { %v738_v28 = vmul.f32 %v690_v25, %v1306_v16 }
 0x202   : > { %v746_v27 = vpack.c.bf16 %v741_v21, %v741_v21  ;;  %v715_v34 = vsel %vm714_vm5, %v1092_v62, %v711_v31 }
 0x203   : > { %v1000_v33 = vpack.c.bf16 %v738_v28, %v737_v26  ;;  %v720_v35 = vsel %vm717_vm6, %v719_v13, %v715_v34 }
 0x204   : > { %751 = vst [vmem:[%s1225_s25 + $0x10] sm:$0xf] %v746_v27  ;;  %v740_v37 = vmul.f32 %v720_v35, %v1308_v17  ;;  %758 = sbr.rel (!%p1199_p6) target bundleno = 530 (0x212), region = 89 }
 0x205   : > { %1001 = vst [vmem:[%s1225_s25] sm:$0xff] %v1000_v33  }
 0x206   : > { %v1005_v29 = vpack.c.bf16 %v740_v37, %v739_v36 }
 0x208   : > { %1007 = vst [vmem:[%s1225_s25 + $0x8] sm:$0xff] %v1005_v29  }
 0x20b   : > { %v788_v38 = vld [vmem:[%s1225_s25 + $0x10] sm:$0xf] }
 0x20c   : > { %v780_v6 = vld [vmem:[%s1225_s25] sm:$0xf]  ;;  %v782_v16 = vld [vmem:[%s1225_s25 + $0x4] sm:$0xf]  ;;  %789 = vst [vmem:[%s763_s18 + $0x20] sm:$0xf] %v788_v38 }
 0x20d   : > { %781 = vst [vmem:[%s763_s18] sm:$0xf] %v780_v6 }
 0x20e   : > { %783 = vst [vmem:[%s763_s18 + $0x8] sm:$0xf] %v782_v16 }
 0x20f   : > { %v784_v7 = vld [vmem:[%s1225_s25 + $0x8] sm:$0xf]  ;;  %v786_v17 = vld [vmem:[%s1225_s25 + $0xc] sm:$0xf] }
 0x210   : > { %785 = vst [vmem:[%s763_s18 + $0x10] sm:$0xf] %v784_v7 }
 0x211   : > { %787 = vst [vmem:[%s763_s18 + $0x18] sm:$0xf] %v786_v17 }
 0x212 PF: > { %s15_s22 = sadd.s32 1, %s1131_s22   ;;  %s1412_s18 = smov %s1119_s19 }
 0x213   : > { %p12_p13 = scmp.ge.s32.totalorder %s15_s22, 4   ;;  %s1413_s19 = smov %s1204_s28 }
 0x214   : > { %s1414_s20 = smov %s1127_s21  ;;  %s1415_s21 = smov %s1417_s23 }
 0x215   :  { %14 = sbr.rel (!%p12_p13) target bundleno = 3 (0x3), region = 173 }

// kernel: _lambda_.45
= control target key start
LH: loop header
LB: loop body
LE: loop exit
PB: predicated region body
PF: predicated region fallthrough
CT: control target
= control target key end

     0   :  { %vm237_vm0 = vcmask 523264   ;;  %s502_s1 = inlined_call_operand.vmem [shape: bf16[256,64], index: 1, kind: input, shape index: {}]   ;;  %s503_s2 = inlined_call_operand.vmem [shape: f32[1,64], index: 2, kind: input, shape index: {}]   ;;  %s504_s0 = inlined_call_operand.vmem [shape: bf16[40,256], index: 0, kind: input, shape index: {}]   ;;  %s505_s3 = inlined_call_operand.vmem [shape: f32[40,64], index: 3, kind: input, shape index: {}]   ;;  %s506_s4 = inlined_call_operand.vmem [shape: f32[40,64], index: 4, kind: output, shape index: {}]  }
   0x1   :  { %v338_v0 = vld [vmem:[%s502_s1 + $0x38] sm:$0xff]  ;;  %v337_v2 = vld [vmem:[%s502_s1 + $0x30] sm:$0xff]  ;;  %v336_v4 = vld [vmem:[%s502_s1 + $0x28] sm:$0xff] }
   0x2   :  { %v346_v1 = vld [vmem:[%s502_s1 + $0x78] sm:$0xff]  ;;  %347 = vmatpush.bf16.msra.mxu2 %v338_v0  ;;  %v345_v3 = vld [vmem:[%s502_s1 + $0x70] sm:$0xff]  ;;  %181 = vmatpush.bf16.msra.mxu0 %v338_v0  ;;  %v344_v5 = vld [vmem:[%s502_s1 + $0x68] sm:$0xff] }
   0x3   :  { %355 = vmatpush.bf16.msra.mxu3 %v346_v1  ;;  %204 = vmatpush.bf16.msra.mxu1 %v346_v1  ;;  %v335_v6 = vld [vmem:[%s502_s1 + $0x20] sm:$0xff]  ;;  %v334_v8 = vld [vmem:[%s502_s1 + $0x18] sm:$0xff]  ;;  %v333_v10 = vld [vmem:[%s502_s1 + $0x10] sm:$0xff] }
   0x4   :  { %v343_v7 = vld [vmem:[%s502_s1 + $0x60] sm:$0xff]  ;;  %v342_v9 = vld [vmem:[%s502_s1 + $0x58] sm:$0xff]  ;;  %v341_v11 = vld [vmem:[%s502_s1 + $0x50] sm:$0xff] }
   0x5   :  { %v332_v12 = vld [vmem:[%s502_s1 + $0x8] sm:$0xff]  ;;  %v331_v14 = vld [vmem:[%s502_s1] sm:$0xff]  ;;  %v257_v16 = vld [vmem:[%s504_s0 + $0x10] sm:$0xf] }
   0x6   :  { %348 = vmatpush.bf16.msra.mxu2 %v337_v2  ;;  %182 = vmatpush.bf16.msra.mxu0 %v337_v2  ;;  %v340_v13 = vld [vmem:[%s502_s1 + $0x48] sm:$0xff]  ;;  %v339_v15 = vld [vmem:[%s502_s1 + $0x40] sm:$0xff]  ;;  %v330_v17 = vld [vmem:[%s504_s0 + $0x14] sm:$0xf0] }
   0x7   :  { %356 = vmatpush.bf16.msra.mxu3 %v345_v3  ;;  %205 = vmatpush.bf16.msra.mxu1 %v345_v3  ;;  %v329_v18 = vld [vmem:[%s504_s0 + $0x14] sm:$0xf]  ;;  %v259_v19 = vld [vmem:[%s504_s0 + $0x18] sm:$0xf0]  ;;  %v249_v20 = vld [vmem:[%s504_s0] sm:$0xf]  ;;  %v258_v24 = vor.u32 %v330_v17, %v257_v16 }
   0x8   :  { %v328_v21 = vld [vmem:[%s504_s0 + $0x4] sm:$0xf0]  ;;  %v327_v22 = vld [vmem:[%s504_s0 + $0x4] sm:$0xf]  ;;  %v251_v23 = vld [vmem:[%s504_s0 + $0x8] sm:$0xf0]  ;;  %v262_v25 = vor.u32 %v329_v18, %v259_v19 }
   0x9   :  { %v250_v26 = vor.u32 %v328_v21, %v249_v20  ;;  %v254_v27 = vor.u32 %v327_v22, %v251_v23  ;;  %v21_v28 = vld [vmem:[%s504_s0 + $0x20] sm:$0xff]  ;;  %v229_v43 = vld [vmem:[%s505_s3 + $0x10] sm:$0xff]  ;;  %v228_v49 = vld [vmem:[%s505_s3 + $0x8] sm:$0xff] }
   0xa   :  { %349 = vmatpush.bf16.msra.mxu2 %v336_v4  ;;  %183 = vmatpush.bf16.msra.mxu0 %v336_v4  ;;  %v71_v29 = vunpack.c.l.b16 %v21_v28  ;;  %v72_v30 = vunpack.c.h.b16 %v21_v28  ;;  %v363_v33 = vld [vmem:[%s503_s2] ss:$0 sm:$0xff]  ;;  %v230_v55 = vld [vmem:[%s505_s3 + $0x18] sm:$0xff] }
   0xb   :  { %357 = vmatpush.bf16.msra.mxu3 %v344_v5  ;;  %206 = vmatpush.bf16.msra.mxu1 %v344_v5  ;;  %v227_v37 = vld [vmem:[%s505_s3] sm:$0xff] }
   0xc   :  { %v77_v31 = vpack.c.b16 %v71_v29, %v71_v29  ;;  %v78_v32 = vpack.c.b16 %v72_v30, %v72_v30  ;;  %v231_v61 = vld [vmem:[%s505_s3 + $0x20] sm:$0xff] }
   0xe   :  { %350 = vmatpush.bf16.msra.mxu2 %v335_v6  ;;  %184 = vmatpush.bf16.msra.mxu0 %v335_v6 }
   0xf   :  { %358 = vmatpush.bf16.msra.mxu3 %v343_v7  ;;  %207 = vmatpush.bf16.msra.mxu1 %v343_v7 }
  0x12   :  { %351 = vmatpush.bf16.msra.mxu2 %v334_v8  ;;  %185 = vmatpush.bf16.msra.mxu0 %v334_v8 }
  0x13   :  { %359 = vmatpush.bf16.msra.mxu3 %v342_v9  ;;  %208 = vmatpush.bf16.msra.mxu1 %v342_v9 }
  0x16   :  { %352 = vmatpush.bf16.msra.mxu2 %v333_v10  ;;  %186 = vmatpush.bf16.msra.mxu0 %v333_v10 }
  0x17   :  { %360 = vmatpush.bf16.msra.mxu3 %v341_v11  ;;  %209 = vmatpush.bf16.msra.mxu1 %v341_v11 }
  0x1a   :  { %353 = vmatpush.bf16.msra.mxu2 %v332_v12  ;;  %187 = vmatpush.bf16.msra.mxu0 %v332_v12 }
  0x1b   :  { %361 = vmatpush.bf16.msra.mxu3 %v340_v13  ;;  %210 = vmatpush.bf16.msra.mxu1 %v340_v13 }
  0x1e   :  { %354 = vmatpush.bf16.msra.mxu2 %v331_v14  ;;  %188 = vmatpush.bf16.msra.mxu0 %v331_v14 }
  0x1f   :  { %362 = vmatpush.bf16.msra.mxu3 %v339_v15  ;;  %211 = vmatpush.bf16.msra.mxu1 %v339_v15 }
  0x21   :  { %194 = vmatmul.bf16.vlgmr.msra.gmra.mxu2 %v258_v24  ;;  %189 = vmatmul.bf16.vlgmr.msra.gmra.mxu0 %v250_v26 }
  0x22   :  { %217 = vmatmul.bf16.vlgmr.msra.gmra.mxu3 %v262_v25  ;;  %212 = vmatmul.bf16.vlgmr.msra.gmra.mxu1 %v254_v27 }
  0x31   :  { %199 = vmatmul.bf16.gmra.mxu2 %v77_v31 }
  0x32   :  { %222 = vmatmul.bf16.gmra.mxu3 %v78_v32 }
  0x9e   :  { %v190_v34 = vpop.f32.mrf.mxu0 }
  0x9f   :  { %v213_v35 = vpop.f32.mrf.mxu1  ;;  %v191_v36 = vadd.f32 %v363_v33, %v190_v34 }
  0xa1   :  { %v214_v38 = vadd.f32 %v213_v35, %v191_v36 }
  0xa3   :  { %v232_v41 = vadd.f32 %v227_v37, %v214_v38 }
  0xa4   :  { %v195_v39 = vpop.f32.mrf.mxu2 }
  0xa5   :  { %v218_v40 = vpop.f32.mrf.mxu3  ;;  %v196_v42 = vadd.f32 %v363_v33, %v195_v39  ;;  %238 = vst.msk [vmem:[%s506_s4] sm:$0xff] %vm237_vm0, %v232_v41 }
  0xa6   :  { %v192_v45 = vpop.f32.mrf.mxu0 }
  0xa7   :  { %v219_v44 = vadd.f32 %v218_v40, %v196_v42  ;;  %v215_v46 = vpop.f32.mrf.mxu1  ;;  %v193_v47 = vadd.f32 %v363_v33, %v192_v45 }
  0xa9   :  { %v234_v48 = vadd.f32 %v229_v43, %v219_v44  ;;  %v216_v50 = vadd.f32 %v215_v46, %v193_v47 }
  0xab   :  { %240 = vst.msk [vmem:[%s506_s4 + $0x10] sm:$0xff] %vm237_vm0, %v234_v48  ;;  %v233_v53 = vadd.f32 %v228_v49, %v216_v50 }
  0xac   :  { %v197_v51 = vpop.f32.mrf.mxu2 }
  0xad   :  { %v220_v52 = vpop.f32.mrf.mxu3  ;;  %v198_v54 = vadd.f32 %v363_v33, %v197_v51  ;;  %239 = vst.msk [vmem:[%s506_s4 + $0x8] sm:$0xff] %vm237_vm0, %v233_v53 }
  0xaf   :  { %v221_v56 = vadd.f32 %v220_v52, %v198_v54 }
  0xb1   :  { %v235_v57 = vadd.f32 %v230_v55, %v221_v56 }
  0xb3   :  { %241 = vst.msk [vmem:[%s506_s4 + $0x18] sm:$0xff] %vm237_vm0, %v235_v57 }
  0xb4   :  { %v200_v58 = vpop.f32.mrf.mxu2 }
  0xb5   :  { %v223_v59 = vpop.f32.mrf.mxu3  ;;  %v201_v60 = vadd.f32 %v363_v33, %v200_v58 }
  0xb7   :  { %v224_v62 = vadd.f32 %v223_v59, %v201_v60 }
  0xb9   :  { %v236_v63 = vadd.f32 %v231_v61, %v224_v62 }
  0xbb   :  { %242 = vst.msk [vmem:[%s506_s4 + $0x20] sm:$0xff] %vm237_vm0, %v236_v63 }
  0xbc   :  { %v202_v0 = vpop.f32.mrf.mxu2 }
  0xbd   :  { %v225_v1 = vpop.f32.mrf.mxu3 }

// kernel: _lambda_.46
= control target key start
LH: loop header
LB: loop body
LE: loop exit
PB: predicated region body
PF: predicated region fallthrough
CT: control target
= control target key end

     0   :  { %vm26_vm0 = vcmask 523264   ;;  %v289_v10 = vmov 64.0   ;;  %s426_s0 = inlined_call_operand.vmem [shape: f32[40,64], index: 0, kind: input, shape index: {}]   ;;  %s427_s3 = inlined_call_operand.vmem [shape: f32[1,64], index: 3, kind: input, shape index: {}]   ;;  %s428_s4 = inlined_call_operand.vmem [shape: f32[1,64], index: 4, kind: input, shape index: {}]   ;;  %s429_s2 = inlined_call_operand.vmem [shape: f32[1,64], index: 2, kind: input, shape index: {}]   ;;  %s430_s1 = inlined_call_operand.vmem [shape: bf16[64,64], index: 1, kind: input, shape index: {}]   ;;  %s431_s5 = inlined_call_operand.vmem [shape: f32[40,64], index: 5, kind: output, shape index: {}]  }
   0x1   :  { %v25_v0 = vld [vmem:[%s426_s0 + $0x20] sm:$0xff]  ;;  %v22_v1 = vld [vmem:[%s426_s0 + $0x8] sm:$0xff]  ;;  %v24_v4 = vld [vmem:[%s426_s0 + $0x18] sm:$0xff]  ;;  %277 = vrcp.f32 %v289_v10 }
   0x2   :  { %v39_v2 = vsel %vm26_vm0, %v25_v0, 0.0  ;;  %v30_v3 = vsel %vm26_vm0, %v22_v1, 0.0  ;;  %v36_v5 = vsel %vm26_vm0, %v24_v4, 0.0  ;;  %v23_v6 = vld [vmem:[%s426_s0 + $0x10] sm:$0xff]  ;;  %v21_v7 = vld [vmem:[%s426_s0] sm:$0xff]  ;;  %v264_v42 = vld [vmem:[%s430_s1 + $0x18] sm:$0xff] }
   0x3   :  { %40 = vadd.xlane.f32.xlu0 %v39_v2  ;;  %31 = vadd.xlane.f32.xlu1 %v30_v3  ;;  %v33_v8 = vsel %vm26_vm0, %v23_v6, 0.0  ;;  %v27_v9 = vsel %vm26_vm0, %v21_v7, 0.0  ;;  %v263_v43 = vld [vmem:[%s430_s1 + $0x10] sm:$0xff]  ;;  %v262_v44 = vld [vmem:[%s430_s1 + $0x8] sm:$0xff]  ;;  %v261_v45 = vld [vmem:[%s430_s1] sm:$0xff] }
   0x4   :  { %37 = vadd.xlane.f32.xlu2 %v36_v5  ;;  %266 = vmatpush.bf16.msra.mxu2 %v264_v42 }
   0x5   :  { %214 = vmatpush.bf16.msra.mxu0 %v264_v42  ;;  %265 = vmatpush.bf16.msra.mxu1 %v264_v42 }
   0x7   :  { %v278_v11 = vpop.eup %277 }
   0x8   :  { %v43_v12 = vmul.f32 64.0, %v278_v11  ;;  %vm47_vm1 = vweird.f32 %v278_v11  ;;  %268 = vmatpush.bf16.msra.mxu2 %v263_v43 }
   0x9   :  { %215 = vmatpush.bf16.msra.mxu0 %v263_v43  ;;  %267 = vmatpush.bf16.msra.mxu1 %v263_v43 }
   0xa   :  { %v44_v13 = vsub.f32 1.0, %v43_v12 }
   0xb   :  { %34 = vadd.xlane.f32.xlu1 %v33_v8  ;;  %28 = vadd.xlane.f32.xlu0 %v27_v9 }
   0xc   :  { %v45_v14 = vmul.f32 %v278_v11, %v44_v13  ;;  %270 = vmatpush.bf16.msra.mxu2 %v262_v44  ;;  %v274_v13 = vld [vmem:[%s427_s3] ss:$0 sm:$0xff] }
   0xd   :  { %216 = vmatpush.bf16.msra.mxu0 %v262_v44  ;;  %269 = vmatpush.bf16.msra.mxu1 %v262_v44 }
   0xe   :  { %v46_v15 = vadd.f32 %v278_v11, %v45_v14 }
  0x10   :  { %v340_v16 = vsel %vm47_vm1, %v278_v11, %v46_v15  ;;  %272 = vmatpush.bf16.msra.mxu2 %v261_v45 }
  0x11   :  { %217 = vmatpush.bf16.msra.mxu0 %v261_v45  ;;  %271 = vmatpush.bf16.msra.mxu1 %v261_v45 }
  0x76   :  { %v41_v17 = vpop.xlane.xlu0 %40  ;;  %v32_v18 = vpop.xlane.xlu1 %31 }
  0x77   :  { %v53_v19 = vmul.f32 %v340_v16, %v41_v17  ;;  %v50_v20 = vmul.f32 %v340_v16, %v32_v18  ;;  %v38_v25 = vpop.xlane.xlu2 %37  ;;  %v275_v18 = vld [vmem:[%s428_s4] ss:$0 sm:$0xff] }
  0x78   :  { %v52_v32 = vmul.f32 %v340_v16, %v38_v25 }
  0x79   :  { %v344_v21 = vsub.f32 %v25_v0, %v53_v19  ;;  %v346_v22 = vsub.f32 %v22_v1, %v50_v20 }
  0x7a   :  { %v361_v35 = vsub.f32 %v24_v4, %v52_v32 }
  0x7b   :  { %v63_v23 = vmul.f32 %v344_v21, %v344_v21  ;;  %v60_v24 = vmul.f32 %v346_v22, %v346_v22 }
  0x7c   :  { %v62_v40 = vmul.f32 %v361_v35, %v361_v35 }
  0x7d   :  { %v76_v26 = vsel %vm26_vm0, %v63_v23, 0.0  ;;  %v67_v27 = vsel %vm26_vm0, %v60_v24, 0.0 }
  0x7e   :  { %77 = vadd.xlane.f32.xlu2 %v76_v26  ;;  %68 = vadd.xlane.f32.xlu1 %v67_v27  ;;  %v35_v28 = vpop.xlane.xlu1 %34  ;;  %v29_v29 = vpop.xlane.xlu0 %28  ;;  %v73_v41 = vsel %vm26_vm0, %v62_v40, 0.0 }
  0x7f   :  { %v51_v30 = vmul.f32 %v340_v16, %v35_v28  ;;  %v49_v31 = vmul.f32 %v340_v16, %v29_v29 }
  0x81   :  { %v357_v33 = vsub.f32 %v23_v6, %v51_v30  ;;  %v359_v34 = vsub.f32 %v21_v7, %v49_v31 }
  0x83   :  { %v61_v36 = vmul.f32 %v357_v33, %v357_v33  ;;  %v59_v37 = vmul.f32 %v359_v34, %v359_v34 }
  0x85   :  { %v70_v38 = vsel %vm26_vm0, %v61_v36, 0.0  ;;  %v64_v39 = vsel %vm26_vm0, %v59_v37, 0.0 }
  0x86   :  { %71 = vadd.xlane.f32.xlu2 %v70_v38  ;;  %65 = vadd.xlane.f32.xlu0 %v64_v39 }
  0x8e   :  { %74 = vadd.xlane.f32.xlu0 %v73_v41 }
  0xf1   :  { %v78_v46 = vpop.xlane.xlu2 %77  ;;  %v69_v47 = vpop.xlane.xlu1 %68 }
  0xf2   :  { %v83_v48 = vmul.f32 %v78_v46, %v340_v16  ;;  %v80_v49 = vmul.f32 %v69_v47, %v340_v16 }
  0xf4   :  { %v88_v50 = vadd.f32 1e-05, %v83_v48  ;;  %v85_v51 = vadd.f32 1e-05, %v80_v49 }
  0xf6   :  { %279 = vrsqrt.f32 %v88_v50  ;;  %vm135_vm3 = vweird.f32 %v88_v50  ;;  %vm105_vm4 = vweird.f32 %v85_v51 }
  0xf7   :  { %281 = vrsqrt.f32 %v85_v51 }
  0xf9   :  { %v72_v52 = vpop.xlane.xlu2 %71  ;;  %v66_v53 = vpop.xlane.xlu0 %65 }
  0xfa   :  { %v81_v54 = vmul.f32 %v72_v52, %v340_v16  ;;  %v79_v55 = vmul.f32 %v66_v53, %v340_v16 }
  0xfc   :  { %v280_v56 = vpop.eup %279  ;;  %v86_v57 = vadd.f32 1e-05, %v81_v54  ;;  %v84_v58 = vadd.f32 1e-05, %v79_v55 }
  0xfd   :  { %v282_v59 = vpop.eup %281  ;;  %v130_v60 = vmul.f32 %v280_v56, %v88_v50  ;;  %vm136_vm2 = vweird.f32 %v280_v56 }
  0xfe   :  { %v100_v61 = vmul.f32 %v282_v59, %v85_v51  ;;  %283 = vrsqrt.f32 %v86_v57  ;;  %vm137_vm5 = vmor %vm135_vm3, %vm136_vm2  ;;  %vm106_vm6 = vweird.f32 %v282_v59  ;;  %vm115_vm8 = vweird.f32 %v86_v57 }
  0xff   :  { %v131_v62 = vmul.f32 %v280_v56, %v130_v60  ;;  %285 = vrsqrt.f32 %v84_v58  ;;  %vm107_vm7 = vmor %vm105_vm4, %vm106_vm6  ;;  %vm95_vm11 = vweird.f32 %v84_v58 }
 0x100   :  { %v101_v63 = vmul.f32 %v282_v59, %v100_v61 }
 0x101   :  { %v132_v0 = vmul.f32 0.5, %v131_v62  ;;  %v75_v1 = vpop.xlane.xlu0 %74 }
 0x102   :  { %v102_v2 = vmul.f32 0.5, %v101_v63  ;;  %v82_v3 = vmul.f32 %v75_v1, %v340_v16 }
 0x103   :  { %v133_v4 = vsub.f32 1.5, %v132_v0 }
 0x104   :  { %v284_v5 = vpop.eup %283  ;;  %v103_v6 = vsub.f32 1.5, %v102_v2  ;;  %v87_v7 = vadd.f32 1e-05, %v82_v3 }
 0x105   :  { %v286_v8 = vpop.eup %285  ;;  %v134_v9 = vmul.f32 %v280_v56, %v133_v4  ;;  %v110_v10 = vmul.f32 %v284_v5, %v86_v57  ;;  %vm116_vm10 = vweird.f32 %v284_v5 }
 0x106   :  { %v104_v11 = vmul.f32 %v282_v59, %v103_v6  ;;  %v90_v12 = vmul.f32 %v286_v8, %v84_v58  ;;  %287 = vrsqrt.f32 %v87_v7  ;;  %vm96_vm9 = vweird.f32 %v286_v8  ;;  %vm117_vm13 = vmor %vm115_vm8, %vm116_vm10 }
 0x107   :  { %v138_v14 = vsel %vm137_vm5, %v280_v56, %v134_v9  ;;  %v111_v15 = vmul.f32 %v284_v5, %v110_v10  ;;  %vm97_vm12 = vmor %vm95_vm11, %vm96_vm9  ;;  %vm125_vm15 = vweird.f32 %v87_v7 }
 0x108   :  { %v91_v16 = vmul.f32 %v286_v8, %v90_v12  ;;  %v143_v17 = vmul.f32 %v138_v14, %v344_v21  ;;  %v108_v20 = vsel %vm107_vm7, %v282_v59, %v104_v11 }
 0x109   :  { %v112_v19 = vmul.f32 0.5, %v111_v15  ;;  %v140_v29 = vmul.f32 %v108_v20, %v346_v22 }
 0x10a   :  { %v92_v23 = vmul.f32 0.5, %v91_v16  ;;  %v152_v24 = vmul.f32 %v274_v13, %v143_v17 }
 0x10b   :  { %v113_v25 = vsub.f32 1.5, %v112_v19  ;;  %v149_v41 = vmul.f32 %v274_v13, %v140_v29 }
 0x10c   :  { %v288_v26 = vpop.eup %287  ;;  %v93_v27 = vsub.f32 1.5, %v92_v23  ;;  %v161_v28 = vadd.f32 %v275_v18, %v152_v24 }
 0x10d   :  { %v114_v30 = vmul.f32 %v284_v5, %v113_v25  ;;  %v120_v21 = vmul.f32 %v288_v26, %v87_v7  ;;  %vm126_vm14 = vweird.f32 %v288_v26  ;;  %v158_v46 = vadd.f32 %v275_v18, %v149_v41 }
 0x10e   :  { %v94_v31 = vmul.f32 %v286_v8, %v93_v27  ;;  %v164_v32 = vpack.c.bf16 %v161_v28, %v161_v28  ;;  %vm127_vm1 = vmor %vm125_vm15, %vm126_vm14 }
 0x10f   :  { %v121_v36 = vmul.f32 %v288_v26, %v120_v21  ;;  %v118_v38 = vsel %vm117_vm13, %v284_v5, %v114_v30 }
 0x110   :  { %v98_v37 = vsel %vm97_vm12, %v286_v8, %v94_v31  ;;  %260 = vmatmul.msk.bf16.vlgmr.msra.gmra.mxu2 %vm26_vm0, %v164_v32  ;;  %v141_v43 = vmul.f32 %v118_v38, %v357_v33  ;;  %v276_v33 = vld [vmem:[%s429_s2] ss:$0 sm:$0xff] }
 0x111   :  { %v139_v39 = vmul.f32 %v98_v37, %v359_v34  ;;  %v122_v40 = vmul.f32 0.5, %v121_v36 }
 0x112   :  { %v150_v50 = vmul.f32 %v274_v13, %v141_v43 }
 0x113   :  { %v123_v42 = vsub.f32 1.5, %v122_v40  ;;  %v148_v22 = vmul.f32 %v274_v13, %v139_v39 }
 0x114   :  { %v159_v51 = vadd.f32 %v275_v18, %v150_v50 }
 0x115   :  { %v124_v44 = vmul.f32 %v288_v26, %v123_v42  ;;  %v157_v45 = vadd.f32 %v275_v18, %v148_v22 }
 0x117   :  { %v128_v47 = vsel %vm127_vm1, %v288_v26, %v124_v44  ;;  %v162_v48 = vpack.c.bf16 %v158_v46, %v157_v45 }
 0x118   :  { %v142_v49 = vmul.f32 %v128_v47, %v361_v35 }
 0x119   :  { %258 = vmatmul.msk.bf16.vlgmr.msra.gmra.mxu0 %vm26_vm0, %v162_v48 }
 0x11a   :  { %v151_v34 = vmul.f32 %v274_v13, %v142_v49 }
 0x11c   :  { %v160_v52 = vadd.f32 %v275_v18, %v151_v34 }
 0x11e   :  { %v163_v53 = vpack.c.bf16 %v160_v52, %v159_v51 }
 0x120   :  { %259 = vmatmul.msk.bf16.vlgmr.msra.gmra.mxu1 %vm26_vm0, %v163_v53 }
 0x193   :  { %v229_v54 = vpop.f32.mrf.mxu2 }
 0x194   :  { %v230_v55 = vadd.f32 %v276_v33, %v229_v54 }
 0x196   :  { %237 = vst.msk [vmem:[%s431_s5 + $0x20] sm:$0xff] %vm26_vm0, %v230_v55  ;;  %v219_v35 = vpop.f32.mrf.mxu0 }
 0x197   :  { %v220_v56 = vadd.f32 %v276_v33, %v219_v35 }
 0x199   :  { %233 = vst.msk [vmem:[%s431_s5] sm:$0xff] %vm26_vm0, %v220_v56 }
 0x19b   :  { %v231_v57 = vpop.f32.mrf.mxu2 }
 0x19d   :  { %v224_v58 = vpop.f32.mrf.mxu1 }
 0x19e   :  { %v221_v59 = vpop.f32.mrf.mxu0  ;;  %v225_v60 = vadd.f32 %v276_v33, %v224_v58 }
 0x19f   :  { %v222_v61 = vadd.f32 %v276_v33, %v221_v59 }
 0x1a0   :  { %235 = vst.msk [vmem:[%s431_s5 + $0x10] sm:$0xff] %vm26_vm0, %v225_v60 }
 0x1a1   :  { %234 = vst.msk [vmem:[%s431_s5 + $0x8] sm:$0xff] %vm26_vm0, %v222_v61 }
 0x1a5   :  { %v226_v62 = vpop.f32.mrf.mxu1 }
 0x1a6   :  { %v227_v63 = vadd.f32 %v276_v33, %v226_v62 }
 0x1a8   :  { %236 = vst.msk [vmem:[%s431_s5 + $0x18] sm:$0xff] %vm26_vm0, %v227_v63 }

// kernel: _lambda_.38
= control target key start
LH: loop header
LB: loop body
LE: loop exit
PB: predicated region body
PF: predicated region fallthrough
CT: control target
= control target key end

     0   :  { %vm34_vm0 = vcmask 523264   ;;  %s95_s0 = inlined_call_operand.vmem [shape: f32[32,64], index: 0, kind: input, shape index: {}]   ;;  %s96_s1 = inlined_call_operand.vmem [shape: f32[1,64], index: 1, kind: input, shape index: {}]   ;;  %s97_s2 = inlined_call_operand.vmem [shape: f32[1,64], index: 2, kind: input, shape index: {}]   ;;  %s98_s3 = inlined_call_operand.vmem [shape: f32[32,64], index: 3, kind: output, shape index: {}]  }
   0x1   :  { %v14_v0 = vld [vmem:[%s95_s0] sm:$0xff]  ;;  %v15_v3 = vld [vmem:[%s95_s0 + $0x8] sm:$0xff]  ;;  %v16_v6 = vld [vmem:[%s95_s0 + $0x10] sm:$0xff] }
   0x2   :  { %v43_v1 = vld [vmem:[%s96_s1] ss:$0 sm:$0xff]  ;;  %v17_v7 = vld [vmem:[%s95_s0 + $0x18] sm:$0xff] }
   0x3   :  { %v44_v2 = vld [vmem:[%s97_s2] ss:$0 sm:$0xff]  ;;  %v22_v4 = vmul.f32 %v43_v1, %v14_v0  ;;  %v23_v5 = vmul.f32 %v43_v1, %v15_v3  ;;  %v24_v8 = vmul.f32 %v43_v1, %v16_v6  ;;  %v25_v9 = vmul.f32 %v43_v1, %v17_v7 }
   0x5   :  { %v30_v10 = vadd.f32 %v44_v2, %v22_v4  ;;  %v31_v11 = vadd.f32 %v44_v2, %v23_v5  ;;  %v32_v12 = vadd.f32 %v44_v2, %v24_v8  ;;  %v33_v13 = vadd.f32 %v44_v2, %v25_v9 }
   0x7   :  { %35 = vst.msk [vmem:[%s98_s3] sm:$0xff] %vm34_vm0, %v30_v10 }
   0x8   :  { %36 = vst.msk [vmem:[%s98_s3 + $0x8] sm:$0xff] %vm34_vm0, %v31_v11 }
   0x9   :  { %37 = vst.msk [vmem:[%s98_s3 + $0x10] sm:$0xff] %vm34_vm0, %v32_v12 }
   0xa   :  { %38 = vst.msk [vmem:[%s98_s3 + $0x18] sm:$0xff] %vm34_vm0, %v33_v13 }

// kernel: _lambda_.37
= control target key start
LH: loop header
LB: loop body
LE: loop exit
PB: predicated region body
PF: predicated region fallthrough
CT: control target
= control target key end

     0   :  { %vm20_vm0 = vcmask 516096   ;;  %vm28_vm1 = vcmask 523264   ;;  %v114_v0 = vmov 0.0   ;;  %v115_v12 = vmov 32.0   ;;  %s203_s3 = inlined_call_operand.vmem [shape: f32[1,64], index: 3, kind: output, shape index: {0}]   ;;  %s204_s4 = inlined_call_operand.vmem [shape: f32[1,64], index: 4, kind: output, shape index: {1}]   ;;  %s205_s0 = inlined_call_operand.vmem [shape: f32[32,64], index: 0, kind: input, shape index: {}]   ;;  %s206_s1 = inlined_call_operand.vmem [shape: f32[1,64], index: 1, kind: input, shape index: {}]   ;;  %s207_s2 = inlined_call_operand.vmem [shape: f32[1,64], index: 2, kind: input, shape index: {}]  }
   0x1   :  { %21 = vst.msk [vmem:[%s203_s3] sm:$0x1] %vm20_vm0, %v114_v0  ;;  %v23_v1 = vld [vmem:[%s205_s0] sm:$0xff]  ;;  %v24_v2 = vld [vmem:[%s205_s0 + $0x8] sm:$0xff]  ;;  %v25_v3 = vld [vmem:[%s205_s0 + $0x10] sm:$0xff]  ;;  %110 = vrcp.f32 %v115_v12 }
   0x2   :  { %22 = vst.msk [vmem:[%s204_s4] sm:$0x1] %vm20_vm0, %v114_v0  ;;  %v26_v4 = vld [vmem:[%s205_s0 + $0x18] sm:$0xff]  ;;  %v29_v5 = vsel %vm28_vm1, %v23_v1, 0.0  ;;  %v30_v6 = vsel %vm28_vm1, %v24_v2, 0.0  ;;  %v32_v7 = vsel %vm28_vm1, %v25_v3, 0.0  ;;  %v46_v8 = vmul.f32 %v23_v1, %v23_v1 }
   0x3   :  { %v31_v9 = vadd.f32 %v30_v6, %v29_v5  ;;  %v47_v10 = vmul.f32 %v24_v2, %v24_v2  ;;  %v48_v11 = vmul.f32 %v25_v3, %v25_v3  ;;  %v34_v13 = vsel %vm28_vm1, %v26_v4, 0.0  ;;  %v82_v59 = vld [vmem:[%s206_s1] sm:$0x1] }
   0x4   :  { %v49_v14 = vmul.f32 %v26_v4, %v26_v4  ;;  %v50_v15 = vsel %vm28_vm1, %v46_v8, 0.0  ;;  %v96_v63 = vld [vmem:[%s207_s2] sm:$0x1] }
   0x5   :  { %v33_v16 = vadd.f32 %v32_v7, %v31_v9  ;;  %v51_v17 = vsel %vm28_vm1, %v47_v10, 0.0  ;;  %v53_v18 = vsel %vm28_vm1, %v48_v11, 0.0 }
   0x6   :  { %v52_v19 = vadd.f32 %v51_v17, %v50_v15  ;;  %v55_v21 = vsel %vm28_vm1, %v49_v14, 0.0 }
   0x7   :  { %v35_v20 = vadd.f32 %v34_v13, %v33_v16  ;;  %v111_v23 = vpop.eup %110 }
   0x8   :  { %v54_v22 = vadd.f32 %v53_v18, %v52_v19  ;;  %v70_v28 = vmul.f32 32.0, %v111_v23  ;;  %v27_v35 = vld [vmem:[%s203_s3] sm:$0x1]  ;;  %vm74_vm2 = vweird.f32 %v111_v23 }
   0x9   :  { %v36_v24 = vrot.slane %v35_v20, 4  ;;  %v45_v41 = vld [vmem:[%s204_s4] sm:$0x1] }
   0xa   :  { %v56_v25 = vadd.f32 %v55_v21, %v54_v22  ;;  %v71_v33 = vsub.f32 1.0, %v70_v28 }
   0xb   :  { %v37_v26 = vadd.f32 %v36_v24, %v35_v20 }
   0xc   :  { %v57_v27 = vrot.slane %v56_v25, 4  ;;  %v72_v39 = vmul.f32 %v111_v23, %v71_v33 }
   0xd   :  { %v38_v29 = vrot.slane %v37_v26, 2 }
   0xe   :  { %v58_v30 = vadd.f32 %v57_v27, %v56_v25  ;;  %v73_v44 = vadd.f32 %v111_v23, %v72_v39 }
   0xf   :  { %v39_v31 = vadd.f32 %v38_v29, %v37_v26 }
  0x10   :  { %v59_v32 = vrot.slane %v58_v30, 2  ;;  %v75_v45 = vsel %vm74_vm2, %v111_v23, %v73_v44 }
  0x11   :  { %v40_v34 = vrot.slane %v39_v31, 1 }
  0x12   :  { %v60_v36 = vadd.f32 %v59_v32, %v58_v30 }
  0x13   :  { %v41_v37 = vadd.f32 %v40_v34, %v39_v31 }
  0x14   :  { %v61_v38 = vrot.slane %v60_v36, 1 }
  0x15   :  { %v42_v40 = vadd.f32 %v41_v37, %v27_v35 }
  0x16   :  { %v62_v42 = vadd.f32 %v61_v38, %v60_v36 }
  0x17   :  { %44 = vst.msk [vmem:[%s203_s3] sm:$0x1] %vm20_vm0, %v42_v40 }
  0x18   :  { %v63_v43 = vadd.f32 %v62_v42, %v45_v41 }
  0x1a   :  { %64 = vst.msk [vmem:[%s204_s4] sm:$0x1] %vm20_vm0, %v63_v43 }
  0x1e   :  { %v68_v46 = vld [vmem:[%s203_s3] sm:$0x1] }
  0x1f   :  { %v76_v47 = vmul.f32 %v75_v45, %v68_v46 }
  0x21   :  { %v77_v48 = vld [vmem:[%s204_s4] sm:$0x1]  ;;  %v79_v49 = vmul.f32 %v76_v47, %v76_v47 }
  0x22   :  { %v78_v50 = vmul.f32 %v77_v48, %v75_v45 }
  0x24   :  { %v80_v51 = vsub.f32 %v78_v50, %v79_v49 }
  0x26   :  { %v81_v52 = vmax.f32 %v80_v51, 0.0 }
  0x28   :  { %v83_v53 = vadd.f32 1e-05, %v81_v52 }
  0x2a   :  { %112 = vrsqrt.f32 %v83_v53  ;;  %vm90_vm4 = vweird.f32 %v83_v53 }
  0x30   :  { %v113_v54 = vpop.eup %112 }
  0x31   :  { %v85_v55 = vmul.f32 %v113_v54, %v83_v53  ;;  %vm91_vm3 = vweird.f32 %v113_v54 }
  0x32   :  { %vm92_vm5 = vmor %vm90_vm4, %vm91_vm3 }
  0x33   :  { %v86_v56 = vmul.f32 %v113_v54, %v85_v55 }
  0x35   :  { %v87_v57 = vmul.f32 0.5, %v86_v56 }
  0x37   :  { %v88_v58 = vsub.f32 1.5, %v87_v57 }
  0x39   :  { %v89_v60 = vmul.f32 %v113_v54, %v88_v58 }
  0x3b   :  { %v93_v61 = vsel %vm92_vm5, %v113_v54, %v89_v60 }
  0x3c   :  { %v94_v62 = vmul.f32 %v93_v61, %v82_v59 }
  0x3e   :  { %95 = vst.msk [vmem:[%s203_s3] sm:$0x1] %vm20_vm0, %v94_v62  ;;  %v97_v0 = vmul.f32 %v94_v62, %v76_v47 }
  0x40   :  { %v98_v1 = vsub.f32 %v96_v63, %v97_v0 }
  0x42   :  { %99 = vst.msk [vmem:[%s204_s4] sm:$0x1] %vm20_vm0, %v98_v1 }

// kernel: _lambda_.36
= control target key start
LH: loop header
LB: loop body
LE: loop exit
PB: predicated region body
PF: predicated region fallthrough
CT: control target
= control target key end

     0   :  { %s1315_s12 = smov 0   ;;  %s1317_s13 = smov 0   ;;  %s1695_s0 = inlined_call_operand.vmem [shape: f32[2,4,4,192], index: 0, kind: input, shape index: {}]   ;;  %s1696_s1 = inlined_call_operand.vmem [shape: bf16[3,192,64], index: 1, kind: input, shape index: {}]   ;;  %s1697_s2 = inlined_call_operand.vmem [shape: f32[1,64], index: 2, kind: input, shape index: {}]   ;;  %s1698_s3 = inlined_call_operand.vmem [shape: f32[2,4,4,64], index: 3, kind: output, shape index: {}]  }
   0x1   :  { %s1319_s14 = smov 0  }
   0x2 LB: > { %s25_s15 = sadd.s32 1, %s1289_s13  ;;  %p988_p0 = scmp.ge.s32.totalorder %s1293_s14, 1  ;;  %s1293_s14 = sphi %s1319_s14, %s13_s14   ;;  %s1289_s13 = sphi %s1317_s13, %s1700_s13   ;;  %s1285_s12 = sphi %s1315_s12, %s1699_s12  }
   0x3   : > { %p27_p1 = scmp.ge.s32.totalorder %s25_s15, 2  ;;  %p157_p2 = scmp.lt.s32.totalorder %s1293_s14, 3 }
   0x5   : > { %s1702_s15 = smov (%p27_p1, %s25_s15), 0  ;;  %p158_p3 = pnand %p988_p0, %p157_p2 }
   0x6   : > { %p188_p4 = scmp.lt.s32.totalorder (!%p158_p3), %s1285_s12, 1 }
   0x7   : > { %161 = sbr.rel (%p158_p3) target bundleno = 281 (0x119), region = 32 }
   0xc   : > { %v1336_v0 = vld [vmem:[%s1696_s1 + $0xf8] sm:$0xff]  ;;  %v1358_v4 = vld [vmem:[%s1696_s1 + $0xf0] sm:$0xff]  ;;  %s1704_s12 = smov (!%p188_p4, %s1285_s12), 1  ;;  %v1385_v8 = vld [vmem:[%s1696_s1 + $0xe8] sm:$0xff]  ;;  %vm372_vm0 = vcmask 523264   ;;  %vm507_vm1 = vcmask 519168  }
   0xd   : > { %v1341_v1 = vld [vmem:[%s1696_s1 + $0x98] sm:$0xff]  ;;  %376 = vmatpush.bf16.msra.mxu0 %v1336_v0  ;;  %v1363_v5 = vld [vmem:[%s1696_s1 + $0x90] sm:$0xff]  ;;  %s1208_s5 = sshll.u32 %s1704_s12, 5  ;;  %v1390_v9 = vld [vmem:[%s1696_s1 + $0x88] sm:$0xff] }
   0xe   : > { %v1346_v2 = vld [vmem:[%s1696_s1 + $0x118] sm:$0xff]  ;;  %477 = vmatpush.bf16.msra.mxu2 %v1341_v1  ;;  %v1372_v6 = vld [vmem:[%s1696_s1 + $0x110] sm:$0xff]  ;;  %v1397_v10 = vld [vmem:[%s1696_s1 + $0x108] sm:$0xff]  ;;  %s1407_s20 = scalar_lea.vmem %s1695_s0, %s1208_s5 }
   0xf   : > { %v1351_v3 = vld [vmem:[%s1696_s1 + $0xb8] sm:$0xff]  ;;  %393 = vmatpush.bf16.msra.mxu1 %v1346_v2  ;;  %v1377_v7 = vld [vmem:[%s1696_s1 + $0xb0] sm:$0xff]  ;;  %v1402_v11 = vld [vmem:[%s1696_s1 + $0xa8] sm:$0xff] }
  0x10   : > { %494 = vmatpush.bf16.msra.mxu3 %v1351_v3  ;;  %v1414_v12 = vld [vmem:[%s1696_s1 + $0xe0] sm:$0xff]  ;;  %v1440_v17 = vld [vmem:[%s1696_s1 + $0x38] sm:$0xff]  ;;  %v1466_v21 = vld [vmem:[%s1696_s1 + $0x30] sm:$0xff] }
  0x11   : > { %377 = vmatpush.bf16.msra.mxu0 %v1358_v4  ;;  %v1419_v13 = vld [vmem:[%s1696_s1 + $0x80] sm:$0xff]  ;;  %v1445_v18 = vld [vmem:[%s1696_s1 + $0x58] sm:$0xff]  ;;  %v1471_v22 = vld [vmem:[%s1696_s1 + $0x50] sm:$0xff] }
  0x12   : > { %478 = vmatpush.bf16.msra.mxu2 %v1363_v5  ;;  %v1422_v14 = vld [vmem:[%s1407_s20] sm:$0xff]  ;;  %v1452_v19 = vld [vmem:[%s1696_s1 + $0xd8] sm:$0xff]  ;;  %v1474_v23 = vld [vmem:[%s1407_s20 + $0x8] sm:$0xff] }
  0x13   : > { %394 = vmatpush.bf16.msra.mxu1 %v1372_v6  ;;  %v1429_v15 = vld [vmem:[%s1696_s1 + $0x100] sm:$0xff]  ;;  %283 = vst [vmem:[#allocation1] ss:$2 sm:$0xff] %v1422_v14  ;;  %v1457_v20 = vld [vmem:[%s1696_s1 + $0x78] sm:$0xff]  ;;  %v1479_v24 = vld [vmem:[%s1696_s1 + $0xd0] sm:$0xff] }
  0x14   : > { %495 = vmatpush.bf16.msra.mxu3 %v1377_v7  ;;  %v1434_v16 = vld [vmem:[%s1696_s1 + $0xa0] sm:$0xff]  ;;  %v1484_v25 = vld [vmem:[%s1696_s1 + $0x70] sm:$0xff]  ;;  %v1494_v29 = vld [vmem:[%s1696_s1 + $0x28] sm:$0xff] }
  0x15   : > { %378 = vmatpush.bf16.msra.mxu0 %v1385_v8  ;;  %v1499_v30 = vld [vmem:[%s1696_s1 + $0x48] sm:$0xff]  ;;  %v1519_v33 = vld [vmem:[%s1696_s1 + $0x20] sm:$0xff]  ;;  %v1544_v40 = vld [vmem:[%s1696_s1 + $0x18] sm:$0xff] }
  0x16   : > { %479 = vmatpush.bf16.msra.mxu2 %v1390_v9  ;;  %v1507_v31 = vld [vmem:[%s1696_s1 + $0xc8] sm:$0xff]  ;;  %v1524_v34 = vld [vmem:[%s1696_s1 + $0x40] sm:$0xff]  ;;  %v1556_v43 = vld [vmem:[%s1696_s1 + $0x10] sm:$0xff] }
  0x17   : > { %395 = vmatpush.bf16.msra.mxu1 %v1397_v10  ;;  %v1512_v32 = vld [vmem:[%s1696_s1 + $0x68] sm:$0xff]  ;;  %v1529_v35 = vld [vmem:[%s1696_s1 + $0xc0] sm:$0xff]  ;;  %v1572_v47 = vld [vmem:[%s1407_s20 + $0x10] sm:$0xff] }
  0x18   : > { %496 = vmatpush.bf16.msra.mxu3 %v1402_v11  ;;  %v1534_v36 = vld [vmem:[%s1696_s1 + $0x60] sm:$0xff]  ;;  %v1566_v46 = vld [vmem:[%s1696_s1 + $0x8] sm:$0xff]  ;;  %v1201_v61 = vld [vmem:[%s1407_s20 + $0x18] sm:$0xff]  ;;  %s1209_s20 = sshll.u32 %s1704_s12, 4 }
  0x19   : > { %379 = vmatpush.bf16.msra.mxu0 %v1414_v12  ;;  %v1578_v48 = vld [vmem:[%s1696_s1] sm:$0xff]  ;;  %s1676_s29 = scalar_lea.vmem %s1698_s3, %s1209_s20 }
  0x1a   : > { %480 = vmatpush.bf16.msra.mxu2 %v1419_v13  ;;  %v285_v26 = vld.sshfl [vmem:[#allocation1 + $0x8] sm:$0xff pattern:$0x75316420]  ;;  %v284_v27 = vld.sshfl [vmem:[#allocation1] sm:$0xff pattern:$0x75316420] }
  0x1b   : > { %396 = vmatpush.bf16.msra.mxu1 %v1429_v15  ;;  %v289_v28 = vpack.c.bf16 %v285_v26, %v285_v26  ;;  %293 = vst [vmem:[#allocation1] ss:$2 sm:$0xff] %v1474_v23  ;;  %v288_v41 = vpack.c.bf16 %v284_v27, %v284_v27 }
  0x1c   : > { %497 = vmatpush.bf16.msra.mxu3 %v1434_v16 }
  0x1d   : > { %380 = vmatpush.bf16.msra.mxu0 %v1452_v19 }
  0x1e   : > { %481 = vmatpush.bf16.msra.mxu2 %v1457_v20 }
  0x1f   : > { %602 = vmatpush.bf16.msrb.mxu1 %v1440_v17  ;;  %1139 = vmatmul.msk.bf16.vlgmr.msra.gmra.mxu3 %vm372_vm0, %v289_v28 }
  0x20   : > { %619 = vmatpush.bf16.msrb.mxu3 %v1445_v18 }
  0x21   : > { %381 = vmatpush.bf16.msra.mxu0 %v1479_v24 }
  0x22   : > { %482 = vmatpush.bf16.msra.mxu2 %v1484_v25  ;;  %v295_v37 = vld.sshfl [vmem:[#allocation1 + $0x8] sm:$0xff pattern:$0x75316420]  ;;  %v294_v38 = vld.sshfl [vmem:[#allocation1] sm:$0xff pattern:$0x75316420] }
  0x23   : > { %603 = vmatpush.bf16.msrb.mxu1 %v1466_v21  ;;  %v299_v39 = vpack.c.bf16 %v295_v37, %v295_v37  ;;  %511 = vst [vmem:[#allocation1] ss:$2 sm:$0xff] %v1474_v23  ;;  %v298_v42 = vpack.c.bf16 %v294_v38, %v294_v38 }
  0x24   : > { %620 = vmatpush.bf16.msrb.mxu3 %v1471_v22 }
  0x25   : > { %382 = vmatpush.bf16.msra.mxu0 %v1507_v31  ;;  %1090 = vmatmul.msk.bf16.vlgmr.msra.gmra.mxu1 %vm372_vm0, %v299_v39 }
  0x26   : > { %483 = vmatpush.bf16.msra.mxu2 %v1512_v32 }
  0x27   : > { %604 = vmatpush.bf16.msrb.mxu1 %v1494_v29 }
  0x28   : > { %621 = vmatpush.bf16.msrb.mxu3 %v1499_v30 }
  0x29   : > { %383 = vmatpush.bf16.msra.mxu0 %v1529_v35 }
  0x2a   : > { %484 = vmatpush.bf16.msra.mxu2 %v1534_v36  ;;  %v512_v44 = vld.sshfl [vmem:[#allocation1] sm:$0xff pattern:$0x75316420]  ;;  %v513_v45 = vld.sshfl [vmem:[#allocation1 + $0x8] sm:$0xff pattern:$0x75316420] }
  0x2b   : > { %605 = vmatpush.bf16.msrb.mxu1 %v1519_v33  ;;  %520 = vst [vmem:[#allocation1] ss:$2 sm:$0xff] %v1422_v14  ;;  %v517_v53 = vpack.c.bf16 %v513_v45, %v513_v45  ;;  %v516_v56 = vpack.c.bf16 %v512_v44, %v512_v44 }
  0x2c   : > { %622 = vmatpush.bf16.msrb.mxu3 %v1524_v34  ;;  %384 = vmatmul.bf16.vlgmr.msra.gmra.mxu0 %v298_v42 }
  0x2d   : > { %631 = vmatpush.bf16.msrb.mxu0 %v1341_v1  ;;  %485 = vmatmul.bf16.vlgmr.msra.gmra.mxu2 %v288_v41 }
  0x2e   : > { %648 = vmatpush.bf16.msrb.mxu2 %v1351_v3 }
  0x2f   : > { %606 = vmatpush.bf16.msrb.mxu1 %v1544_v40 }
  0x30   : > { %670 = vmatpush.bf16.msra.mxu3 %v1336_v0 }
  0x31   : > { %632 = vmatpush.bf16.msrb.mxu0 %v1363_v5 }
  0x32   : > { %649 = vmatpush.bf16.msrb.mxu2 %v1377_v7  ;;  %v522_v49 = vld.sshfl [vmem:[#allocation1 + $0x8] sm:$0xff pattern:$0x75316420]  ;;  %v521_v50 = vld.sshfl [vmem:[#allocation1] sm:$0xff pattern:$0x75316420] }
  0x33   : > { %607 = vmatpush.bf16.msrb.mxu1 %v1556_v43  ;;  %v526_v51 = vpack.c.bf16 %v522_v49, %v522_v49  ;;  %v525_v52 = vpack.c.bf16 %v521_v50, %v521_v50  ;;  %660 = vst [vmem:[#allocation1] ss:$2 sm:$0xff] %v1572_v47 }
  0x34   : > { %671 = vmatpush.bf16.msra.mxu3 %v1358_v4 }
  0x35   : > { %633 = vmatpush.bf16.msrb.mxu0 %v1390_v9  ;;  %1189 = vmatmul.msk.bf16.vlgmr.msrb.gmra.mxu3 %vm372_vm0, %v526_v51 }
  0x36   : > { %650 = vmatpush.bf16.msrb.mxu2 %v1402_v11 }
  0x37   : > { %608 = vmatpush.bf16.msrb.mxu1 %v1566_v46 }
  0x38   : > { %672 = vmatpush.bf16.msra.mxu3 %v1385_v8 }
  0x39   : > { %634 = vmatpush.bf16.msrb.mxu0 %v1419_v13 }
  0x3a   : > { %651 = vmatpush.bf16.msrb.mxu2 %v1434_v16  ;;  %v661_v54 = vld.sshfl [vmem:[#allocation1] sm:$0xff pattern:$0x75316420]  ;;  %v662_v55 = vld.sshfl [vmem:[#allocation1 + $0x8] sm:$0xff pattern:$0x75316420] }
  0x3b   : > { %609 = vmatpush.bf16.msrb.mxu1 %v1578_v48  ;;  %702 = vst [vmem:[#allocation1] ss:$2 sm:$0xff] %v1572_v47  ;;  %v666_v59 = vpack.c.bf16 %v662_v55, %v662_v55  ;;  %v665_v60 = vpack.c.bf16 %v661_v54, %v661_v54 }
  0x3c   : > { %673 = vmatpush.bf16.msra.mxu3 %v1414_v12 }
  0x3d   : > { %635 = vmatpush.bf16.msrb.mxu0 %v1457_v20  ;;  %1190 = vmatmul.msk.bf16.vlgmr.msrb.gmra.mxu2 %vm372_vm0, %v517_v53 }
  0x3e   : > { %721 = vmatpush.bf16.msra.mxu2 %v1440_v17  ;;  %610 = vmatmul.bf16.vlgmr.msrb.gmra.mxu1 %v525_v52 }
  0x3f   : > { %687 = vmatpush.bf16.msra.mxu1 %v1346_v2 }
  0x40   : > { %674 = vmatpush.bf16.msra.mxu3 %v1452_v19 }
  0x41   : > { %636 = vmatpush.bf16.msrb.mxu0 %v1484_v25 }
  0x42   : > { %722 = vmatpush.bf16.msra.mxu2 %v1466_v21  ;;  %v703_v57 = vld.sshfl [vmem:[#allocation1] sm:$0xff pattern:$0x75316420]  ;;  %v704_v58 = vld.sshfl [vmem:[#allocation1 + $0x8] sm:$0xff pattern:$0x75316420] }
  0x43   : > { %688 = vmatpush.bf16.msra.mxu1 %v1372_v6  ;;  %711 = vst [vmem:[#allocation1] ss:$2 sm:$0xff] %v1474_v23 }
  0x44   : > { %675 = vmatpush.bf16.msra.mxu3 %v1479_v24 }
  0x45   : > { %637 = vmatpush.bf16.msrb.mxu0 %v1512_v32 }
  0x46   : > { %723 = vmatpush.bf16.msra.mxu2 %v1494_v29 }
  0x47   : > { %689 = vmatpush.bf16.msra.mxu1 %v1397_v10 }
  0x48   : > { %676 = vmatpush.bf16.msra.mxu3 %v1507_v31 }
  0x49   : > { %638 = vmatpush.bf16.msrb.mxu0 %v1534_v36 }
  0x4a   : > { %724 = vmatpush.bf16.msra.mxu2 %v1519_v33  ;;  %v712_v62 = vld.sshfl [vmem:[#allocation1] sm:$0xff pattern:$0x75316420]  ;;  %v713_v63 = vld.sshfl [vmem:[#allocation1 + $0x8] sm:$0xff pattern:$0x75316420] }
  0x4b   : > { %690 = vmatpush.bf16.msra.mxu1 %v1429_v15  ;;  %779 = vst [vmem:[#allocation1] ss:$2 sm:$0xff] %v1201_v61  ;;  %v716_v14 = vpack.c.bf16 %v712_v62, %v712_v62  ;;  %v717_v27 = vpack.c.bf16 %v713_v63, %v713_v63 }
  0x4c   : > { %677 = vmatpush.bf16.msra.mxu3 %v1529_v35  ;;  %639 = vmatmul.bf16.vlgmr.msrb.gmra.mxu0 %v516_v56 }
  0x4d   : > { %738 = vmatpush.bf16.msra.mxu0 %v1445_v18 }
  0x4e   : > { %725 = vmatpush.bf16.msra.mxu2 %v1544_v40  ;;  %1192 = vmatmul.msk.bf16.vlgmr.msra.gmra.mxu1 %vm372_vm0, %v666_v59 }
  0x4f   : > { %750 = vmatpush.bf16.msrb.mxu1 %v1341_v1  ;;  %678 = vmatmul.bf16.vlgmr.msra.gmra.mxu3 %v665_v60 }
  0x50   : > { %767 = vmatpush.bf16.msrb.mxu3 %v1351_v3 }
  0x51   : > { %739 = vmatpush.bf16.msra.mxu0 %v1471_v22 }
  0x52   : > { %726 = vmatpush.bf16.msra.mxu2 %v1556_v43  ;;  %v781_v23 = vld.sshfl [vmem:[#allocation1 + $0x8] sm:$0xff pattern:$0x75316420]  ;;  %v780_v26 = vld.sshfl [vmem:[#allocation1] sm:$0xff pattern:$0x75316420] }
  0x53   : > { %751 = vmatpush.bf16.msrb.mxu1 %v1363_v5  ;;  %821 = vst [vmem:[#allocation1] ss:$2 sm:$0xff] %v1201_v61 }
  0x54   : > { %768 = vmatpush.bf16.msrb.mxu3 %v1377_v7 }
  0x55   : > { %740 = vmatpush.bf16.msra.mxu0 %v1499_v30 }
  0x56   : > { %727 = vmatpush.bf16.msra.mxu2 %v1566_v46 }
  0x57   : > { %752 = vmatpush.bf16.msrb.mxu1 %v1390_v9 }
  0x58   : > { %769 = vmatpush.bf16.msrb.mxu3 %v1402_v11 }
  0x59   : > { %741 = vmatpush.bf16.msra.mxu0 %v1524_v34 }
  0x5a   : > { %728 = vmatpush.bf16.msra.mxu2 %v1578_v48 }
  0x5b   : > { %753 = vmatpush.bf16.msrb.mxu1 %v1419_v13 }
  0x5c   : > { %770 = vmatpush.bf16.msrb.mxu3 %v1434_v16  ;;  %1196 = vmatmul.msk.bf16.vlgmr.msra.gmra.mxu0 %vm372_vm0, %v717_v27 }
  0x5d   : > { %789 = vmatpush.bf16.msrb.mxu0 %v1336_v0  ;;  %729 = vmatmul.bf16.vlgmr.msra.gmra.mxu2 %v716_v14  ;;  %v708_v0 = vpack.c.bf16 %v704_v58, %v704_v58 }
  0x5e   : > { %806 = vmatpush.bf16.msrb.mxu2 %v1346_v2  ;;  %v822_v2 = vld.sshfl [vmem:[#allocation1] sm:$0xff pattern:$0x75316420] }
  0x5f   : > { %754 = vmatpush.bf16.msrb.mxu1 %v1457_v20  ;;  %1197 = vmatmul.msk.bf16.vlgmr.msrb.gmra.mxu3 %vm372_vm0, %v708_v0 }
  0x60   : > { %840 = vmatpush.bf16.msra.mxu3 %v1440_v17  ;;  %v823_v17 = vld.sshfl [vmem:[#allocation1 + $0x8] sm:$0xff pattern:$0x75316420] }
  0x61   : > { %790 = vmatpush.bf16.msrb.mxu0 %v1358_v4  ;;  %830 = vst [vmem:[#allocation1] ss:$2 sm:$0xff] %v1572_v47  ;;  %v707_v4 = vpack.c.bf16 %v703_v57, %v703_v57 }
  0x62   : > { %807 = vmatpush.bf16.msrb.mxu2 %v1372_v6  ;;  %v785_v6 = vpack.c.bf16 %v781_v23, %v781_v23 }
  0x63   : > { %755 = vmatpush.bf16.msrb.mxu1 %v1484_v25 }
  0x64   : > { %841 = vmatpush.bf16.msra.mxu3 %v1466_v21 }
  0x65   : > { %791 = vmatpush.bf16.msrb.mxu0 %v1385_v8 }
  0x66   : > { %808 = vmatpush.bf16.msrb.mxu2 %v1397_v10 }
  0x67   : > { %756 = vmatpush.bf16.msrb.mxu1 %v1512_v32 }
  0x68   : > { %842 = vmatpush.bf16.msra.mxu3 %v1494_v29  ;;  %v832_v8 = vld.sshfl [vmem:[#allocation1 + $0x8] sm:$0xff pattern:$0x75316420] }
  0x69   : > { %792 = vmatpush.bf16.msrb.mxu0 %v1414_v12  ;;  %v836_v10 = vpack.c.bf16 %v832_v8, %v832_v8  ;;  %v826_v12 = vpack.c.bf16 %v822_v2, %v822_v2 }
  0x6a   : > { %809 = vmatpush.bf16.msrb.mxu2 %v1429_v15 }
  0x6b   : > { %757 = vmatpush.bf16.msrb.mxu1 %v1534_v36 }
  0x6c   : > { %843 = vmatpush.bf16.msra.mxu3 %v1519_v33 }
  0x6d   : > { %793 = vmatpush.bf16.msrb.mxu0 %v1452_v19  ;;  %1199 = vmatmul.msk.bf16.vlgmr.msrb.gmra.mxu2 %vm372_vm0, %v785_v6 }
  0x6e   : > { %869 = vmatpush.bf16.msra.mxu2 %v1341_v1  ;;  %758 = vmatmul.bf16.vlgmr.msrb.gmra.mxu1 %v707_v4  ;;  %v831_v1 = vld.sshfl [vmem:[#allocation1] sm:$0xff pattern:$0x75316420] }
  0x6f   : > { %857 = vmatpush.bf16.msra.mxu1 %v1445_v18 }
  0x70   : > { %844 = vmatpush.bf16.msra.mxu3 %v1544_v40 }
  0x71   : > { %794 = vmatpush.bf16.msrb.mxu0 %v1479_v24 }
  0x72   : > { %870 = vmatpush.bf16.msra.mxu2 %v1363_v5  ;;  %v784_v5 = vpack.c.bf16 %v780_v26, %v780_v26 }
  0x73   : > { %858 = vmatpush.bf16.msra.mxu1 %v1471_v22 }
  0x74   : > { %845 = vmatpush.bf16.msra.mxu3 %v1556_v43 }
  0x75   : > { %795 = vmatpush.bf16.msrb.mxu0 %v1507_v31 }
  0x76   : > { %871 = vmatpush.bf16.msra.mxu2 %v1390_v9  ;;  %v835_v9 = vpack.c.bf16 %v831_v1, %v831_v1 }
  0x77   : > { %859 = vmatpush.bf16.msra.mxu1 %v1499_v30 }
  0x78   : > { %846 = vmatpush.bf16.msra.mxu3 %v1566_v46 }
  0x79   : > { %796 = vmatpush.bf16.msrb.mxu0 %v1529_v35 }
  0x7a   : > { %872 = vmatpush.bf16.msra.mxu2 %v1419_v13 }
  0x7b   : > { %860 = vmatpush.bf16.msra.mxu1 %v1524_v34 }
  0x7c   : > { %847 = vmatpush.bf16.msra.mxu3 %v1578_v48  ;;  %797 = vmatmul.bf16.vlgmr.msrb.gmra.mxu0 %v784_v5 }
  0x7d   : > { %886 = vmatpush.bf16.msra.mxu0 %v1351_v3  ;;  %v827_v3 = vpack.c.bf16 %v823_v17, %v823_v17 }
  0x7e   : > { %873 = vmatpush.bf16.msra.mxu2 %v1457_v20  ;;  %1203 = vmatmul.msk.bf16.vlgmr.msra.gmra.mxu1 %vm372_vm0, %v836_v10 }
  0x7f   : > { %848 = vmatmul.bf16.vlgmr.msra.gmra.mxu3 %v835_v9 }
  0x81   : > { %887 = vmatpush.bf16.msra.mxu0 %v1377_v7 }
  0x82   : > { %874 = vmatpush.bf16.msra.mxu2 %v1484_v25 }
  0x85   : > { %888 = vmatpush.bf16.msra.mxu0 %v1402_v11  ;;  %v1270_v11 = vld [vmem:[%s1697_s2] ss:$0 sm:$0xff] }
  0x86   : > { %875 = vmatpush.bf16.msra.mxu2 %v1512_v32 }
  0x89   : > { %889 = vmatpush.bf16.msra.mxu0 %v1434_v16 }
  0x8a   : > { %876 = vmatpush.bf16.msra.mxu2 %v1534_v36 }
  0x8c   : > { %1204 = vmatmul.msk.bf16.vlgmr.msra.gmra.mxu0 %vm372_vm0, %v827_v3 }
  0x8d   : > { %877 = vmatmul.bf16.vlgmr.msra.gmra.mxu2 %v826_v12 }
  0xa2   : > { %v499_v13 = vpop.f32.mrf.mxu3  ;;  %v398_v15 = vpop.f32.mrf.mxu1 }
  0xa9   : > { %v385_v18 = vpop.f32.mrf.mxu0 }
  0xaa   : > { %v501_v7 = vpop.f32.mrf.mxu3  ;;  %v399_v19 = vadd.f32 %v398_v15, %v385_v18  ;;  %v400_v20 = vpop.f32.mrf.mxu1 }
  0xb0   : > { %v486_v21 = vpop.f32.mrf.mxu2 }
  0xb1   : > { %v487_v22 = vadd.f32 %v486_v21, %v399_v19  ;;  %v387_v25 = vpop.f32.mrf.mxu0 }
  0xb3   : > { %v500_v24 = vadd.f32 %v499_v13, %v487_v22 }
  0xb5   : > { %v506_v16 = vadd.f32 %v1270_v11, %v500_v24 }
  0xb7   : > { %508 = vst.msk [vmem:[%s1676_s29] sm:$0xf] %vm507_vm1, %v506_v16 }
  0xb8   : > { %v488_v28 = vpop.f32.mrf.mxu2  ;;  %v624_v30 = vpop.f32.mrf.mxu3 }
  0xbb   : > { %v611_v29 = vpop.f32.mrf.mxu1 }
  0xbc   : > { %v625_v34 = vadd.f32 %v624_v30, %v611_v29 }
  0xc0   : > { %v653_v32 = vpop.f32.mrf.mxu2  ;;  %v626_v33 = vpop.f32.mrf.mxu3 }
  0xc3   : > { %v613_v31 = vpop.f32.mrf.mxu1 }
  0xc8   : > { %v655_v37 = vpop.f32.mrf.mxu2 }
  0xc9   : > { %v640_v35 = vpop.f32.mrf.mxu0 }
  0xca   : > { %v641_v38 = vadd.f32 %v640_v35, %v625_v34 }
  0xcb   : > { %v692_v36 = vpop.f32.mrf.mxu1 }
  0xcc   : > { %v654_v39 = vadd.f32 %v653_v32, %v641_v38 }
  0xd1   : > { %v642_v40 = vpop.f32.mrf.mxu0 }
  0xd2   : > { %v679_v41 = vpop.f32.mrf.mxu3 }
  0xd3   : > { %v694_v42 = vpop.f32.mrf.mxu1  ;;  %v693_v43 = vadd.f32 %v692_v36, %v679_v41 }
  0xd5   : > { %v696_v44 = vadd.f32 %v693_v43, %v654_v39 }
  0xd7   : > { %v697_v45 = vadd.f32 %v1270_v11, %v696_v44 }
  0xd9   : > { %1193 = vst.msk [vmem:[%s1676_s29 + $0x4] sm:$0xf] %vm507_vm1, %v697_v45  ;;  %v743_v46 = vpop.f32.mrf.mxu0 }
  0xda   : > { %v681_v47 = vpop.f32.mrf.mxu3 }
  0xe0   : > { %v730_v48 = vpop.f32.mrf.mxu2 }
  0xe1   : > { %v745_v49 = vpop.f32.mrf.mxu0  ;;  %v744_v53 = vadd.f32 %v743_v46, %v730_v48 }
  0xe2   : > { %v772_v51 = vpop.f32.mrf.mxu3 }
  0xe8   : > { %v732_v50 = vpop.f32.mrf.mxu2 }
  0xea   : > { %v774_v55 = vpop.f32.mrf.mxu3 }
  0xeb   : > { %v759_v52 = vpop.f32.mrf.mxu1 }
  0xec   : > { %v760_v57 = vadd.f32 %v759_v52, %v744_v53 }
  0xee   : > { %v773_v59 = vadd.f32 %v772_v51, %v760_v57 }
  0xf0   : > { %v811_v54 = vpop.f32.mrf.mxu2 }
  0xf3   : > { %v761_v56 = vpop.f32.mrf.mxu1 }
  0xf8   : > { %v813_v61 = vpop.f32.mrf.mxu2 }
  0xf9   : > { %v798_v58 = vpop.f32.mrf.mxu0 }
  0xfa   : > { %v812_v60 = vadd.f32 %v811_v54, %v798_v58 }
  0xfb   : > { %v862_v63 = vpop.f32.mrf.mxu1 }
  0xfc   : > { %v815_v62 = vadd.f32 %v812_v60, %v773_v59 }
  0xfe   : > { %v816_v14 = vadd.f32 %v1270_v11, %v815_v62 }
 0x100   : > { %1200 = vst.msk [vmem:[%s1676_s29 + $0x8] sm:$0xf] %vm507_vm1, %v816_v14 }
 0x101   : > { %v800_v23 = vpop.f32.mrf.mxu0 }
 0x102   : > { %v849_v26 = vpop.f32.mrf.mxu3 }
 0x103   : > { %v864_v27 = vpop.f32.mrf.mxu1  ;;  %v863_v0 = vadd.f32 %v862_v63, %v849_v26 }
 0x109   : > { %v891_v2 = vpop.f32.mrf.mxu0 }
 0x10a   : > { %v851_v17 = vpop.f32.mrf.mxu3 }
 0x110   : > { %v878_v4 = vpop.f32.mrf.mxu2 }
 0x111   : > { %v879_v6 = vadd.f32 %v878_v4, %v863_v0  ;;  %v893_v8 = vpop.f32.mrf.mxu0 }
 0x113   : > { %v892_v1 = vadd.f32 %v891_v2, %v879_v6 }
 0x115   : > { %v895_v5 = vadd.f32 %v1270_v11, %v892_v1 }
 0x117   : > { %1205 = vst.msk [vmem:[%s1676_s29 + $0xc] sm:$0xf] %vm507_vm1, %v895_v5 }
 0x118   : > { %v880_v9 = vpop.f32.mrf.mxu2 }
 0x119 PF: > { %s13_s14 = sadd.s32 1, %s1293_s14   ;;  %s1699_s12 = smov %s1289_s13 }
 0x11a   : > { %p10_p5 = scmp.ge.s32.totalorder %s13_s14, 4   ;;  %s1700_s13 = smov %s1702_s15 }
 0x11c   :  { %12 = sbr.rel (!%p10_p5) target bundleno = 2 (0x2), region = 70 }

// kernel: _lambda_.48
= control target key start
LH: loop header
LB: loop body
LE: loop exit
PB: predicated region body
PF: predicated region fallthrough
CT: control target
= control target key end

     0   :  { %s901_s30 = smov 0   ;;  %s903_s10 = smov 0   ;;  %s1014_s0 = inlined_call_operand.vmem [shape: f32[2,4,4,64], index: 0, kind: input, shape index: {}]   ;;  %s1015_s1 = inlined_call_operand.vmem [shape: f32[1,64], index: 1, kind: input, shape index: {}]   ;;  %s1016_s2 = inlined_call_operand.vmem [shape: f32[1,64], index: 2, kind: input, shape index: {}]   ;;  %s1017_s3 = inlined_call_operand.vmem [shape: bf16[64,64], index: 3, kind: input, shape index: {}]   ;;  %s1018_s4 = inlined_call_operand.vmem [shape: f32[1,64], index: 4, kind: input, shape index: {}]   ;;  %s1019_s5 = inlined_call_operand.vmem [shape: f32[3,64], index: 5, kind: input, shape index: {}]   ;;  %s1020_s6 = inlined_call_operand.vmem [shape: f32[1,64], index: 6, kind: input, shape index: {}]   ;;  %s1021_s7 = inlined_call_operand.vmem [shape: bf16[64,64], index: 7, kind: input, shape index: {}]   ;;  %s1022_s8 = inlined_call_operand.vmem [shape: f32[1,64], index: 8, kind: input, shape index: {}]   ;;  %s1023_s9 = inlined_call_operand.vmem [shape: f32[2,4,4,64], index: 9, kind: output, shape index: {}]  }
   0x1   :  { %s905_s11 = smov 0  }
   0x2 LB: > { %s31_s12 = sadd.s32 1, %s845_s10  ;;  %p729_p0 = scmp.ge.s32.totalorder %s849_s11, 1  ;;  %s849_s11 = sphi %s905_s11, %s19_s11   ;;  %s845_s10 = sphi %s903_s10, %s1025_s10   ;;  %s841_s30 = sphi %s901_s30, %s1024_s30  }
   0x3   : > { %p33_p1 = scmp.ge.s32.totalorder %s31_s12, 2  ;;  %p306_p2 = scmp.lt.s32.totalorder %s849_s11, 3 }
   0x5   : > { %s1027_s12 = smov (%p33_p1, %s31_s12), 0  ;;  %p307_p3 = pnand %p729_p0, %p306_p2 }
   0x6   : > { %p348_p4 = scmp.lt.s32.totalorder (!%p307_p3), %s841_s30, 1 }
   0x7   : > { %310 = sbr.rel (%p307_p3) target bundleno = 320 (0x140), region = 56 }
   0xc   : > { %v790_v0 = vld [vmem:[%s1017_s3 + $0x18] sm:$0xff]  ;;  %v789_v1 = vld [vmem:[%s1017_s3 + $0x10] sm:$0xff]  ;;  %s1029_s30 = smov (!%p348_p4, %s841_s30), 1  ;;  %v819_v2 = vld [vmem:[%s1015_s1] ss:$0 sm:$0xff]  ;;  %vm426_vm0 = vcmask 523264  }
   0xd   : > { %434 = vmatpush.bf16.msra.mxu0 %v790_v0  ;;  %455 = vmatpush.bf16.msra.mxu1 %v790_v0  ;;  %v794_v3 = vld [vmem:[%s1021_s7 + $0x18] sm:$0xff]  ;;  %v788_v4 = vld [vmem:[%s1017_s3 + $0x8] sm:$0xff]  ;;  %s785_s23 = sshll.u32 %s1029_s30, 4  ;;  %v820_v5 = vld [vmem:[%s1016_s2] ss:$0 sm:$0xff]  ;;  %vm518_vm1 = vcmask 519168  }
   0xe   : > { %532 = vmatpush.bf16.msra.mxu3 %v790_v0  ;;  %508 = vmatpush.bf16.msra.mxu2 %v794_v3  ;;  %s942_s26 = scalar_lea.vmem %s1014_s0, %s785_s23  ;;  %v787_v14 = vld [vmem:[%s1017_s3] sm:$0xff]  ;;  %v793_v23 = vld [vmem:[%s1021_s7 + $0x10] sm:$0xff]  ;;  %v792_v24 = vld [vmem:[%s1021_s7 + $0x8] sm:$0xff]  ;;  %s363_s19 = scalar_lea.vmem %s1023_s9, %s785_s23 }
   0xf   : > { %v948_v6 = vld [vmem:[%s942_s26] sm:$0xf]  ;;  %v751_v7 = vld [vmem:[%s942_s26 + $0x4] sm:$0xf]  ;;  %v770_v8 = vld [vmem:[%s942_s26 + $0x8] sm:$0xf] }
  0x10   : > { %v393_v9 = vmul.f32 %v819_v2, %v948_v6  ;;  %v445_v10 = vmul.f32 %v819_v2, %v751_v7  ;;  %v522_v11 = vmul.f32 %v819_v2, %v770_v8  ;;  %v775_v19 = vld [vmem:[%s942_s26 + $0xc] sm:$0xf]  ;;  %v791_v25 = vld [vmem:[%s1021_s7] sm:$0xff] }
  0x11   : > { %435 = vmatpush.bf16.msra.mxu0 %v789_v1  ;;  %456 = vmatpush.bf16.msra.mxu1 %v789_v1  ;;  %v571_v20 = vmul.f32 %v819_v2, %v775_v19  ;;  %v821_v26 = vld [vmem:[%s1018_s4] ss:$0 sm:$0xff]  ;;  %v822_v27 = vld [vmem:[%s1019_s5 + $0x1] ss:$0 sm:$0xff]  ;;  %v825_v33 = vld [vmem:[%s1019_s5 + $0x2] ss:$0 sm:$0xff] }
  0x12   : > { %533 = vmatpush.bf16.msra.mxu3 %v789_v1  ;;  %v397_v12 = vadd.f32 %v820_v5, %v393_v9  ;;  %v446_v13 = vadd.f32 %v820_v5, %v445_v10  ;;  %v523_v15 = vadd.f32 %v820_v5, %v522_v11  ;;  %509 = vmatpush.bf16.msra.mxu2 %v793_v23  ;;  %v823_v31 = vld [vmem:[%s1020_s6] ss:$0 sm:$0xff] }
  0x13   : > { %v572_v21 = vadd.f32 %v820_v5, %v571_v20  ;;  %v824_v36 = vld [vmem:[%s1019_s5] ss:$0 sm:$0xff]  ;;  %v773_v5 = vld [vmem:[%s942_s26 + $0x4] sm:$0xf] }
  0x14   : > { %v398_v16 = vpack.c.bf16 %v397_v12, %v397_v12  ;;  %v447_v17 = vpack.c.bf16 %v446_v13, %v446_v13  ;;  %v524_v18 = vpack.c.bf16 %v523_v15, %v523_v15  ;;  %v778_v15 = vld [vmem:[%s942_s26 + $0x8] sm:$0xf] }
  0x15   : > { %436 = vmatpush.bf16.msra.mxu0 %v788_v4  ;;  %457 = vmatpush.bf16.msra.mxu1 %v788_v4  ;;  %v573_v22 = vpack.c.bf16 %v572_v21, %v572_v21 }
  0x16   : > { %534 = vmatpush.bf16.msra.mxu3 %v788_v4  ;;  %510 = vmatpush.bf16.msra.mxu2 %v792_v24 }
  0x19   : > { %437 = vmatpush.bf16.msra.mxu0 %v787_v14  ;;  %458 = vmatpush.bf16.msra.mxu1 %v787_v14 }
  0x1a   : > { %535 = vmatpush.bf16.msra.mxu3 %v787_v14  ;;  %511 = vmatpush.bf16.msra.mxu2 %v791_v25 }
  0x1c   : > { %750 = vmatmul.msk.bf16.vlgmr.msra.gmra.mxu0 %vm426_vm0, %v398_v16  ;;  %752 = vmatmul.msk.bf16.vlgmr.msra.gmra.mxu1 %vm426_vm0, %v447_v17  ;;  %v781_v17 = vld [vmem:[%s942_s26 + $0xc] sm:$0xf] }
  0x1d   : > { %581 = vmatpush.bf16.msrb.mxu1 %v790_v0  ;;  %556 = vmatpush.bf16.msrb.mxu0 %v794_v3 }
  0x1e   : > { %629 = vmatpush.bf16.msrb.mxu3 %v794_v3  ;;  %604 = vmatpush.bf16.msrb.mxu2 %v794_v3  ;;  %v826_v3 = vld [vmem:[%s1022_s8] ss:$0 sm:$0xff] }
  0x1f   : > { %771 = vmatmul.msk.bf16.vlgmr.msra.gmra.mxu3 %vm426_vm0, %v524_v18 }
  0x21   : > { %582 = vmatpush.bf16.msrb.mxu1 %v789_v1  ;;  %557 = vmatpush.bf16.msrb.mxu0 %v793_v23 }
  0x22   : > { %630 = vmatpush.bf16.msrb.mxu3 %v793_v23  ;;  %605 = vmatpush.bf16.msrb.mxu2 %v793_v23 }
  0x25   : > { %583 = vmatpush.bf16.msrb.mxu1 %v788_v4  ;;  %558 = vmatpush.bf16.msrb.mxu0 %v792_v24 }
  0x26   : > { %631 = vmatpush.bf16.msrb.mxu3 %v792_v24  ;;  %606 = vmatpush.bf16.msrb.mxu2 %v792_v24 }
  0x29   : > { %584 = vmatpush.bf16.msrb.mxu1 %v787_v14  ;;  %559 = vmatpush.bf16.msrb.mxu0 %v791_v25 }
  0x2a   : > { %632 = vmatpush.bf16.msrb.mxu3 %v791_v25  ;;  %607 = vmatpush.bf16.msrb.mxu2 %v791_v25 }
  0x2c   : > { %776 = vmatmul.msk.bf16.vlgmr.msrb.gmra.mxu1 %vm426_vm0, %v573_v22 }
  0x99   : > { %v439_v28 = vpop.f32.mrf.mxu0  ;;  %v460_v29 = vpop.f32.mrf.mxu1 }
  0x9a   : > { %v440_v30 = vadd.f32 %v821_v26, %v439_v28  ;;  %v461_v32 = vadd.f32 %v821_v26, %v460_v29 }
  0x9c   : > { %v465_v34 = vmul.f32 %v822_v27, %v440_v30  ;;  %v541_v35 = vmul.f32 %v822_v27, %v461_v32  ;;  %v471_v38 = vmul.f32 %v825_v33, %v461_v32  ;;  %v544_v42 = vmul.f32 %v824_v36, %v440_v30 }
  0x9d   : > { %v592_v55 = vmul.f32 %v824_v36, %v461_v32 }
  0x9e   : > { %v469_v37 = vadd.f32 %v823_v31, %v465_v34  ;;  %v542_v39 = vadd.f32 %v823_v31, %v541_v35 }
  0xa0   : > { %v472_v41 = vadd.f32 %v471_v38, %v469_v37  ;;  %v545_v47 = vadd.f32 %v544_v42, %v542_v39 }
  0xa1   : > { %v441_v44 = vpop.f32.mrf.mxu0  ;;  %v462_v45 = vpop.f32.mrf.mxu1 }
  0xa2   : > { %v537_v40 = vpop.f32.mrf.mxu3  ;;  %v473_v46 = vpack.c.bf16 %v472_v41, %v472_v41 }
  0xa3   : > { %v538_v43 = vadd.f32 %v821_v26, %v537_v40 }
  0xa4   : > { %769 = vmatmul.msk.bf16.vlgmr.msra.gmra.mxu2 %vm426_vm0, %v473_v46 }
  0xa5   : > { %v546_v48 = vmul.f32 %v825_v33, %v538_v43  ;;  %v590_v49 = vmul.f32 %v822_v27, %v538_v43  ;;  %v619_v60 = vmul.f32 %v824_v36, %v538_v43 }
  0xa7   : > { %v547_v50 = vadd.f32 %v546_v48, %v545_v47  ;;  %v591_v52 = vadd.f32 %v823_v31, %v590_v49 }
  0xa9   : > { %v548_v51 = vpack.c.bf16 %v547_v50, %v547_v50  ;;  %v586_v54 = vpop.f32.mrf.mxu1  ;;  %v593_v57 = vadd.f32 %v592_v55, %v591_v52 }
  0xaa   : > { %v539_v53 = vpop.f32.mrf.mxu3  ;;  %v587_v56 = vadd.f32 %v821_v26, %v586_v54 }
  0xab   : > { %772 = vmatmul.msk.bf16.vlgmr.msrb.gmra.mxu0 %vm426_vm0, %v548_v51 }
  0xac   : > { %v594_v58 = vmul.f32 %v825_v33, %v587_v56  ;;  %v617_v59 = vmul.f32 %v822_v27, %v587_v56 }
  0xae   : > { %v595_v61 = vadd.f32 %v594_v58, %v593_v57  ;;  %v618_v62 = vadd.f32 %v823_v31, %v617_v59 }
  0xb0   : > { %v620_v63 = vadd.f32 %v619_v60, %v618_v62  ;;  %v596_v1 = vpack.c.bf16 %v595_v61, %v595_v61 }
  0xb1   : > { %v588_v0 = vpop.f32.mrf.mxu1 }
  0xb2   : > { %v621_v2 = vpack.c.bf16 %v620_v63, %v620_v63 }
  0xb4   : > { %777 = vmatmul.msk.bf16.vlgmr.msrb.gmra.mxu2 %vm426_vm0, %v596_v1  ;;  %780 = vmatmul.msk.bf16.vlgmr.msrb.gmra.mxu3 %vm426_vm0, %v621_v2 }
 0x127   : > { %v513_v8 = vpop.f32.mrf.mxu2 }
 0x128   : > { %v561_v4 = vpop.f32.mrf.mxu0  ;;  %v514_v9 = vadd.f32 %v826_v3, %v513_v8 }
 0x129   : > { %v562_v7 = vadd.f32 %v826_v3, %v561_v4 }
 0x12a   : > { %v517_v11 = vadd.f32 %v514_v9, %v948_v6 }
 0x12b   : > { %v566_v10 = vadd.f32 %v773_v5, %v562_v7 }
 0x12c   : > { %519 = vst.msk [vmem:[%s363_s19] sm:$0xf] %vm518_vm1, %v517_v11 }
 0x12d   : > { %774 = vst.msk [vmem:[%s363_s19 + $0x4] sm:$0xf] %vm518_vm1, %v566_v10 }
 0x12f   : > { %v515_v13 = vpop.f32.mrf.mxu2 }
 0x130   : > { %v563_v12 = vpop.f32.mrf.mxu0 }
 0x137   : > { %v609_v14 = vpop.f32.mrf.mxu2  ;;  %v634_v16 = vpop.f32.mrf.mxu3 }
 0x138   : > { %v610_v18 = vadd.f32 %v826_v3, %v609_v14  ;;  %v635_v19 = vadd.f32 %v826_v3, %v634_v16 }
 0x13a   : > { %v614_v20 = vadd.f32 %v778_v15, %v610_v18  ;;  %v639_v21 = vadd.f32 %v781_v17, %v635_v19 }
 0x13c   : > { %779 = vst.msk [vmem:[%s363_s19 + $0x8] sm:$0xf] %vm518_vm1, %v614_v20 }
 0x13d   : > { %782 = vst.msk [vmem:[%s363_s19 + $0xc] sm:$0xf] %vm518_vm1, %v639_v21 }
 0x13f   : > { %v611_v22 = vpop.f32.mrf.mxu2  ;;  %v636_v6 = vpop.f32.mrf.mxu3 }
 0x140 PF: > { %s19_s11 = sadd.s32 1, %s849_s11   ;;  %s1024_s30 = smov %s845_s10 }
 0x141   : > { %p16_p5 = scmp.ge.s32.totalorder %s19_s11, 4   ;;  %s1025_s10 = smov %s1027_s12 }
 0x143   :  { %18 = sbr.rel (!%p16_p5) target bundleno = 2 (0x2), region = 92 }

// kernel: _lambda_.50
= control target key start
LH: loop header
LB: loop body
LE: loop exit
PB: predicated region body
PF: predicated region fallthrough
CT: control target
= control target key end

     0   :  { %s290_s6 = smov 0   ;;  %s313_s0 = inlined_call_operand.vmem [shape: bf16[8,5,192], index: 0, kind: input, shape index: {}]   ;;  %s314_s1 = inlined_call_operand.vmem [shape: bf16[8,5,64], index: 1, kind: output, shape index: {}]  }
   0x1 LB: > { %s243_s7 = sadd.s32 4294967295, %s276_s6   ;;  %p247_p0 = scmp.ge.s32.totalorder %s276_s6, 1  ;;  %s276_s6 = sphi %s290_s6, %s11_s6  }
   0x2   : > { %p87_p1 = scmp.lt.s32.totalorder %s276_s6, 9 }
   0x4   : > { %p88_p2 = pnand %p247_p0, %p87_p1 }
   0x5   : > { %p106_p3 = scmp.lt.s32.totalorder (!%p88_p2), %s243_s7, 7  ;;  %s278_s12 = smov (!%p88_p2), 64  }
   0x6   : > { %91 = sbr.rel (%p88_p2) target bundleno = 532 (0x214), region = 24 }
   0xb   : > { %s316_s7 = smov (!%p106_p3, %s243_s7), 7  ;;  %vm126_vm0 = vcmask 523264   ;;  %vm146_vm1 = vcmask 36864   ;;  %vm161_vm2 = vcmask 1041408   ;;  %vm162_vm3 = vcmask 1042432  }
   0xc   : > { %s255_s8 = sshll.u32 %s316_s7, 3  ;;  %v279_v12 = vmov 65535   ;;  %vm157_vm4 = vcmask 39936   ;;  %s250_s13 = sshll.u32 %s316_s7, 2  ;;  %vm184_vm5 = vcmask 518144  }
   0xd   : > { %s110_s11 = scalar_lea.vmem %s313_s0, %s255_s8  ;;  %v163_v13 = vsel %vm161_vm2, 4294967295, %v279_v12  ;;  %s114_s16 = scalar_lea.vmem %s314_s1, %s250_s13  ;;  %vm185_vm6 = vsmask.f32 2304 }
   0xe   : > { %v116_v0 = vld [vmem:[%s110_s11] sm:$0x7]  ;;  %v119_v11 = vld [vmem:[%s110_s11 + $0x4] sm:$0x7]  ;;  %v164_v14 = vsel %vm162_vm3, %v163_v13, 0  ;;  %vm186_vm7 = vmand %vm184_vm5, %vm185_vm6 }
   0xf   : > { %v122_v1 = vunpack.c.l.b16 %v116_v0  ;;  %v117_v3 = vunpack.c.l.bf16 %v116_v0  ;;  %v166_v15 = vand.u32 %v164_v14, %v119_v11  ;;  %v187_v26 = vld [vmem:[%s114_s16] sm:$0x7] }
  0x11   : > { %v123_v2 = vpack.c.b16 %v122_v1, %v122_v1  ;;  %v118_v6 = vmul.f32 0.125, %v117_v3  ;;  %175 = vmatpush.bf16.msra.mxu1 %v166_v15 }
  0x13   : > { %124 = vrot.lane.b32.xlu0 %v123_v2, %s278_s12  ;;  %v120_v7 = vpack.c.bf16 %v118_v6, %v118_v6 }
  0x85   : > { %v125_v4 = vpop.permute.xlu0 %124 }
  0x86   : > { %v131_v5 = vsel %vm126_vm0, %v125_v4, 0 }
  0x87   : > { %140 = vmatpush.bf16.xpose.msra.mxu0 %v131_v5 }
  0x8e   : > { %251 = vmatmul.msk.bf16.vlgmr.msra.gmra.mxu0 %vm126_vm0, %v120_v7 }
 0x10b   : > { %v142_v8 = vpop.f32.mrf.mxu0 }
 0x10c   : > { %v147_v9 = vsel %vm146_vm1, %v142_v8, -inf }
 0x10d   : > { %148 = vmax.xlane.f32.xlu0 %v147_v9 }
 0x113   : > { %v144_v10 = vpop.f32.mrf.mxu0 }
 0x180   : > { %v149_v16 = vpop.xlane.xlu0 %148 }
 0x181   : > { %v150_v17 = vsub.f32 %v142_v8, %v149_v16 }
 0x183   : > { %v151_v18 = vmul.f32 1.442695, %v150_v17 }
 0x185   : > { %266 = vpow2.f32 %v151_v18 }
 0x18b   : > { %v267_v19 = vpop.eup %266 }
 0x18c   : > { %v153_v20 = vsel %vm146_vm1, %v267_v19, 0.0  ;;  %v156_v21 = vpack.c.bf16 %v267_v19, %v267_v19 }
 0x18d   : > { %154 = vadd.xlane.f32.xlu1 %v153_v20 }
 0x18e   : > { %252 = vmatmul.msk.bf16.vlgmr.msra.gmra.mxu1 %vm157_vm4, %v156_v21 }
 0x200   : > { %v155_v22 = vpop.xlane.xlu1 %154 }
 0x201   : > { %268 = vrcp.f32 %v155_v22 }
 0x207   : > { %v269_v23 = vpop.eup %268 }
 0x20b   : > { %v177_v24 = vpop.f32.mrf.mxu1 }
 0x20c   : > { %v182_v25 = vmul.f32 %v269_v23, %v177_v24 }
 0x20e   : > { %v183_v27 = vpack.c.bf16 %v182_v25, %v182_v25 }
 0x210   : > { %v188_v28 = vsel %vm186_vm7, %v183_v27, %v187_v26 }
 0x211   : > { %189 = vst [vmem:[%s114_s16] sm:$0x7] %v188_v28 }
 0x213   : > { %v179_v29 = vpop.f32.mrf.mxu1 }
 0x214 PF: > { %s11_s6 = sadd.s32 1, %s276_s6  }
 0x215   : > { %p8_p4 = scmp.ge.s32.totalorder %s11_s6, 10  }
 0x217   :  { %10 = sbr.rel (!%p8_p4) target bundleno = 1 (0x1), region = 54 }

// kernel: _lambda_.51
= control target key start
LH: loop header
LB: loop body
LE: loop exit
PB: predicated region body
PF: predicated region fallthrough
CT: control target
= control target key end

     0   :  { %vm69_vm0 = vcmask 523264   ;;  %s220_s1 = inlined_call_operand.vmem [shape: bf16[64,64], index: 1, kind: input, shape index: {}]   ;;  %s221_s2 = inlined_call_operand.vmem [shape: f32[1,64], index: 2, kind: input, shape index: {}]   ;;  %s222_s0 = inlined_call_operand.vmem [shape: bf16[40,64], index: 0, kind: input, shape index: {}]   ;;  %s223_s3 = inlined_call_operand.vmem [shape: f32[40,64], index: 3, kind: output, shape index: {}]  }
   0x1   :  { %v143_v0 = vld [vmem:[%s220_s1 + $0x18] sm:$0xff]  ;;  %v142_v1 = vld [vmem:[%s220_s1 + $0x10] sm:$0xff]  ;;  %v141_v2 = vld [vmem:[%s220_s1 + $0x8] sm:$0xff] }
   0x2   :  { %83 = vmatpush.bf16.msra.mxu0 %v143_v0  ;;  %144 = vmatpush.bf16.msra.mxu1 %v143_v0  ;;  %v19_v3 = vld [vmem:[%s222_s0 + $0x10] sm:$0xf]  ;;  %v140_v4 = vld [vmem:[%s220_s1] sm:$0xff]  ;;  %v139_v7 = vld [vmem:[%s222_s0 + $0x8] sm:$0xff] }
   0x3   :  { %145 = vmatpush.bf16.msra.mxu2 %v143_v0  ;;  %v41_v5 = vunpack.c.l.b16 %v19_v3  ;;  %v138_v6 = vld [vmem:[%s222_s0] sm:$0xff] }
   0x4   :  { %v152_v9 = vld [vmem:[%s221_s2] ss:$0 sm:$0xff] }
   0x5   :  { %v44_v8 = vpack.c.b16 %v41_v5, %v41_v5 }
   0x6   :  { %84 = vmatpush.bf16.msra.mxu0 %v142_v1  ;;  %146 = vmatpush.bf16.msra.mxu1 %v142_v1 }
   0x7   :  { %147 = vmatpush.bf16.msra.mxu2 %v142_v1 }
   0xa   :  { %85 = vmatpush.bf16.msra.mxu0 %v141_v2  ;;  %148 = vmatpush.bf16.msra.mxu1 %v141_v2 }
   0xb   :  { %149 = vmatpush.bf16.msra.mxu2 %v141_v2 }
   0xe   :  { %86 = vmatpush.bf16.msra.mxu0 %v140_v4  ;;  %150 = vmatpush.bf16.msra.mxu1 %v140_v4 }
   0xf   :  { %151 = vmatpush.bf16.msra.mxu2 %v140_v4 }
  0x11   :  { %135 = vmatmul.msk.bf16.vlgmr.msra.gmra.mxu0 %vm69_vm0, %v138_v6  ;;  %136 = vmatmul.msk.bf16.vlgmr.msra.gmra.mxu1 %vm69_vm0, %v139_v7 }
  0x12   :  { %137 = vmatmul.msk.bf16.vlgmr.msra.gmra.mxu2 %vm69_vm0, %v44_v8 }
  0x8e   :  { %v88_v10 = vpop.f32.mrf.mxu0  ;;  %v93_v11 = vpop.f32.mrf.mxu1 }
  0x8f   :  { %v89_v12 = vadd.f32 %v152_v9, %v88_v10  ;;  %v94_v13 = vadd.f32 %v152_v9, %v93_v11 }
  0x91   :  { %102 = vst.msk [vmem:[%s223_s3] sm:$0xff] %vm69_vm0, %v89_v12 }
  0x92   :  { %104 = vst.msk [vmem:[%s223_s3 + $0x10] sm:$0xff] %vm69_vm0, %v94_v13 }
  0x95   :  { %v98_v14 = vpop.f32.mrf.mxu2 }
  0x96   :  { %v99_v15 = vadd.f32 %v152_v9, %v98_v14  ;;  %v90_v16 = vpop.f32.mrf.mxu0  ;;  %v95_v17 = vpop.f32.mrf.mxu1 }
  0x97   :  { %v91_v18 = vadd.f32 %v152_v9, %v90_v16  ;;  %v96_v19 = vadd.f32 %v152_v9, %v95_v17 }
  0x98   :  { %106 = vst.msk [vmem:[%s223_s3 + $0x20] sm:$0xff] %vm69_vm0, %v99_v15 }
  0x99   :  { %103 = vst.msk [vmem:[%s223_s3 + $0x8] sm:$0xff] %vm69_vm0, %v91_v18 }
  0x9a   :  { %105 = vst.msk [vmem:[%s223_s3 + $0x18] sm:$0xff] %vm69_vm0, %v96_v19 }
  0x9d   :  { %v100_v20 = vpop.f32.mrf.mxu2 }

// kernel: _lambda_.53
= control target key start
LH: loop header
LB: loop body
LE: loop exit
PB: predicated region body
PF: predicated region fallthrough
CT: control target
= control target key end

     0   :  { %s1028_s18 = smov 0   ;;  %s1030_s19 = smov 0   ;;  %s1241_s0 = inlined_call_operand.vmem [shape: f32[32,64], index: 0, kind: input, shape index: {}]   ;;  %s1242_s1 = inlined_call_operand.vmem [shape: bf16[64,256], index: 1, kind: input, shape index: {}]   ;;  %s1243_s2 = inlined_call_operand.vmem [shape: f32[1,256], index: 2, kind: input, shape index: {}]   ;;  %s1244_s3 = inlined_call_operand.vmem [shape: f32[1,64], index: 3, kind: input, shape index: {}]   ;;  %s1245_s4 = inlined_call_operand.vmem [shape: f32[1,64], index: 4, kind: input, shape index: {}]   ;;  %s1246_s5 = inlined_call_operand.vmem [shape: bf16[32,256], index: 5, kind: output, shape index: {}]  }
   0x1   :  { %s1032_s20 = smov 0   ;;  %s1034_s21 = smov 0  }
   0x2   :  { %s1036_s22 = smov 0  }
   0x3 LB: > { %s30_s23 = sadd.s32 1, %s992_s21  ;;  %s850_s24 = sadd.s32 4294967295, %s996_s22   ;;  %s996_s22 = sphi %s1036_s22, %s15_s22   ;;  %s992_s21 = sphi %s1034_s21, %s1253_s21   ;;  %s988_s20 = sphi %s1032_s20, %s1252_s20   ;;  %s984_s19 = sphi %s1030_s19, %s1251_s19   ;;  %s980_s18 = sphi %s1028_s18, %s1250_s18  }
   0x4   : > { %p32_p0 = scmp.ge.s32.totalorder %s30_s23, 2  ;;  %p78_p1 = scmp.ne.s32.totalorder %s984_s19, %s980_s18 }
   0x5   : > { %p79_p2 = scmp.eq.s32.totalorder %s996_s22, 0  ;;  %p188_p4 = scmp.eq.s32.totalorder %s850_s24, 1 }
   0x6   : > { %s1255_s23 = smov (%p32_p0, %s30_s23), 0  ;;  %s71_s26 = sadd.s32 1, %s984_s19 }
   0x7   : > { %p80_p3 = por %p79_p2, %p78_p1  ;;  %s67_s25 = ssub.s32 %s992_s21, %s1255_s23 }
   0x8   : > { %p69_p5 = scmp.eq.s32.totalorder %s67_s25, 0  ;;  %p1063_p6 = por %p188_p4, %p78_p1 }
   0x9   : > { %p856_p7 = scmp.ge.s32.totalorder %s996_s22, 2 }
   0xa   : > { %s1068_s28 = scalar_select %p69_p5, %s984_s19, %s71_s26  }
   0xb   : > { %234 = sbr.rel (%p856_p7) target bundleno = 28 (0x1c), region = 28 }
  0x10   : > { %237 = sbr.rel (!%p80_p3) target bundleno = 28 (0x1c), region = 32  ;;  %s239_s29 = sand.u32 (%p80_p3), 1, %s984_s19  }
  0x11   : > { %s858_s30 = sshll.u32 (%p80_p3), %s992_s21, 2  ;;  %s857_s6 = sshll.u32 (%p80_p3), %s239_s29, 5 }
  0x12   : > { %s246_s9 = scalar_lea.vmem (%p80_p3), %s1242_s1, %s858_s30  ;;  %s241_s10 = scalar_lea.vmem (%p80_p3), [#allocation2], %s857_s6 }
  0x13   : > { %v263_v0 = vld [vmem:[%s246_s9] sm:$0xf] (%p80_p3)  ;;  %v265_v1 = vld [vmem:[%s246_s9 + $0x8] sm:$0xf] (%p80_p3)  ;;  %v267_v2 = vld [vmem:[%s246_s9 + $0x10] sm:$0xf] (%p80_p3) }
  0x14   : > { %264 = vst [vmem:[%s241_s10] sm:$0xf] (%p80_p3), %v263_v0  ;;  %v269_v3 = vld [vmem:[%s246_s9 + $0x18] sm:$0xf] (%p80_p3)  ;;  %v271_v4 = vld [vmem:[%s246_s9 + $0x20] sm:$0xf] (%p80_p3) }
  0x15   : > { %266 = vst [vmem:[%s241_s10 + $0x4] sm:$0xf] %v265_v1  ;;  %v273_v5 = vld [vmem:[%s246_s9 + $0x28] sm:$0xf]  ;;  %v275_v6 = vld [vmem:[%s246_s9 + $0x30] sm:$0xf] }
  0x16   : > { %268 = vst [vmem:[%s241_s10 + $0x8] sm:$0xf] %v267_v2  ;;  %v277_v7 = vld [vmem:[%s246_s9 + $0x38] sm:$0xf] }
  0x17   : > { %270 = vst [vmem:[%s241_s10 + $0xc] sm:$0xf] %v269_v3 }
  0x18   : > { %272 = vst [vmem:[%s241_s10 + $0x10] sm:$0xf] %v271_v4 }
  0x19   : > { %274 = vst [vmem:[%s241_s10 + $0x14] sm:$0xf] %v273_v5 }
  0x1a   : > { %276 = vst [vmem:[%s241_s10 + $0x18] sm:$0xf] %v275_v6 }
  0x1b   : > { %278 = vst [vmem:[%s241_s10 + $0x1c] sm:$0xf] %v277_v7 }
  0x1c PF: > { %p859_p8 = scmp.ge.s32.totalorder %s996_s22, 1  ;;  %p323_p9 = scmp.lt.s32.totalorder %s996_s22, 3 }
  0x1e   : > { %p324_p10 = pnand %p859_p8, %p323_p9 }
  0x1f   : > { %s330_s11 = sand.u32 (!%p324_p10), 1, %s980_s18   ;;  %p383_p11 = scmp.lt.s32.totalorder (!%p324_p10), %s988_s20, 1 }
  0x20   : > { %327 = sbr.rel (%p324_p10) target bundleno = 255 (0xff), region = 77  ;;  %s860_s12 = sshll.u32 (!%p324_p10), %s330_s11, 5 }
  0x21   : > { %s332_s13 = scalar_lea.vmem (!%p324_p10), [#allocation2], %s860_s12 }
  0x25   : > { %v891_v8 = vld [vmem:[%s332_s13 + $0x18] sm:$0xff]  ;;  %v394_v9 = vld [vmem:[%s1241_s0] sm:$0xff]  ;;  %v395_v10 = vld [vmem:[%s1241_s0 + $0x8] sm:$0xff]  ;;  %s1092_s26 = scalar_select %p383_p11, %s988_s20, 1  ;;  %vm452_vm0 = vcmask 523264  }
  0x26   : > { %v947_v11 = vld [vmem:[%s1244_s3] ss:$0 sm:$0xff]  ;;  %463 = vmatpush.bf16.msra.mxu0 %v891_v8  ;;  %903 = vmatpush.bf16.msra.mxu1 %v891_v8  ;;  %v890_v12 = vld [vmem:[%s332_s13 + $0x10] sm:$0xff]  ;;  %v397_v14 = vld [vmem:[%s1241_s0 + $0x18] sm:$0xff] }
  0x27   : > { %v396_v13 = vld [vmem:[%s1241_s0 + $0x10] sm:$0xff]  ;;  %s385_s10 = scalar_lea.vmem %s1243_s2, %s1092_s26  ;;  %v402_v15 = vmul.f32 %v947_v11, %v394_v9  ;;  %v403_v16 = vmul.f32 %v947_v11, %v395_v10  ;;  %v948_v17 = vld [vmem:[%s1245_s4] ss:$0 sm:$0xff]  ;;  %v405_v19 = vmul.f32 %v947_v11, %v397_v14  ;;  %v889_v20 = vld [vmem:[%s332_s13 + $0x8] sm:$0xff] }
  0x28   : > { %v404_v18 = vmul.f32 %v947_v11, %v396_v13  ;;  %v888_v25 = vld [vmem:[%s332_s13] sm:$0xff]  ;;  %s861_s13 = sshll.u32 %s330_s11, 4  ;;  %s885_s11 = sshll.u32 (%p1063_p6), %s988_s20, 2 }
  0x29   : > { %v410_v21 = vadd.f32 %v948_v17, %v402_v15  ;;  %v411_v22 = vadd.f32 %v948_v17, %v403_v16  ;;  %v413_v24 = vadd.f32 %v948_v17, %v405_v19  ;;  %v949_v28 = vld [vmem:[%s385_s10] ss:$0 sm:$0xff]  ;;  %s372_s18 = scalar_lea.vmem [#allocation3], %s861_s13  ;;  %s673_s17 = scalar_lea.vmem (%p1063_p6), %s1246_s5, %s885_s11 }
  0x2a   : > { %464 = vmatpush.bf16.msra.mxu0 %v890_v12  ;;  %904 = vmatpush.bf16.msra.mxu1 %v890_v12  ;;  %v412_v23 = vadd.f32 %v948_v17, %v404_v18 }
  0x2b   : > { %v414_v26 = vpack.c.bf16 %v411_v22, %v410_v21 }
  0x2c   : > { %v415_v27 = vpack.c.bf16 %v413_v24, %v412_v23 }
  0x2e   : > { %465 = vmatpush.bf16.msra.mxu0 %v889_v20  ;;  %905 = vmatpush.bf16.msra.mxu1 %v889_v20 }
  0x32   : > { %466 = vmatpush.bf16.msra.mxu0 %v888_v25  ;;  %906 = vmatpush.bf16.msra.mxu1 %v888_v25 }
  0x35   : > { %878 = vmatmul.msk.bf16.vlgmr.msra.gmra.mxu0 %vm452_vm0, %v414_v26  ;;  %879 = vmatmul.msk.bf16.vlgmr.msra.gmra.mxu1 %vm452_vm0, %v415_v27 }
  0xb2   : > { %v468_v29 = vpop.f32.mrf.mxu0  ;;  %v473_v30 = vpop.f32.mrf.mxu1 }
  0xb3   : > { %v1107_v31 = vadd.f32 %v949_v28, %v468_v29  ;;  %v1109_v32 = vadd.f32 %v949_v28, %v473_v30 }
  0xb5   : > { %v1112_v33 = vmul.f32 0.70710677, %v1107_v31  ;;  %v1115_v34 = vmul.f32 0.70710677, %v1109_v32 }
  0xb7   : > { %v486_v35 = vmul.f32 %v1112_v33, %v1112_v33  ;;  %v566_v36 = vmul.f32 %v1115_v34, %v1115_v34 }
  0xb9   : > { %v1121_v37 = vmin.f32 %v486_v35, 16.0  ;;  %v1123_v38 = vmin.f32 %v566_v36, 16.0 }
  0xba   : > { %v470_v39 = vpop.f32.mrf.mxu0  ;;  %v475_v40 = vpop.f32.mrf.mxu1 }
  0xbb   : > { %v488_v41 = vmul.f32 2.1237322e-06, %v1121_v37  ;;  %v499_v42 = vmul.f32 3.8918573e-05, %v1121_v37  ;;  %v1127_v43 = vadd.f32 %v949_v28, %v470_v39  ;;  %v579_v44 = vmul.f32 3.8918573e-05, %v1123_v38 }
  0xbc   : > { %v1130_v45 = vadd.f32 %v949_v28, %v475_v40  ;;  %v568_v51 = vmul.f32 2.1237322e-06, %v1123_v38 }
  0xbd   : > { %v489_v46 = vadd.f32 0.00028619796, %v488_v41  ;;  %v500_v47 = vadd.f32 0.001143296, %v499_v42  ;;  %v580_v48 = vadd.f32 0.001143296, %v579_v44 }
  0xbe   : > { %v1133_v49 = vmul.f32 0.70710677, %v1127_v43  ;;  %v1138_v52 = vmul.f32 0.70710677, %v1130_v45  ;;  %v569_v61 = vadd.f32 0.00028619796, %v568_v51 }
  0xbf   : > { %v501_v50 = vmul.f32 %v500_v47, %v1121_v37  ;;  %v581_v53 = vmul.f32 %v580_v48, %v1123_v38  ;;  %v490_v55 = vmul.f32 %v489_v46, %v1121_v37 }
  0xc0   : > { %v526_v54 = vmul.f32 %v1133_v49, %v1133_v49  ;;  %v606_v57 = vmul.f32 %v1138_v52, %v1138_v52  ;;  %v570_v8 = vmul.f32 %v569_v61, %v1123_v38 }
  0xc1   : > { %v502_v56 = vadd.f32 0.014752088, %v501_v50  ;;  %v582_v58 = vadd.f32 0.014752088, %v581_v53  ;;  %v491_v2 = vadd.f32 0.0036580483, %v490_v55 }
  0xc2   : > { %v1146_v59 = vmin.f32 %v526_v54, 16.0  ;;  %v1149_v62 = vmin.f32 %v606_v57, 16.0  ;;  %v571_v19 = vadd.f32 0.0036580483, %v570_v8 }
  0xc3   : > { %v503_v60 = vmul.f32 %v502_v56, %v1121_v37  ;;  %v583_v63 = vmul.f32 %v582_v58, %v1123_v38  ;;  %v492_v14 = vmul.f32 %v491_v2, %v1121_v37 }
  0xc4   : > { %v528_v0 = vmul.f32 2.1237322e-06, %v1146_v59  ;;  %v539_v1 = vmul.f32 3.8918573e-05, %v1146_v59  ;;  %v608_v9 = vmul.f32 2.1237322e-06, %v1149_v62  ;;  %v572_v35 = vmul.f32 %v571_v19, %v1123_v38 }
  0xc5   : > { %v504_v3 = vadd.f32 0.112945676, %v503_v60  ;;  %v584_v4 = vadd.f32 0.112945676, %v583_v63  ;;  %v619_v13 = vmul.f32 3.8918573e-05, %v1149_v62 }
  0xc6   : > { %v529_v5 = vadd.f32 0.00028619796, %v528_v0  ;;  %v540_v6 = vadd.f32 0.001143296, %v539_v1  ;;  %v609_v23 = vadd.f32 0.00028619796, %v608_v9 }
  0xc7   : > { %v505_v7 = vmul.f32 %v504_v3, %v1121_v37  ;;  %v585_v10 = vmul.f32 %v584_v4, %v1123_v38  ;;  %v620_v24 = vadd.f32 0.001143296, %v619_v13  ;;  %v493_v25 = vadd.f32 0.05243302, %v492_v14 }
  0xc8   : > { %v530_v11 = vmul.f32 %v529_v5, %v1146_v59  ;;  %v541_v12 = vmul.f32 %v540_v6, %v1146_v59  ;;  %v610_v36 = vmul.f32 %v609_v23, %v1149_v62  ;;  %v573_v44 = vadd.f32 0.05243302, %v572_v35 }
  0xc9   : > { %v506_v15 = vadd.f32 0.4994258, %v505_v7  ;;  %v586_v16 = vadd.f32 0.4994258, %v585_v10  ;;  %v621_v29 = vmul.f32 %v620_v24, %v1149_v62  ;;  %v494_v39 = vmul.f32 %v493_v25, %v1121_v37 }
  0xca   : > { %v542_v17 = vadd.f32 0.014752088, %v541_v12  ;;  %v531_v20 = vadd.f32 0.0036580483, %v530_v11  ;;  %v611_v47 = vadd.f32 0.0036580483, %v610_v36  ;;  %v574_v61 = vmul.f32 %v573_v44, %v1123_v38 }
  0xcb   : > { %v507_v18 = vmul.f32 %v506_v15, %v1121_v37  ;;  %v587_v21 = vmul.f32 %v586_v16, %v1123_v38  ;;  %v622_v41 = vadd.f32 0.014752088, %v621_v29  ;;  %v495_v51 = vadd.f32 0.18741608, %v494_v39 }
  0xcc   : > { %v543_v22 = vmul.f32 %v542_v17, %v1146_v59  ;;  %v532_v30 = vmul.f32 %v531_v20, %v1146_v59  ;;  %v612_v0 = vmul.f32 %v611_v47, %v1149_v62  ;;  %v575_v9 = vadd.f32 0.18741608, %v574_v61 }
  0xcd   : > { %v508_v26 = vadd.f32 1.0, %v507_v18  ;;  %v1165_v27 = vadd.f32 1.0, %v587_v21  ;;  %v623_v48 = vmul.f32 %v622_v41, %v1149_v62  ;;  %v496_v1 = vmul.f32 %v495_v51, %v1121_v37 }
  0xce   : > { %v544_v28 = vadd.f32 0.112945676, %v543_v22  ;;  %v533_v42 = vadd.f32 0.05243302, %v532_v30  ;;  %v613_v10 = vadd.f32 0.05243302, %v612_v0  ;;  %v576_v21 = vmul.f32 %v575_v9, %v1123_v38 }
  0xcf   : > { %950 = vrcp.f32 %v508_v26  ;;  %v624_v58 = vadd.f32 0.112945676, %v623_v48  ;;  %v520_v8 = vand.u32 2147483648, %v508_v26  ;;  %v497_v11 = vadd.f32 1.1283791, %v496_v1 }
  0xd0   : > { %952 = vrcp.f32 %v1165_v27  ;;  %v545_v40 = vmul.f32 %v544_v28, %v1146_v59  ;;  %v534_v57 = vmul.f32 %v533_v42, %v1146_v59  ;;  %vm514_vm2 = vweird.f32 %v508_v26 }
  0xd1   : > { %v625_v2 = vmul.f32 %v624_v58, %v1149_v62  ;;  %v518_v12 = vand.u32 2147483647, %v508_v26  ;;  %v521_v18 = vor.u32 1.1754944e-38, %v520_v8  ;;  %v614_v19 = vmul.f32 %v613_v10, %v1149_v62 }
  0xd2   : > { %v546_v46 = vadd.f32 0.4994258, %v545_v40  ;;  %v535_v5 = vadd.f32 0.18741608, %v534_v57  ;;  %v498_v20 = vmul.f32 %v497_v11, %v1112_v33  ;;  %v600_v25 = vand.u32 2147483648, %v1165_v27 }
  0xd3   : > { %v626_v6 = vadd.f32 0.4994258, %v625_v2  ;;  %vm519_vm4 = vcmp.eq.f32.partialorder %v518_v12, 8.507059e+37  ;;  %vm594_vm6 = vweird.f32 %v1165_v27  ;;  %v615_v30 = vadd.f32 0.18741608, %v614_v19 }
  0xd4   : > { %v547_v55 = vmul.f32 %v546_v46, %v1146_v59  ;;  %v536_v15 = vmul.f32 %v535_v5, %v1146_v59  ;;  %v598_v59 = vand.u32 2147483647, %v1165_v27  ;;  %v577_v39 = vadd.f32 1.1283791, %v576_v21 }
  0xd5   : > { %v951_v50 = vpop.eup %950  ;;  %v627_v13 = vmul.f32 %v626_v6, %v1149_v62  ;;  %v601_v41 = vor.u32 1.1754944e-38, %v600_v25  ;;  %v616_v47 = vmul.f32 %v615_v30, %v1149_v62  ;;  %v478_v1 = vmul.f32 0.5, %v1107_v31 }
  0xd6   : > { %v1175_v53 = vpop.eup %952  ;;  %v510_v54 = vmul.f32 %v951_v50, %v508_v26  ;;  %v548_v63 = vadd.f32 1.0, %v547_v55  ;;  %vm515_vm1 = vweird.f32 %v951_v50  ;;  %v537_v26 = vadd.f32 1.1283791, %v536_v15 }
  0xd7   : > { %v590_v56 = vmul.f32 %v1175_v53, %v1165_v27  ;;  %vm516_vm3 = vmor %vm514_vm2, %vm515_vm1  ;;  %v1188_v16 = vadd.f32 1.0, %v627_v13  ;;  %vm595_vm5 = vweird.f32 %v1175_v53  ;;  %vm599_vm9 = vcmp.eq.f32.partialorder %v598_v59, 8.507059e+37 }
  0xd8   : > { %v511_v60 = vsub.f32 1.0, %v510_v54  ;;  %954 = vrcp.f32 %v548_v63  ;;  %v558_v33 = vand.u32 2147483647, %v548_v63  ;;  %v560_v29 = vand.u32 2147483648, %v548_v63  ;;  %vm1199_vm7 = vmor %vm594_vm6, %vm595_vm5 }
  0xd9   : > { %v591_v4 = vsub.f32 1.0, %v590_v56  ;;  %956 = vrcp.f32 %v1188_v16  ;;  %vm554_vm10 = vweird.f32 %v548_v63  ;;  %v538_v44 = vmul.f32 %v537_v26, %v1133_v49 }
  0xda   : > { %v512_v3 = vmul.f32 %v951_v50, %v511_v60  ;;  %vm559_vm12 = vcmp.eq.f32.partialorder %v558_v33, 8.507059e+37  ;;  %v561_v46 = vor.u32 1.1754944e-38, %v560_v29  ;;  %v617_v60 = vadd.f32 1.1283791, %v616_v47 }
  0xdb   : > { %v592_v37 = vmul.f32 %v1175_v53, %v591_v4  ;;  %v638_v49 = vand.u32 2147483647, %v1188_v16  ;;  %v640_v61 = vand.u32 2147483648, %v1188_v16  ;;  %v479_v2 = vmul.f32 0.5, %v1127_v43 }
  0xdc   : > { %v513_v7 = vadd.f32 %v951_v50, %v512_v3  ;;  %vm634_vm14 = vweird.f32 %v1188_v16  ;;  %v618_v5 = vmul.f32 %v617_v60, %v1138_v52  ;;  %v480_v13 = vmul.f32 0.5, %v1109_v32 }
  0xdd   : > { %v593_v24 = vadd.f32 %v1175_v53, %v592_v37  ;;  %v641_v6 = vor.u32 1.1754944e-38, %v640_v61  ;;  %vm639_vm0 = vcmp.eq.f32.partialorder %v638_v49, 8.507059e+37  ;;  %v481_v37 = vmul.f32 0.5, %v1130_v45 }
  0xde   : > { %v517_v14 = vsel %vm516_vm3, %v951_v50, %v513_v7  ;;  %v955_v17 = vpop.eup %954 }
  0xdf   : > { %v550_v22 = vmul.f32 %v955_v17, %v548_v63  ;;  %v522_v23 = vsel %vm519_vm4, %v521_v18, %v517_v14  ;;  %vm555_vm8 = vweird.f32 %v955_v17  ;;  %v597_v40 = vsel %vm1199_vm7, %v1175_v53, %v593_v24  ;;  %v957_v27 = vpop.eup %956 }
  0xe0   : > { %v523_v38 = vmul.f32 %v522_v23, %v498_v20  ;;  %vm556_vm11 = vmor %vm554_vm10, %vm555_vm8  ;;  %v602_v50 = vsel %vm599_vm9, %v601_v41, %v597_v40  ;;  %v630_v54 = vmul.f32 %v957_v27, %v1188_v16  ;;  %v578_v53 = vmul.f32 %v577_v39, %v1115_v34 }
  0xe1   : > { %v551_v28 = vsub.f32 1.0, %v550_v22  ;;  %vm635_vm13 = vweird.f32 %v957_v27 }
  0xe2   : > { %v880_v48 = vclamps-f32 %v523_v38, 1.0  ;;  %v631_v57 = vsub.f32 1.0, %v630_v54  ;;  %v603_v58 = vmul.f32 %v602_v50, %v578_v53  ;;  %vm636_vm15 = vmor %vm634_vm14, %vm635_vm13 }
  0xe3   : > { %v552_v36 = vmul.f32 %v955_v17, %v551_v28 }
  0xe4   : > { %v646_v63 = vadd.f32 1.0, %v880_v48  ;;  %v632_v62 = vmul.f32 %v957_v27, %v631_v57  ;;  %v882_v4 = vclamps-f32 %v603_v58, 1.0 }
  0xe5   : > { %v553_v42 = vadd.f32 %v955_v17, %v552_v36 }
  0xe6   : > { %v633_v3 = vadd.f32 %v957_v27, %v632_v62  ;;  %v650_v7 = vmul.f32 %v646_v63, %v478_v1  ;;  %v648_v12 = vadd.f32 1.0, %v882_v4 }
  0xe7   : > { %v557_v51 = vsel %vm556_vm11, %v955_v17, %v553_v42 }
  0xe8   : > { %v562_v55 = vsel %vm559_vm12, %v561_v46, %v557_v51  ;;  %v637_v9 = vsel %vm636_vm15, %v957_v27, %v633_v3  ;;  %v652_v15 = vmul.f32 %v648_v12, %v480_v13 }
  0xe9   : > { %v563_v56 = vmul.f32 %v562_v55, %v538_v44  ;;  %v642_v10 = vsel %vm639_vm0, %v641_v6, %v637_v9 }
  0xea   : > { %v643_v31 = vmul.f32 %v642_v10, %v618_v5 }
  0xeb   : > { %v881_v0 = vclamps-f32 %v563_v56, 1.0 }
  0xec   : > { %v883_v43 = vclamps-f32 %v643_v31, 1.0 }
  0xed   : > { %v647_v34 = vadd.f32 1.0, %v881_v0 }
  0xee   : > { %v649_v14 = vadd.f32 1.0, %v883_v43 }
  0xef   : > { %v651_v8 = vmul.f32 %v647_v34, %v479_v2 }
  0xf0   : > { %v653_v52 = vmul.f32 %v649_v14, %v481_v37  ;;  %668 = sbr.rel (!%p1063_p6) target bundleno = 255 (0xff), region = 85 }
  0xf1   : > { %v895_v11 = vpack.c.bf16 %v651_v8, %v650_v7 }
  0xf2   : > { %v900_v16 = vpack.c.bf16 %v653_v52, %v652_v15 }
  0xf3   : > { %896 = vst [vmem:[%s372_s18] sm:$0xff] %v895_v11  }
  0xf4   : > { %902 = vst [vmem:[%s372_s18 + $0x8] sm:$0xff] %v900_v16  }
  0xfa   : > { %v690_v17 = vld [vmem:[%s372_s18] sm:$0xf]  ;;  %v692_v18 = vld [vmem:[%s372_s18 + $0x4] sm:$0xf] }
  0xfb   : > { %v694_v19 = vld [vmem:[%s372_s18 + $0x8] sm:$0xf]  ;;  %691 = vst [vmem:[%s673_s17] sm:$0xf] %v690_v17  ;;  %v696_v32 = vld [vmem:[%s372_s18 + $0xc] sm:$0xf] }
  0xfc   : > { %693 = vst [vmem:[%s673_s17 + $0x8] sm:$0xf] %v692_v18 }
  0xfd   : > { %695 = vst [vmem:[%s673_s17 + $0x10] sm:$0xf] %v694_v19 }
  0xfe   : > { %697 = vst [vmem:[%s673_s17 + $0x18] sm:$0xf] %v696_v32 }
  0xff PF: > { %s15_s22 = sadd.s32 1, %s996_s22   ;;  %s1250_s18 = smov %s984_s19 }
 0x100   : > { %p12_p12 = scmp.ge.s32.totalorder %s15_s22, 4   ;;  %s1251_s19 = smov %s1068_s28 }
 0x101   : > { %s1252_s20 = smov %s992_s21  ;;  %s1253_s21 = smov %s1255_s23 }
 0x102   :  { %14 = sbr.rel (!%p12_p12) target bundleno = 3 (0x3), region = 169 }

// kernel: _lambda_.54
= control target key start
LH: loop header
LB: loop body
LE: loop exit
PB: predicated region body
PF: predicated region fallthrough
CT: control target
= control target key end

     0   :  { %vm219_vm0 = vcmask 523264   ;;  %s473_s1 = inlined_call_operand.vmem [shape: bf16[256,64], index: 1, kind: input, shape index: {}]   ;;  %s474_s2 = inlined_call_operand.vmem [shape: f32[1,64], index: 2, kind: input, shape index: {}]   ;;  %s475_s0 = inlined_call_operand.vmem [shape: bf16[32,256], index: 0, kind: input, shape index: {}]   ;;  %s476_s3 = inlined_call_operand.vmem [shape: f32[32,64], index: 3, kind: input, shape index: {}]   ;;  %s477_s4 = inlined_call_operand.vmem [shape: f32[32,64], index: 4, kind: output, shape index: {}]  }
   0x1   :  { %v319_v0 = vld [vmem:[%s473_s1 + $0x38] sm:$0xff]  ;;  %v318_v2 = vld [vmem:[%s473_s1 + $0x30] sm:$0xff]  ;;  %v317_v4 = vld [vmem:[%s473_s1 + $0x28] sm:$0xff] }
   0x2   :  { %v327_v1 = vld [vmem:[%s473_s1 + $0x78] sm:$0xff]  ;;  %173 = vmatpush.bf16.msra.mxu0 %v319_v0  ;;  %328 = vmatpush.bf16.msra.mxu2 %v319_v0  ;;  %v326_v3 = vld [vmem:[%s473_s1 + $0x70] sm:$0xff]  ;;  %v325_v5 = vld [vmem:[%s473_s1 + $0x68] sm:$0xff] }
   0x3   :  { %192 = vmatpush.bf16.msra.mxu1 %v327_v1  ;;  %336 = vmatpush.bf16.msra.mxu3 %v327_v1  ;;  %v316_v6 = vld [vmem:[%s473_s1 + $0x20] sm:$0xff]  ;;  %v315_v8 = vld [vmem:[%s473_s1 + $0x18] sm:$0xff]  ;;  %v314_v10 = vld [vmem:[%s473_s1 + $0x10] sm:$0xff] }
   0x4   :  { %v324_v7 = vld [vmem:[%s473_s1 + $0x60] sm:$0xff]  ;;  %v323_v9 = vld [vmem:[%s473_s1 + $0x58] sm:$0xff]  ;;  %v322_v11 = vld [vmem:[%s473_s1 + $0x50] sm:$0xff] }
   0x5   :  { %v313_v12 = vld [vmem:[%s473_s1 + $0x8] sm:$0xff]  ;;  %v312_v14 = vld [vmem:[%s473_s1] sm:$0xff]  ;;  %v238_v18 = vld [vmem:[%s475_s0 + $0x10] sm:$0xf] }
   0x6   :  { %174 = vmatpush.bf16.msra.mxu0 %v318_v2  ;;  %329 = vmatpush.bf16.msra.mxu2 %v318_v2  ;;  %v321_v13 = vld [vmem:[%s473_s1 + $0x48] sm:$0xff]  ;;  %v320_v15 = vld [vmem:[%s473_s1 + $0x40] sm:$0xff]  ;;  %v311_v19 = vld [vmem:[%s475_s0 + $0x14] sm:$0xf0] }
   0x7   :  { %193 = vmatpush.bf16.msra.mxu1 %v326_v3  ;;  %337 = vmatpush.bf16.msra.mxu3 %v326_v3  ;;  %v230_v16 = vld [vmem:[%s475_s0] sm:$0xf]  ;;  %v309_v17 = vld [vmem:[%s475_s0 + $0x4] sm:$0xf0]  ;;  %v308_v20 = vld [vmem:[%s475_s0 + $0x4] sm:$0xf]  ;;  %v239_v25 = vor.u32 %v311_v19, %v238_v18 }
   0x8   :  { %v232_v21 = vld [vmem:[%s475_s0 + $0x8] sm:$0xf0]  ;;  %v310_v22 = vld [vmem:[%s475_s0 + $0x14] sm:$0xf]  ;;  %v240_v23 = vld [vmem:[%s475_s0 + $0x18] sm:$0xf0]  ;;  %v231_v24 = vor.u32 %v309_v17, %v230_v16 }
   0x9   :  { %v235_v26 = vor.u32 %v308_v20, %v232_v21  ;;  %v243_v27 = vor.u32 %v310_v22, %v240_v23  ;;  %v344_v28 = vld [vmem:[%s474_s2] ss:$0 sm:$0xff]  ;;  %v213_v38 = vld [vmem:[%s476_s3 + $0x10] sm:$0xff]  ;;  %v212_v43 = vld [vmem:[%s476_s3 + $0x8] sm:$0xff] }
   0xa   :  { %175 = vmatpush.bf16.msra.mxu0 %v317_v4  ;;  %330 = vmatpush.bf16.msra.mxu2 %v317_v4  ;;  %v211_v32 = vld [vmem:[%s476_s3] sm:$0xff]  ;;  %v214_v50 = vld [vmem:[%s476_s3 + $0x18] sm:$0xff] }
   0xb   :  { %194 = vmatpush.bf16.msra.mxu1 %v325_v5  ;;  %338 = vmatpush.bf16.msra.mxu3 %v325_v5 }
   0xe   :  { %176 = vmatpush.bf16.msra.mxu0 %v316_v6  ;;  %331 = vmatpush.bf16.msra.mxu2 %v316_v6 }
   0xf   :  { %195 = vmatpush.bf16.msra.mxu1 %v324_v7  ;;  %339 = vmatpush.bf16.msra.mxu3 %v324_v7 }
  0x12   :  { %177 = vmatpush.bf16.msra.mxu0 %v315_v8  ;;  %332 = vmatpush.bf16.msra.mxu2 %v315_v8 }
  0x13   :  { %196 = vmatpush.bf16.msra.mxu1 %v323_v9  ;;  %340 = vmatpush.bf16.msra.mxu3 %v323_v9 }
  0x16   :  { %178 = vmatpush.bf16.msra.mxu0 %v314_v10  ;;  %333 = vmatpush.bf16.msra.mxu2 %v314_v10 }
  0x17   :  { %197 = vmatpush.bf16.msra.mxu1 %v322_v11  ;;  %341 = vmatpush.bf16.msra.mxu3 %v322_v11 }
  0x1a   :  { %179 = vmatpush.bf16.msra.mxu0 %v313_v12  ;;  %334 = vmatpush.bf16.msra.mxu2 %v313_v12 }
  0x1b   :  { %198 = vmatpush.bf16.msra.mxu1 %v321_v13  ;;  %342 = vmatpush.bf16.msra.mxu3 %v321_v13 }
  0x1e   :  { %180 = vmatpush.bf16.msra.mxu0 %v312_v14  ;;  %335 = vmatpush.bf16.msra.mxu2 %v312_v14 }
  0x1f   :  { %199 = vmatpush.bf16.msra.mxu1 %v320_v15  ;;  %343 = vmatpush.bf16.msra.mxu3 %v320_v15 }
  0x21   :  { %181 = vmatmul.bf16.vlgmr.msra.gmra.mxu0 %v231_v24  ;;  %186 = vmatmul.bf16.vlgmr.msra.gmra.mxu2 %v239_v25 }
  0x22   :  { %200 = vmatmul.bf16.vlgmr.msra.gmra.mxu1 %v235_v26  ;;  %205 = vmatmul.bf16.vlgmr.msra.gmra.mxu3 %v243_v27 }
  0x9e   :  { %v182_v29 = vpop.f32.mrf.mxu0 }
  0x9f   :  { %v183_v30 = vadd.f32 %v344_v28, %v182_v29  ;;  %v201_v31 = vpop.f32.mrf.mxu1 }
  0xa1   :  { %v202_v33 = vadd.f32 %v201_v31, %v183_v30 }
  0xa3   :  { %v215_v34 = vadd.f32 %v211_v32, %v202_v33 }
  0xa4   :  { %v187_v35 = vpop.f32.mrf.mxu2 }
  0xa5   :  { %220 = vst.msk [vmem:[%s477_s4] sm:$0xff] %vm219_vm0, %v215_v34  ;;  %v188_v36 = vadd.f32 %v344_v28, %v187_v35  ;;  %v206_v37 = vpop.f32.mrf.mxu3 }
  0xa6   :  { %v184_v39 = vpop.f32.mrf.mxu0 }
  0xa7   :  { %v207_v40 = vadd.f32 %v206_v37, %v188_v36  ;;  %v185_v41 = vadd.f32 %v344_v28, %v184_v39  ;;  %v203_v42 = vpop.f32.mrf.mxu1 }
  0xa9   :  { %v217_v44 = vadd.f32 %v213_v38, %v207_v40  ;;  %v204_v45 = vadd.f32 %v203_v42, %v185_v41 }
  0xab   :  { %222 = vst.msk [vmem:[%s477_s4 + $0x10] sm:$0xff] %vm219_vm0, %v217_v44  ;;  %v216_v46 = vadd.f32 %v212_v43, %v204_v45 }
  0xac   :  { %v189_v47 = vpop.f32.mrf.mxu2 }
  0xad   :  { %221 = vst.msk [vmem:[%s477_s4 + $0x8] sm:$0xff] %vm219_vm0, %v216_v46  ;;  %v190_v48 = vadd.f32 %v344_v28, %v189_v47  ;;  %v208_v49 = vpop.f32.mrf.mxu3 }
  0xaf   :  { %v209_v51 = vadd.f32 %v208_v49, %v190_v48 }
  0xb1   :  { %v218_v52 = vadd.f32 %v214_v50, %v209_v51 }
  0xb3   :  { %223 = vst.msk [vmem:[%s477_s4 + $0x18] sm:$0xff] %vm219_vm0, %v218_v52 }

// kernel: _lambda_.70
= control target key start
LH: loop header
LB: loop body
LE: loop exit
PB: predicated region body
PF: predicated region fallthrough
CT: control target
= control target key end

     0   :  { %vm62_vm0 = vcmask 523264   ;;  %s156_s1 = inlined_call_operand.vmem [shape: bf16[64,64], index: 1, kind: input, shape index: {}]   ;;  %s157_s0 = inlined_call_operand.vmem [shape: f32[8,64], index: 0, kind: input, shape index: {}]   ;;  %s158_s2 = inlined_call_operand.vmem [shape: f32[1,64], index: 2, kind: input, shape index: {}]   ;;  %s159_s3 = inlined_call_operand.vmem [shape: f32[1,64], index: 3, kind: input, shape index: {}]   ;;  %s160_s4 = inlined_call_operand.vmem [shape: f32[8,64], index: 4, kind: output, shape index: {}]  }
   0x1   :  { %v104_v0 = vld [vmem:[%s156_s1 + $0x18] sm:$0xff]  ;;  %v103_v1 = vld [vmem:[%s156_s1 + $0x10] sm:$0xff]  ;;  %v18_v2 = vld [vmem:[%s157_s0] sm:$0xff] }
   0x2   :  { %70 = vmatpush.bf16.msra.mxu0 %v104_v0  ;;  %v105_v3 = vld [vmem:[%s158_s2] ss:$0 sm:$0xff]  ;;  %v102_v6 = vld [vmem:[%s156_s1 + $0x8] sm:$0xff] }
   0x3   :  { %v23_v4 = vmul.f32 %v105_v3, %v18_v2  ;;  %v106_v5 = vld [vmem:[%s159_s3] ss:$0 sm:$0xff] }
   0x4   :  { %v101_v8 = vld [vmem:[%s156_s1] sm:$0xff] }
   0x5   :  { %v28_v7 = vadd.f32 %v106_v5, %v23_v4 }
   0x6   :  { %71 = vmatpush.bf16.msra.mxu0 %v103_v1 }
   0x7   :  { %v29_v9 = vpack.c.bf16 %v28_v7, %v28_v7 }
   0xa   :  { %72 = vmatpush.bf16.msra.mxu0 %v102_v6 }
   0xe   :  { %73 = vmatpush.bf16.msra.mxu0 %v101_v8 }
  0x11   :  { %100 = vmatmul.msk.bf16.vlgmr.msra.gmra.mxu0 %vm62_vm0, %v29_v9 }
  0x8e   :  { %v75_v10 = vpop.f32.mrf.mxu0 }
  0x8f   :  { %79 = vst.msk [vmem:[%s160_s4] sm:$0xff] %vm62_vm0, %v75_v10 }
  0x96   :  { %v77_v11 = vpop.f32.mrf.mxu0 }

// kernel: _lambda_.71
= control target key start
LH: loop header
LB: loop body
LE: loop exit
PB: predicated region body
PF: predicated region fallthrough
CT: control target
= control target key end

     0   :  { %vm20_vm0 = vcmask 523264   ;;  %s236_s0 = inlined_call_operand.vmem [shape: f32[8,64], index: 0, kind: input, shape index: {}]   ;;  %s237_s1 = inlined_call_operand.vmem [shape: bf16[64,32], index: 1, kind: input, shape index: {}]   ;;  %s238_s2 = inlined_call_operand.vmem [shape: f32[1,64], index: 2, kind: input, shape index: {}]   ;;  %s239_s3 = inlined_call_operand.vmem [shape: f32[1,64], index: 3, kind: input, shape index: {}]   ;;  %s240_s4 = inlined_call_operand.hbm [shape: f32[8,32], index: 4, kind: output, shape index: {}]  }
   0x1   :  { %v19_v0 = vld [vmem:[%s236_s0] sm:$0xff] }
   0x2   :  { %v21_v1 = vsel %vm20_vm0, %v19_v0, 0.0 }
   0x3   :  { %9 = vsyncpa [#allocation3], 0  ;;  %22 = vadd.xlane.f32.xlu0 %v21_v1  ;;  %v182_v2 = vmov 64.0   ;;  %v147_v14 = vld [vmem:[%s237_s1 + $0x18] sm:$0xff]  ;;  %v146_v15 = vld [vmem:[%s237_s1 + $0x10] sm:$0xff]  ;;  %s183_s27 = smov [#allocation2]  }
   0x4   :  { %152 = vrcp.f32 %v182_v2  ;;  %100 = vmatpush.bf16.msra.mxu0 %v147_v14  ;;  %v145_v16 = vld [vmem:[%s237_s1 + $0x8] sm:$0xff]  ;;  %v144_v17 = vld [vmem:[%s237_s1] sm:$0xff]  ;;  %s116_s28 = sshll.u32 %s183_s27, 4  ;;  %s118_s5 = sshll.u32 %s240_s4, 4  ;;  %vm109_vm5 = vcmask 261120   ;;  %s117_s28 = int_to_ptr.vmem [resolvable:$true] %s116_s28  ;;  %s119_s5 = int_to_ptr.hbm [resolvable:$true] %s118_s5 }
   0x5   :  { %v150_v27 = vld [vmem:[%s238_s2] ss:$0 sm:$0xff] }
   0x6   :  { %v151_v30 = vld [vmem:[%s239_s3] ss:$0 sm:$0xff] }
   0x8   :  { %101 = vmatpush.bf16.msra.mxu0 %v146_v15 }
   0xa   :  { %v153_v3 = vpop.eup %152 }
   0xb   :  { %v25_v4 = vmul.f32 64.0, %v153_v3  ;;  %vm29_vm1 = vweird.f32 %v153_v3 }
   0xc   :  { %102 = vmatpush.bf16.msra.mxu0 %v145_v16 }
   0xd   :  { %v26_v5 = vsub.f32 1.0, %v25_v4 }
   0xf   :  { %v27_v6 = vmul.f32 %v153_v3, %v26_v5 }
  0x10   :  { %103 = vmatpush.bf16.msra.mxu0 %v144_v17 }
  0x11   :  { %v28_v7 = vadd.f32 %v153_v3, %v27_v6 }
  0x13   :  { %v30_v8 = vsel %vm29_vm1, %v153_v3, %v28_v7 }
  0x76   :  { %v23_v9 = vpop.xlane.xlu0 %22 }
  0x77   :  { %v31_v10 = vmul.f32 %v30_v8, %v23_v9 }
  0x79   :  { %v32_v11 = vsub.f32 %v19_v0, %v31_v10 }
  0x7b   :  { %v33_v12 = vmul.f32 %v32_v11, %v32_v11 }
  0x7d   :  { %v34_v13 = vsel %vm20_vm0, %v33_v12, 0.0 }
  0x7e   :  { %35 = vadd.xlane.f32.xlu0 %v34_v13 }
  0xf1   :  { %v36_v18 = vpop.xlane.xlu0 %35 }
  0xf2   :  { %v37_v19 = vmul.f32 %v36_v18, %v30_v8 }
  0xf4   :  { %v38_v20 = vadd.f32 1e-05, %v37_v19 }
  0xf6   :  { %154 = vrsqrt.f32 %v38_v20  ;;  %vm45_vm3 = vweird.f32 %v38_v20 }
  0xfc   :  { %v155_v21 = vpop.eup %154 }
  0xfd   :  { %v40_v22 = vmul.f32 %v155_v21, %v38_v20  ;;  %vm46_vm2 = vweird.f32 %v155_v21 }
  0xfe   :  { %vm47_vm4 = vmor %vm45_vm3, %vm46_vm2 }
  0xff   :  { %v41_v23 = vmul.f32 %v155_v21, %v40_v22 }
 0x101   :  { %v42_v24 = vmul.f32 0.5, %v41_v23 }
 0x103   :  { %v43_v25 = vsub.f32 1.5, %v42_v24 }
 0x105   :  { %v44_v26 = vmul.f32 %v155_v21, %v43_v25 }
 0x107   :  { %v48_v28 = vsel %vm47_vm4, %v155_v21, %v44_v26 }
 0x108   :  { %v49_v29 = vmul.f32 %v48_v28, %v32_v11 }
 0x10a   :  { %v54_v31 = vmul.f32 %v150_v27, %v49_v29 }
 0x10c   :  { %v59_v32 = vadd.f32 %v151_v30, %v54_v31 }
 0x10e   :  { %v60_v33 = vpack.c.bf16 %v59_v32, %v59_v32 }
 0x110   :  { %143 = vmatmul.msk.bf16.vlgmr.msra.gmra.mxu0 %vm20_vm0, %v60_v33 }
 0x18d   :  { %v105_v34 = vpop.f32.mrf.mxu0 }
 0x18e   :  { %110 = vst.msk [vmem:[#allocation2] sm:$0xff] %vm109_vm5, %v105_v34 }
 0x18f   :  { %121 = dma.vmem_to_hbm [thread:$0]  %s117_s28, 128, %s119_s5, [#allocation3]  }
 0x195   :  { %v107_v35 = vpop.f32.mrf.mxu0 }
 0x196   :  { %180 = dma.done.wait [#allocation3], 128  }
 0x197   :  { %181 = vsyncadd [#allocation3], 4294967168 }
 0x198   :  { %126 = vsyncpa [#allocation3], 1 }

</bundles_post_ra>
